<compile_context>
chip_gen: v6e
topology: v6e:2x2x1
jax: 0.10.0
libtpu: 0.0.40
codegen_flags: <defaults>
</compile_context>

<pallas_src>
import functools

import jax
import jax.numpy as jnp
from jax.experimental import pallas as pl
from jax.experimental.pallas import tpu as pltpu


# ----------------------------------------------------------------------------
# Tiling helpers
# ----------------------------------------------------------------------------
def _row_tiling(M, cap=512):
    """Pick a row tile tm (multiple of 8) that yields >= 2 grid blocks.

    No host-side padding: callers use grid = pl.cdiv(M, tm) and let Pallas
    mask the tail block.  >= 2 blocks keeps both v7x TensorCores busy.
    """
    if M <= 16:
        return M
    for t in (512, 256, 128, 64, 32, 16, 8):
        if t <= cap and M % t == 0 and M // t >= 2:
            return t
    return min(cap, max(8, ((M // 2 + 7) // 8) * 8))


# ----------------------------------------------------------------------------
# Pallas kernels
# ----------------------------------------------------------------------------
def _linear_kernel(x_ref, w_ref, b_ref, o_ref):
    # bf16 operands (pre-cast on host), f32 accumulation.
    y = jnp.dot(x_ref[...], w_ref[...], preferred_element_type=jnp.float32)
    y = y + b_ref[...]
    o_ref[...] = y.astype(o_ref.dtype)


def pallas_linear(x_bf16, w_bf16, b_f32, out_dtype=jnp.bfloat16):
    """y = x @ w + b; x: (M, K) bf16, w: (K, N) bf16, b: (N,) f32."""
    M, K = x_bf16.shape
    N = w_bf16.shape[1]
    tm = _row_tiling(M)
    return pl.pallas_call(
        _linear_kernel,
        out_shape=jax.ShapeDtypeStruct((M, N), out_dtype),
        grid=(pl.cdiv(M, tm),),
        in_specs=[
            pl.BlockSpec((tm, K), lambda i: (i, 0)),
            pl.BlockSpec((K, N), lambda i: (0, 0)),
            pl.BlockSpec((1, N), lambda i: (0, 0)),
        ],
        out_specs=pl.BlockSpec((tm, N), lambda i: (i, 0)),
        compiler_params=pltpu.CompilerParams(dimension_semantics=("parallel",)),
    )(x_bf16, w_bf16, b_f32.reshape(1, N))


def _fused_branch_kernel(*refs, nc, D, use_x):
    """Fused: [1x1-proj conv +] encode add + LayerNorm + class/coord heads.

    Output is one lane-dense (tm, 128) slab: class logits in lanes [0, nc),
    (sigmoid-0.5)*2 offsets in lanes [nc, nc+2), exact zeros elsewhere.
    """
    f32, bf16 = jnp.float32, jnp.bfloat16
    if use_x:
        x_ref, e_ref, pw_ref, vec_ref, w12_ref, wh_ref, bh_ref, o_ref = refs
    else:
        e_ref, vec_ref, w12_ref, wh_ref, bh_ref, o_ref = refs

    vec = vec_ref[...]                      # (8, D) f32: [proj_b, ln_g, ln_b, b1, b2, 0..]
    g, be = vec[1:2, :], vec[2:3, :]
    b1, b2 = vec[3:4, :], vec[4:5, :]

    e = e_ref[...].astype(f32)
    if use_x:
        pb = vec[0:1, :]
        # 1x1 input-projection conv (pointwise), bf16 MXU / f32 accumulate.
        s = jnp.dot(x_ref[...], pw_ref[...], preferred_element_type=f32) + pb + e
    else:
        # identity encoder: src_feats == encode_feats, so src + enc == 2*enc.
        s = e + e

    # LayerNorm (f32, biased variance, eps=1e-5 — matches nn.LayerNorm)
    mu = jnp.mean(s, axis=-1, keepdims=True)
    var = jnp.mean(jnp.square(s - mu), axis=-1, keepdims=True)
    xn = (s - mu) * jax.lax.rsqrt(var + 1e-5) * g + be
    xnb = xn.astype(bf16)

    w1 = w12_ref[0:D, :]                    # (D, D) bf16
    w2 = w12_ref[D:2 * D, :]                # (D, D) bf16
    wc = wh_ref[0:D, :]                     # (D, 128) bf16, cls weights in lanes [0, nc)
    w3 = wh_ref[D:2 * D, :]                 # (D, 128) bf16, off weights in lanes [nc, nc+2)
    bh = bh_ref[...]                        # (2, 128) f32
    bc, b3 = bh[0:1, :], bh[1:2, :]

    # class_embed (full 128-lane matmul; pad lanes are exactly zero)
    cls = jnp.dot(xnb, wc, preferred_element_type=f32) + bc

    # coord_embed: 3-layer MLP, ReLU on first two layers
    h1 = jnp.maximum(jnp.dot(xnb, w1, preferred_element_type=f32) + b1, 0.0)
    h2 = jnp.maximum(jnp.dot(h1.astype(bf16), w2, preferred_element_type=f32) + b2, 0.0)
    o = jnp.dot(h2.astype(bf16), w3, preferred_element_type=f32) + b3
    off = (jax.nn.sigmoid(o) - 0.5) * 2.0   # zero-pad lanes -> exactly 0

    lane = jax.lax.broadcasted_iota(jnp.int32, cls.shape, 1)
    o_ref[...] = jnp.where(lane < nc, cls, off)   # unmasked lane-dense store


def _pack_head_params(hp, proj_b, D, out_w=128):
    """Pack head params into few wide refs (bf16 weights, f32 bias rows)."""
    nc = hp["wc"].shape[1]
    wc = jnp.zeros((D, out_w), jnp.float32).at[:, :nc].set(hp["wc"])
    w3 = jnp.zeros((D, out_w), jnp.float32).at[:, nc:nc + 2].set(hp["w3"])
    whead = jnp.concatenate([wc, w3], axis=0).astype(jnp.bfloat16)        # (2D, 128)

    bc = jnp.zeros((out_w,), jnp.float32).at[:nc].set(hp["bc"])
    b3 = jnp.zeros((out_w,), jnp.float32).at[nc:nc + 2].set(hp["b3"])
    bhead = jnp.stack([bc, b3], axis=0)                                   # (2, 128)

    w12 = jnp.concatenate([hp["w1"], hp["w2"]], axis=0).astype(jnp.bfloat16)  # (2D, D)

    vec = jnp.zeros((8, D), jnp.float32)
    vec = (vec.at[0].set(proj_b)
              .at[1].set(hp["ln_g"]).at[2].set(hp["ln_b"])
              .at[3].set(hp["b1"]).at[4].set(hp["b2"]))                   # (8, D)
    return whead, bhead, w12, vec, nc


def pallas_fused_branch(x_slab, enc_slab, proj_w_bf16, proj_b, hp, *, use_x):
    """x_slab: (M, Cb) bf16 raw backbone slab (or None), enc_slab: (M, D) bf16.

    Returns (class_logits (M, nc) f32, offsets (M, 2) f32)."""
    M, D = enc_slab.shape
    OUT_W = 128
    whead, bhead, w12, vec, nc = _pack_head_params(hp, proj_b, D, OUT_W)

    tm = _row_tiling(M)
    grid = (pl.cdiv(M, tm),)

    def tile(shape):
        return pl.BlockSpec(shape, lambda i: (i, 0))

    def const(shape):
        # TODO(synk): pipeline_mode=pl.Buffered(1) would halve VMEM for these
        # constant-index blocks on v7x once realistic weight sizes are used.
        return pl.BlockSpec(shape, lambda i: (0, 0))

    if use_x:
        Cb = x_slab.shape[1]
        operands = (x_slab, enc_slab, proj_w_bf16, vec, w12, whead, bhead)
        in_specs = [tile((tm, Cb)), tile((tm, D)), const((Cb, D)),
                    const((8, D)), const((2 * D, D)),
                    const((2 * D, OUT_W)), const((2, OUT_W))]
    else:
        operands = (enc_slab, vec, w12, whead, bhead)
        in_specs = [tile((tm, D)), const((8, D)), const((2 * D, D)),
                    const((2 * D, OUT_W)), const((2, OUT_W))]

    packed = pl.pallas_call(
        functools.partial(_fused_branch_kernel, nc=nc, D=D, use_x=use_x),
        out_shape=jax.ShapeDtypeStruct((M, OUT_W), jnp.float32),
        grid=grid,
        in_specs=in_specs,
        out_specs=pl.BlockSpec((tm, OUT_W), lambda i: (i, 0)),
        compiler_params=pltpu.CompilerParams(dimension_semantics=("parallel",)),
    )(*operands)

    cls = packed[:, :nc]
    off = packed[:, nc:nc + 2]
    return cls, off


# ----------------------------------------------------------------------------
# JAX glue
# ----------------------------------------------------------------------------
def nearest_interpolate_nchw(x_nchw, out_h, out_w):
    """F.interpolate(..., mode='nearest'): idx = floor(i * in / out)."""
    B, C, H, W = x_nchw.shape
    ys = (jnp.arange(out_h) * H) // out_h
    xs = (jnp.arange(out_w) * W) // out_w
    return x_nchw[:, :, ys[:, None], xs[None, :]]


def base_pet_count(hp, feat_nhwc, proj_w_bf16, proj_b, enc_nhwc, img_shape, stride,
                   *, src_is_enc=False):
    """BasePETCount.forward (train path), fused proj+add+LN+heads in Pallas."""
    H, W = img_shape
    B, fh, fw, Cb = feat_nhwc.shape
    D = enc_nhwc.shape[-1]
    nc = hp["wc"].shape[1]

    shape_h = (H + stride // 2 - 1) // stride
    shape_w = (W + stride // 2 - 1) // stride
    shift_x = ((jnp.arange(shape_w) + 0.5) * stride).astype(jnp.int32)
    shift_y = ((jnp.arange(shape_h) + 0.5) * stride).astype(jnp.int32)
    sy, sx = jnp.meshgrid(shift_y, shift_x, indexing="ij")
    points_queries = jnp.stack([sy.reshape(-1), sx.reshape(-1)], axis=1)   # (N, 2) = (y, x)

    h, w = shape_h, shape_w
    N = h * w

    # nearest-interpolate encode feats to the query grid (identity when equal)
    eh, ew = enc_nhwc.shape[1], enc_nhwc.shape[2]
    if (h, w) == (eh, ew):
        enc_q = enc_nhwc
    else:
        # TODO(synk): express this 2x nearest upsample via the enc BlockSpec
        # index_map (spatial grid) to avoid materializing the 4x slab in HBM.
        ys = (jnp.arange(h) * eh) // h
        xs = (jnp.arange(w) * ew) // w
        enc_q = enc_nhwc[:, ys[:, None], xs[None, :], :]
    enc_slab = enc_q.reshape(B * N, D)

    # With the identity encoder and matching grids, src_feats == encode_feats,
    # so the fused kernel computes s = 2*enc and the raw slab / proj matmul
    # are dropped entirely (exactly matches the PyTorch train path).
    use_x = not (src_is_enc and (h, w) == (fh, fw) == (eh, ew))
    if use_x:
        # Point-query gather: in the train path the grid visits every (y, x)
        # exactly once row-major, so when shapes match it is a plain reshape.
        if (h, w) == (fh, fw):
            src_slab = feat_nhwc.reshape(B * N, Cb)
        else:
            yd = points_queries[:, 0] // stride
            xd = points_queries[:, 1] // stride
            src_slab = feat_nhwc[:, yd, xd, :].reshape(B * N, Cb)
    else:
        src_slab = None

    cls, off = pallas_fused_branch(src_slab, enc_slab, proj_w_bf16, proj_b, hp,
                                   use_x=use_x)
    cls = cls.reshape(B, N, nc)
    off = off.reshape(B, N, 2)

    pq = points_queries.astype(jnp.float32) / jnp.array([float(H), float(W)], jnp.float32)
    points = off + pq[None, :, :]

    return {
        "pred_logits": cls,
        "pred_points": points,
        "img_shape": (H, W),
        "pred_offsets": off,
        "points_queries": pq,
        "pq_stride": stride,
    }


def pet_forward(params, samples, feat4x, feat8x):
    """PET.pet_forward (train path) on backbone features feat4x / feat8x."""
    B, _, H, W = samples.shape
    hidden = params["proj8_w"].shape[1]                # static (not a traced leaf)

    # pre-cast weights / activations to bf16 once on the host side of the kernels
    proj8_w = params["proj8_w"].astype(jnp.bfloat16)
    proj4_w = params["proj4_w"].astype(jnp.bfloat16)

    # NCHW -> NHWC once, kept channels-last throughout
    x8 = jnp.transpose(feat8x, (0, 2, 3, 1)).astype(jnp.bfloat16)   # (B, h8, w8, Cb)
    x4 = jnp.transpose(feat4x, (0, 2, 3, 1)).astype(jnp.bfloat16)   # (B, h4, w4, Cb)
    _, h8, w8, Cb = x8.shape

    # input_proj[1] (1x1 conv) + transformer encoder (identity) -> encode_feats
    # TODO(synk): build_encoder transformer is external; treated as identity.
    enc_slab = pallas_linear(x8.reshape(B * h8 * w8, Cb), proj8_w, params["proj8_b"])
    enc_nhwc = enc_slab.reshape(B, h8, w8, hidden)     # bf16, channels-last

    sp_h, sp_w = h8, w8
    ds_h, ds_w = h8 * 2, w8 * 2

    # quadtree splitter: AvgPool2d((8, 16)) -> 1x1 conv -> sigmoid.
    # Tiny (B*ph*pw rows) -> plain jnp, avoiding a pure-overhead pallas_call.
    ch, cw = 8, 16
    ph, pw_ = h8 // ch, w8 // cw
    pooled = enc_nhwc[:, :ph * ch, :pw_ * cw, :].astype(jnp.float32).reshape(
        B, ph, ch, pw_, cw, hidden).mean(axis=(2, 4))              # (B, ph, pw, hidden)
    split = jax.nn.sigmoid(
        jnp.einsum("bpqc,cn->bpqn", pooled, params["split_w"]) + params["split_b"])
    split_map = jnp.transpose(split, (0, 3, 1, 2))                 # (B, 1, ph, pw) NCHW

    split_map_dense = nearest_interpolate_nchw(split_map, ds_h, ds_w).reshape(B, -1)
    split_map_sparse = 1.0 - nearest_interpolate_nchw(split_map, sp_h, sp_w).reshape(B, -1)

    # quadtree branches: fused [proj +] encode-add + LayerNorm + heads
    # TODO(synk): the two branch launches could be merged into one pallas_call
    # (grid=(branch, tiles) + stacked weights) once operand sets are unified.
    out_sparse = base_pet_count(params["sparse"], x8, proj8_w, params["proj8_b"],
                                enc_nhwc, (H, W), stride=8, src_is_enc=True)
    out_dense = base_pet_count(params["dense"], x4, proj4_w, params["proj4_b"],
                               enc_nhwc, (H, W), stride=4, src_is_enc=False)

    return {
        "sparse": out_sparse,
        "dense": out_dense,
        "split_map_raw": split_map,
        "split_map_sparse": split_map_sparse,
        "split_map_dense": split_map_dense,
    }


# ----------------------------------------------------------------------------
# Deterministic parameter construction
# ----------------------------------------------------------------------------
def make_head_params(key, hidden_dim, num_classes):
    ks = jax.random.split(key, 8)
    nc = num_classes + 1
    s = 0.02
    return {
        "ln_g": jnp.ones((hidden_dim,), jnp.float32),
        "ln_b": jnp.zeros((hidden_dim,), jnp.float32),
        "wc": s * jax.random.normal(ks[0], (hidden_dim, nc), jnp.float32),
        "bc": s * jax.random.normal(ks[1], (nc,), jnp.float32),
        "w1": s * jax.random.normal(ks[2], (hidden_dim, hidden_dim), jnp.float32),
        "b1": s * jax.random.normal(ks[3], (hidden_dim,), jnp.float32),
        "w2": s * jax.random.normal(ks[4], (hidden_dim, hidden_dim), jnp.float32),
        "b2": s * jax.random.normal(ks[5], (hidden_dim,), jnp.float32),
        "w3": s * jax.random.normal(ks[6], (hidden_dim, 2), jnp.float32),
        "b3": s * jax.random.normal(ks[7], (2,), jnp.float32),
    }


def make_params(key, hidden_dim, backbone_channels, num_classes):
    ks = jax.random.split(key, 8)
    s = 0.02
    return {
        "proj4_w": s * jax.random.normal(ks[0], (backbone_channels, hidden_dim), jnp.float32),
        "proj4_b": s * jax.random.normal(ks[1], (hidden_dim,), jnp.float32),
        "proj8_w": s * jax.random.normal(ks[2], (backbone_channels, hidden_dim), jnp.float32),
        "proj8_b": s * jax.random.normal(ks[3], (hidden_dim,), jnp.float32),
        "split_w": s * jax.random.normal(ks[4], (hidden_dim, 1), jnp.float32),
        "split_b": s * jax.random.normal(ks[5], (1,), jnp.float32),
        "sparse": make_head_params(ks[6], hidden_dim, num_classes),
        "dense": make_head_params(ks[7], hidden_dim, num_classes),
    }


# ----------------------------------------------------------------------------
if __name__ == "__main__":
    key = jax.random.PRNGKey(0)
    k_img, k_f4, k_f8, _ = jax.random.split(key, 4)

    B, H, W = 2, 64, 128
    backbone_channels = 8
    hidden_dim = 32
    num_classes = 1

    samples = jax.random.normal(k_img, (B, 3, H, W), jnp.float32)                    # NCHW images
    feat4x = jax.random.normal(k_f4, (B, backbone_channels, H // 4, W // 4), jnp.float32)
    feat8x = jax.random.normal(k_f8, (B, backbone_channels, H // 8, W // 8), jnp.float32)

    params = make_params(jax.random.PRNGKey(42), hidden_dim, backbone_channels, num_classes)

    out = jax.jit(pet_forward)(params, samples, feat4x, feat8x)

    jax.block_until_ready(out["sparse"]["pred_logits"])
    jax.block_until_ready(out["sparse"]["pred_points"])
    jax.block_until_ready(out["dense"]["pred_logits"])
    jax.block_until_ready(out["dense"]["pred_points"])
    jax.block_until_ready(out["split_map_raw"])

    # sanity on shapes implied by the PyTorch module
    assert out["sparse"]["pred_logits"].shape == (B, 8 * 16, num_classes + 1)
    assert out["sparse"]["pred_points"].shape == (B, 8 * 16, 2)
    assert out["dense"]["pred_logits"].shape == (B, 16 * 32, num_classes + 1)
    assert out["dense"]["pred_points"].shape == (B, 16 * 32, 2)
    assert out["split_map_raw"].shape == (B, 1, 1, 1)
    assert out["split_map_sparse"].shape == (B, 8 * 16)
    assert out["split_map_dense"].shape == (B, 16 * 32)

    # finiteness sanity
    assert bool(jnp.all(jnp.isfinite(out["dense"]["pred_points"])))
    assert bool(jnp.all(jnp.isfinite(out["sparse"]["pred_logits"])))

    print("KERNEL_OK")
</pallas_src>

<mosaic_0001>
module attributes {stable_mosaic.version = 11 : i64} {
  func.func @_linear_kernel(%arg0: i32, %arg1: memref<128x8xbf16, #tpu.memory_space<vmem>>, %arg2: memref<8x32xbf16, #tpu.memory_space<vmem>>, %arg3: memref<1x32xf32, #tpu.memory_space<vmem>>, %arg4: memref<128x32xbf16, #tpu.memory_space<vmem>>) attributes {dimension_semantics = [#tpu.dimension_semantics<parallel>], iteration_bounds = array<i64: 2>, scalar_prefetch = 0 : i64, scratch_operands = 0 : i64, tpu.core_type = #tpu.core_type<tc>, window_params = [{transform_indices = @transform_0, window_bounds = array<i64: 128, 8>}, {pipeline_mode = #tpu.pipeline_mode<synchronous>, transform_indices = @transform_1, window_bounds = array<i64: 8, 32>}, {pipeline_mode = #tpu.pipeline_mode<synchronous>, transform_indices = @transform_2, window_bounds = array<i64: 1, 32>}, {transform_indices = @transform_3, window_bounds = array<i64: 128, 32>}]} {
    %c0 = arith.constant 0 : index
    %c0_0 = arith.constant 0 : index
    %0 = vector.load %arg1[%c0, %c0_0] : memref<128x8xbf16, #tpu.memory_space<vmem>>, vector<128x8xbf16>
    %c0_1 = arith.constant 0 : index
    %c0_2 = arith.constant 0 : index
    %1 = vector.load %arg2[%c0_1, %c0_2] : memref<8x32xbf16, #tpu.memory_space<vmem>>, vector<8x32xbf16>
    %cst = arith.constant dense<0.000000e+00> : vector<128x32xf32>
    %2 = tpu.matmul %0, %1, %cst {dimension_numbers = #tpu.dot_dimension_numbers<[1], [0], [0], [1], [0, 0, 1, 1], [], []>} : vector<128x8xbf16>, vector<8x32xbf16>, vector<128x32xf32> -> vector<128x32xf32>
    %c0_3 = arith.constant 0 : index
    %c0_4 = arith.constant 0 : index
    %3 = vector.load %arg3[%c0_3, %c0_4] : memref<1x32xf32, #tpu.memory_space<vmem>>, vector<1x32xf32>
    %4 = vector.broadcast %3 : vector<1x32xf32> to vector<128x32xf32>
    %5 = arith.addf %2, %4 : vector<128x32xf32>
    %6 = arith.truncf %5 : vector<128x32xf32> to vector<128x32xbf16>
    %c0_5 = arith.constant 0 : index
    %c0_6 = arith.constant 0 : index
    %7 = vector.load %arg4[%c0_5, %c0_6] : memref<128x32xbf16, #tpu.memory_space<vmem>>, vector<128x32xbf16>
    tpu.vector_store %arg4[%c0_5, %c0_6], %6 {strides = array<i32>} : memref<128x32xbf16, #tpu.memory_space<vmem>>, vector<128x32xbf16>,
    return
  }
  func.func @transform_0(%arg0: i32) -> (i32, i32) {
    %c0_i32 = arith.constant 0 : i32
    %c0_i32_0 = arith.constant 0 : i32
    return %arg0, %c0_i32 : i32, i32
  }
  func.func @transform_1(%arg0: i32) -> (i32, i32) {
    %c0_i32 = arith.constant 0 : i32
    %c0_i32_0 = arith.constant 0 : i32
    %c0_i32_1 = arith.constant 0 : i32
    return %c0_i32, %c0_i32_0 : i32, i32
  }
  func.func @transform_2(%arg0: i32) -> (i32, i32) {
    %c0_i32 = arith.constant 0 : i32
    %c0_i32_0 = arith.constant 0 : i32
    %c0_i32_1 = arith.constant 0 : i32
    return %c0_i32, %c0_i32_0 : i32, i32
  }
  func.func @transform_3(%arg0: i32) -> (i32, i32) {
    %c0_i32 = arith.constant 0 : i32
    %c0_i32_0 = arith.constant 0 : i32
    return %arg0, %c0_i32 : i32, i32
  }
}

module attributes {stable_mosaic.version = 11 : i64} {
  func.func @_fused_branch_kernel(%arg0: i32, %arg1: memref<128x32xbf16, #tpu.memory_space<vmem>>, %arg2: memref<8x32xf32, #tpu.memory_space<vmem>>, %arg3: memref<64x32xbf16, #tpu.memory_space<vmem>>, %arg4: memref<64x128xbf16, #tpu.memory_space<vmem>>, %arg5: memref<2x128xf32, #tpu.memory_space<vmem>>, %arg6: memref<128x128xf32, #tpu.memory_space<vmem>>) attributes {dimension_semantics = [#tpu.dimension_semantics<parallel>], iteration_bounds = array<i64: 2>, scalar_prefetch = 0 : i64, scratch_operands = 0 : i64, tpu.core_type = #tpu.core_type<tc>, window_params = [{transform_indices = @transform_0, window_bounds = array<i64: 128, 32>}, {pipeline_mode = #tpu.pipeline_mode<synchronous>, transform_indices = @transform_1, window_bounds = array<i64: 8, 32>}, {pipeline_mode = #tpu.pipeline_mode<synchronous>, transform_indices = @transform_2, window_bounds = array<i64: 64, 32>}, {pipeline_mode = #tpu.pipeline_mode<synchronous>, transform_indices = @transform_3, window_bounds = array<i64: 64, 128>}, {pipeline_mode = #tpu.pipeline_mode<synchronous>, transform_indices = @transform_4, window_bounds = array<i64: 2, 128>}, {transform_indices = @transform_5, window_bounds = array<i64: 128, 128>}]} {
    %c0 = arith.constant 0 : index
    %c0_0 = arith.constant 0 : index
    %0 = vector.load %arg2[%c0, %c0_0] : memref<8x32xf32, #tpu.memory_space<vmem>>, vector<8x32xf32>
    %1 = vector.extract_strided_slice %0 {offsets = [1, 0], sizes = [1, 32], strides = [1, 1]} : vector<8x32xf32> to vector<1x32xf32>
    %2 = vector.extract_strided_slice %0 {offsets = [2, 0], sizes = [1, 32], strides = [1, 1]} : vector<8x32xf32> to vector<1x32xf32>
    %3 = vector.extract_strided_slice %0 {offsets = [3, 0], sizes = [1, 32], strides = [1, 1]} : vector<8x32xf32> to vector<1x32xf32>
    %4 = vector.extract_strided_slice %0 {offsets = [4, 0], sizes = [1, 32], strides = [1, 1]} : vector<8x32xf32> to vector<1x32xf32>
    %c0_1 = arith.constant 0 : index
    %c0_2 = arith.constant 0 : index
    %5 = vector.load %arg1[%c0_1, %c0_2] : memref<128x32xbf16, #tpu.memory_space<vmem>>, vector<128x32xbf16>
    %6 = arith.extf %5 : vector<128x32xbf16> to vector<128x32xf32>
    %7 = arith.addf %6, %6 : vector<128x32xf32>
    %cst = arith.constant dense<0.000000e+00> : vector<128xf32>
    %8 = vector.multi_reduction <add>, %7, %cst [1] : vector<128x32xf32> to vector<128xf32>
    %9 = vector.shape_cast %8 : vector<128xf32> to vector<128x1xf32>
    %cst_3 = arith.constant 3.200000e+01 : f32
    %10 = vector.broadcast %cst_3 : f32 to vector<128x1xf32>
    %11 = arith.divf %9, %10 : vector<128x1xf32>
    %12 = vector.broadcast %11 : vector<128x1xf32> to vector<128x32xf32>
    %13 = arith.subf %7, %12 : vector<128x32xf32>
    %14 = arith.mulf %13, %13 : vector<128x32xf32>
    %cst_4 = arith.constant dense<0.000000e+00> : vector<128xf32>
    %15 = vector.multi_reduction <add>, %14, %cst_4 [1] : vector<128x32xf32> to vector<128xf32>
    %16 = vector.shape_cast %15 : vector<128xf32> to vector<128x1xf32>
    %cst_5 = arith.constant 3.200000e+01 : f32
    %17 = vector.broadcast %cst_5 : f32 to vector<128x1xf32>
    %18 = arith.divf %16, %17 : vector<128x1xf32>
    %19 = vector.broadcast %11 : vector<128x1xf32> to vector<128x32xf32>
    %20 = arith.subf %7, %19 : vector<128x32xf32>
    %cst_6 = arith.constant 9.99999974E-6 : f32
    %21 = vector.broadcast %cst_6 : f32 to vector<128x1xf32>
    %22 = arith.addf %18, %21 : vector<128x1xf32>
    %23 = math.rsqrt %22 : vector<128x1xf32>
    %24 = vector.broadcast %23 : vector<128x1xf32> to vector<128x32xf32>
    %25 = arith.mulf %20, %24 : vector<128x32xf32>
    %26 = vector.broadcast %1 : vector<1x32xf32> to vector<128x32xf32>
    %27 = arith.mulf %25, %26 : vector<128x32xf32>
    %28 = vector.broadcast %2 : vector<1x32xf32> to vector<128x32xf32>
    %29 = arith.addf %27, %28 : vector<128x32xf32>
    %30 = arith.truncf %29 : vector<128x32xf32> to vector<128x32xbf16>
    %c0_7 = arith.constant 0 : index
    %c0_8 = arith.constant 0 : index
    %31 = vector.load %arg3[%c0_7, %c0_8] : memref<64x32xbf16, #tpu.memory_space<vmem>>, vector<32x32xbf16>
    %c32 = arith.constant 32 : index
    %c0_9 = arith.constant 0 : index
    %32 = vector.load %arg3[%c32, %c0_9] : memref<64x32xbf16, #tpu.memory_space<vmem>>, vector<32x32xbf16>
    %c0_10 = arith.constant 0 : index
    %c0_11 = arith.constant 0 : index
    %33 = vector.load %arg4[%c0_10, %c0_11] : memref<64x128xbf16, #tpu.memory_space<vmem>>, vector<32x128xbf16>
    %c32_12 = arith.constant 32 : index
    %c0_13 = arith.constant 0 : index
    %34 = vector.load %arg4[%c32_12, %c0_13] : memref<64x128xbf16, #tpu.memory_space<vmem>>, vector<32x128xbf16>
    %c0_14 = arith.constant 0 : index
    %c0_15 = arith.constant 0 : index
    %35 = vector.load %arg5[%c0_14, %c0_15] : memref<2x128xf32, #tpu.memory_space<vmem>>, vector<2x128xf32>
    %36 = vector.extract_strided_slice %35 {offsets = [0, 0], sizes = [1, 128], strides = [1, 1]} : vector<2x128xf32> to vector<1x128xf32>
    %37 = vector.extract_strided_slice %35 {offsets = [1, 0], sizes = [1, 128], strides = [1, 1]} : vector<2x128xf32> to vector<1x128xf32>
    %cst_16 = arith.constant dense<0.000000e+00> : vector<128x128xf32>
    %38 = tpu.matmul %30, %33, %cst_16 {dimension_numbers = #tpu.dot_dimension_numbers<[1], [0], [0], [1], [0, 0, 1, 1], [], []>} : vector<128x32xbf16>, vector<32x128xbf16>, vector<128x128xf32> -> vector<128x128xf32>
    %39 = vector.broadcast %36 : vector<1x128xf32> to vector<128x128xf32>
    %40 = arith.addf %38, %39 : vector<128x128xf32>
    %cst_17 = arith.constant dense<0.000000e+00> : vector<128x32xf32>
    %41 = tpu.matmul %30, %31, %cst_17 {dimension_numbers = #tpu.dot_dimension_numbers<[1], [0], [0], [1], [0, 0, 1, 1], [], []>} : vector<128x32xbf16>, vector<32x32xbf16>, vector<128x32xf32> -> vector<128x32xf32>
    %42 = vector.broadcast %3 : vector<1x32xf32> to vector<128x32xf32>
    %43 = arith.addf %41, %42 : vector<128x32xf32>
    %cst_18 = arith.constant 0.000000e+00 : f32
    %44 = vector.broadcast %cst_18 : f32 to vector<128x32xf32>
    %45 = arith.maximumf %43, %44 : vector<128x32xf32>
    %46 = arith.truncf %45 : vector<128x32xf32> to vector<128x32xbf16>
    %cst_19 = arith.constant dense<0.000000e+00> : vector<128x32xf32>
    %47 = tpu.matmul %46, %32, %cst_19 {dimension_numbers = #tpu.dot_dimension_numbers<[1], [0], [0], [1], [0, 0, 1, 1], [], []>} : vector<128x32xbf16>, vector<32x32xbf16>, vector<128x32xf32> -> vector<128x32xf32>
    %48 = vector.broadcast %4 : vector<1x32xf32> to vector<128x32xf32>
    %49 = arith.addf %47, %48 : vector<128x32xf32>
    %cst_20 = arith.constant 0.000000e+00 : f32
    %50 = vector.broadcast %cst_20 : f32 to vector<128x32xf32>
    %51 = arith.maximumf %49, %50 : vector<128x32xf32>
    %52 = arith.truncf %51 : vector<128x32xf32> to vector<128x32xbf16>
    %cst_21 = arith.constant dense<0.000000e+00> : vector<128x128xf32>
    %53 = tpu.matmul %52, %34, %cst_21 {dimension_numbers = #tpu.dot_dimension_numbers<[1], [0], [0], [1], [0, 0, 1, 1], [], []>} : vector<128x32xbf16>, vector<32x128xbf16>, vector<128x128xf32> -> vector<128x128xf32>
    %54 = vector.broadcast %37 : vector<1x128xf32> to vector<128x128xf32>
    %55 = arith.addf %53, %54 : vector<128x128xf32>
    %56 = arith.negf %55 : vector<128x128xf32>
    %57 = math.exp %56 : vector<128x128xf32>
    %cst_22 = arith.constant 1.000000e+00 : f32
    %58 = vector.broadcast %cst_22 : f32 to vector<128x128xf32>
    %59 = arith.addf %58, %57 : vector<128x128xf32>
    %60 = arith.divf %58, %59 : vector<128x128xf32>
    %cst_23 = arith.constant 5.000000e-01 : f32
    %61 = vector.broadcast %cst_23 : f32 to vector<128x128xf32>
    %62 = arith.subf %60, %61 : vector<128x128xf32>
    %cst_24 = arith.constant 2.000000e+00 : f32
    %63 = vector.broadcast %cst_24 : f32 to vector<128x128xf32>
    %64 = arith.mulf %62, %63 : vector<128x128xf32>
    %65 = tpu.iota {dimensions = array<i32: 1>} : vector<128x128xi32>
    %c2_i32 = arith.constant 2 : i32
    %66 = vector.broadcast %c2_i32 : i32 to vector<128x128xi32>
    %67 = arith.cmpi slt, %65, %66 : vector<128x128xi32>
    %68 = arith.select %67, %40, %64 : vector<128x128xi1>, vector<128x128xf32>
    %c0_25 = arith.constant 0 : index
    %c0_26 = arith.constant 0 : index
    %69 = vector.load %arg6[%c0_25, %c0_26] : memref<128x128xf32, #tpu.memory_space<vmem>>, vector<128x128xf32>
    tpu.vector_store %arg6[%c0_25, %c0_26], %68 {strides = array<i32>} : memref<128x128xf32, #tpu.memory_space<vmem>>, vector<128x128xf32>,
    return
  }
  func.func @transform_0(%arg0: i32) -> (i32, i32) {
    %c0_i32 = arith.constant 0 : i32
    %c0_i32_0 = arith.constant 0 : i32
    return %arg0, %c0_i32 : i32, i32
  }
  func.func @transform_1(%arg0: i32) -> (i32, i32) {
    %c0_i32 = arith.constant 0 : i32
    %c0_i32_0 = arith.constant 0 : i32
    %c0_i32_1 = arith.constant 0 : i32
    return %c0_i32, %c0_i32_0 : i32, i32
  }
  func.func @transform_2(%arg0: i32) -> (i32, i32) {
    %c0_i32 = arith.constant 0 : i32
    %c0_i32_0 = arith.constant 0 : i32
    %c0_i32_1 = arith.constant 0 : i32
    return %c0_i32, %c0_i32_0 : i32, i32
  }
  func.func @transform_3(%arg0: i32) -> (i32, i32) {
    %c0_i32 = arith.constant 0 : i32
    %c0_i32_0 = arith.constant 0 : i32
    %c0_i32_1 = arith.constant 0 : i32
    return %c0_i32, %c0_i32_0 : i32, i32
  }
  func.func @transform_4(%arg0: i32) -> (i32, i32) {
    %c0_i32 = arith.constant 0 : i32
    %c0_i32_0 = arith.constant 0 : i32
    %c0_i32_1 = arith.constant 0 : i32
    return %c0_i32, %c0_i32_0 : i32, i32
  }
  func.func @transform_5(%arg0: i32) -> (i32, i32) {
    %c0_i32 = arith.constant 0 : i32
    %c0_i32_0 = arith.constant 0 : i32
    return %arg0, %c0_i32 : i32, i32
  }
}

module attributes {stable_mosaic.version = 11 : i64} {
  func.func @_fused_branch_kernel(%arg0: i32, %arg1: memref<512x8xbf16, #tpu.memory_space<vmem>>, %arg2: memref<512x32xbf16, #tpu.memory_space<vmem>>, %arg3: memref<8x32xbf16, #tpu.memory_space<vmem>>, %arg4: memref<8x32xf32, #tpu.memory_space<vmem>>, %arg5: memref<64x32xbf16, #tpu.memory_space<vmem>>, %arg6: memref<64x128xbf16, #tpu.memory_space<vmem>>, %arg7: memref<2x128xf32, #tpu.memory_space<vmem>>, %arg8: memref<512x128xf32, #tpu.memory_space<vmem>>) attributes {dimension_semantics = [#tpu.dimension_semantics<parallel>], iteration_bounds = array<i64: 2>, scalar_prefetch = 0 : i64, scratch_operands = 0 : i64, tpu.core_type = #tpu.core_type<tc>, window_params = [{transform_indices = @transform_0, window_bounds = array<i64: 512, 8>}, {transform_indices = @transform_1, window_bounds = array<i64: 512, 32>}, {pipeline_mode = #tpu.pipeline_mode<synchronous>, transform_indices = @transform_2, window_bounds = array<i64: 8, 32>}, {pipeline_mode = #tpu.pipeline_mode<synchronous>, transform_indices = @transform_3, window_bounds = array<i64: 8, 32>}, {pipeline_mode = #tpu.pipeline_mode<synchronous>, transform_indices = @transform_4, window_bounds = array<i64: 64, 32>}, {pipeline_mode = #tpu.pipeline_mode<synchronous>, transform_indices = @transform_5, window_bounds = array<i64: 64, 128>}, {pipeline_mode = #tpu.pipeline_mode<synchronous>, transform_indices = @transform_6, window_bounds = array<i64: 2, 128>}, {transform_indices = @transform_7, window_bounds = array<i64: 512, 128>}]} {
    %c0 = arith.constant 0 : index
    %c0_0 = arith.constant 0 : index
    %0 = vector.load %arg4[%c0, %c0_0] : memref<8x32xf32, #tpu.memory_space<vmem>>, vector<8x32xf32>
    %1 = vector.extract_strided_slice %0 {offsets = [1, 0], sizes = [1, 32], strides = [1, 1]} : vector<8x32xf32> to vector<1x32xf32>
    %2 = vector.extract_strided_slice %0 {offsets = [2, 0], sizes = [1, 32], strides = [1, 1]} : vector<8x32xf32> to vector<1x32xf32>
    %3 = vector.extract_strided_slice %0 {offsets = [3, 0], sizes = [1, 32], strides = [1, 1]} : vector<8x32xf32> to vector<1x32xf32>
    %4 = vector.extract_strided_slice %0 {offsets = [4, 0], sizes = [1, 32], strides = [1, 1]} : vector<8x32xf32> to vector<1x32xf32>
    %c0_1 = arith.constant 0 : index
    %c0_2 = arith.constant 0 : index
    %5 = vector.load %arg2[%c0_1, %c0_2] : memref<512x32xbf16, #tpu.memory_space<vmem>>, vector<512x32xbf16>
    %6 = arith.extf %5 : vector<512x32xbf16> to vector<512x32xf32>
    %7 = vector.extract_strided_slice %0 {offsets = [0, 0], sizes = [1, 32], strides = [1, 1]} : vector<8x32xf32> to vector<1x32xf32>
    %c0_3 = arith.constant 0 : index
    %c0_4 = arith.constant 0 : index
    %8 = vector.load %arg1[%c0_3, %c0_4] : memref<512x8xbf16, #tpu.memory_space<vmem>>, vector<512x8xbf16>
    %c0_5 = arith.constant 0 : index
    %c0_6 = arith.constant 0 : index
    %9 = vector.load %arg3[%c0_5, %c0_6] : memref<8x32xbf16, #tpu.memory_space<vmem>>, vector<8x32xbf16>
    %cst = arith.constant dense<0.000000e+00> : vector<512x32xf32>
    %10 = tpu.matmul %8, %9, %cst {dimension_numbers = #tpu.dot_dimension_numbers<[1], [0], [0], [1], [0, 0, 1, 1], [], []>} : vector<512x8xbf16>, vector<8x32xbf16>, vector<512x32xf32> -> vector<512x32xf32>
    %11 = vector.broadcast %7 : vector<1x32xf32> to vector<512x32xf32>
    %12 = arith.addf %10, %11 : vector<512x32xf32>
    %13 = arith.addf %12, %6 : vector<512x32xf32>
    %cst_7 = arith.constant dense<0.000000e+00> : vector<512xf32>
    %14 = vector.multi_reduction <add>, %13, %cst_7 [1] : vector<512x32xf32> to vector<512xf32>
    %15 = vector.shape_cast %14 : vector<512xf32> to vector<512x1xf32>
    %cst_8 = arith.constant 3.200000e+01 : f32
    %16 = vector.broadcast %cst_8 : f32 to vector<512x1xf32>
    %17 = arith.divf %15, %16 : vector<512x1xf32>
    %18 = vector.broadcast %17 : vector<512x1xf32> to vector<512x32xf32>
    %19 = arith.subf %13, %18 : vector<512x32xf32>
    %20 = arith.mulf %19, %19 : vector<512x32xf32>
    %cst_9 = arith.constant dense<0.000000e+00> : vector<512xf32>
    %21 = vector.multi_reduction <add>, %20, %cst_9 [1] : vector<512x32xf32> to vector<512xf32>
    %22 = vector.shape_cast %21 : vector<512xf32> to vector<512x1xf32>
    %cst_10 = arith.constant 3.200000e+01 : f32
    %23 = vector.broadcast %cst_10 : f32 to vector<512x1xf32>
    %24 = arith.divf %22, %23 : vector<512x1xf32>
    %25 = vector.broadcast %17 : vector<512x1xf32> to vector<512x32xf32>
    %26 = arith.subf %13, %25 : vector<512x32xf32>
    %cst_11 = arith.constant 9.99999974E-6 : f32
    %27 = vector.broadcast %cst_11 : f32 to vector<512x1xf32>
    %28 = arith.addf %24, %27 : vector<512x1xf32>
    %29 = math.rsqrt %28 : vector<512x1xf32>
    %30 = vector.broadcast %29 : vector<512x1xf32> to vector<512x32xf32>
    %31 = arith.mulf %26, %30 : vector<512x32xf32>
    %32 = vector.broadcast %1 : vector<1x32xf32> to vector<512x32xf32>
    %33 = arith.mulf %31, %32 : vector<512x32xf32>
    %34 = vector.broadcast %2 : vector<1x32xf32> to vector<512x32xf32>
    %35 = arith.addf %33, %34 : vector<512x32xf32>
    %36 = arith.truncf %35 : vector<512x32xf32> to vector<512x32xbf16>
    %c0_12 = arith.constant 0 : index
    %c0_13 = arith.constant 0 : index
    %37 = vector.load %arg5[%c0_12, %c0_13] : memref<64x32xbf16, #tpu.memory_space<vmem>>, vector<32x32xbf16>
    %c32 = arith.constant 32 : index
    %c0_14 = arith.constant 0 : index
    %38 = vector.load %arg5[%c32, %c0_14] : memref<64x32xbf16, #tpu.memory_space<vmem>>, vector<32x32xbf16>
    %c0_15 = arith.constant 0 : index
    %c0_16 = arith.constant 0 : index
    %39 = vector.load %arg6[%c0_15, %c0_16] : memref<64x128xbf16, #tpu.memory_space<vmem>>, vector<32x128xbf16>
    %c32_17 = arith.constant 32 : index
    %c0_18 = arith.constant 0 : index
    %40 = vector.load %arg6[%c32_17, %c0_18] : memref<64x128xbf16, #tpu.memory_space<vmem>>, vector<32x128xbf16>
    %c0_19 = arith.constant 0 : index
    %c0_20 = arith.constant 0 : index
    %41 = vector.load %arg7[%c0_19, %c0_20] : memref<2x128xf32, #tpu.memory_space<vmem>>, vector<2x128xf32>
    %42 = vector.extract_strided_slice %41 {offsets = [0, 0], sizes = [1, 128], strides = [1, 1]} : vector<2x128xf32> to vector<1x128xf32>
    %43 = vector.extract_strided_slice %41 {offsets = [1, 0], sizes = [1, 128], strides = [1, 1]} : vector<2x128xf32> to vector<1x128xf32>
    %cst_21 = arith.constant dense<0.000000e+00> : vector<512x128xf32>
    %44 = tpu.matmul %36, %39, %cst_21 {dimension_numbers = #tpu.dot_dimension_numbers<[1], [0], [0], [1], [0, 0, 1, 1], [], []>} : vector<512x32xbf16>, vector<32x128xbf16>, vector<512x128xf32> -> vector<512x128xf32>
    %45 = vector.broadcast %42 : vector<1x128xf32> to vector<512x128xf32>
    %46 = arith.addf %44, %45 : vector<512x128xf32>
    %cst_22 = arith.constant dense<0.000000e+00> : vector<512x32xf32>
    %47 = tpu.matmul %36, %37, %cst_22 {dimension_numbers = #tpu.dot_dimension_numbers<[1], [0], [0], [1], [0, 0, 1, 1], [], []>} : vector<512x32xbf16>, vector<32x32xbf16>, vector<512x32xf32> -> vector<512x32xf32>
    %48 = vector.broadcast %3 : vector<1x32xf32> to vector<512x32xf32>
    %49 = arith.addf %47, %48 : vector<512x32xf32>
    %cst_23 = arith.constant 0.000000e+00 : f32
    %50 = vector.broadcast %cst_23 : f32 to vector<512x32xf32>
    %51 = arith.maximumf %49, %50 : vector<512x32xf32>
    %52 = arith.truncf %51 : vector<512x32xf32> to vector<512x32xbf16>
    %cst_24 = arith.constant dense<0.000000e+00> : vector<512x32xf32>
    %53 = tpu.matmul %52, %38, %cst_24 {dimension_numbers = #tpu.dot_dimension_numbers<[1], [0], [0], [1], [0, 0, 1, 1], [], []>} : vector<512x32xbf16>, vector<32x32xbf16>, vector<512x32xf32> -> vector<512x32xf32>
    %54 = vector.broadcast %4 : vector<1x32xf32> to vector<512x32xf32>
    %55 = arith.addf %53, %54 : vector<512x32xf32>
    %cst_25 = arith.constant 0.000000e+00 : f32
    %56 = vector.broadcast %cst_25 : f32 to vector<512x32xf32>
    %57 = arith.maximumf %55, %56 : vector<512x32xf32>
    %58 = arith.truncf %57 : vector<512x32xf32> to vector<512x32xbf16>
    %cst_26 = arith.constant dense<0.000000e+00> : vector<512x128xf32>
    %59 = tpu.matmul %58, %40, %cst_26 {dimension_numbers = #tpu.dot_dimension_numbers<[1], [0], [0], [1], [0, 0, 1, 1], [], []>} : vector<512x32xbf16>, vector<32x128xbf16>, vector<512x128xf32> -> vector<512x128xf32>
    %60 = vector.broadcast %43 : vector<1x128xf32> to vector<512x128xf32>
    %61 = arith.addf %59, %60 : vector<512x128xf32>
    %62 = arith.negf %61 : vector<512x128xf32>
    %63 = math.exp %62 : vector<512x128xf32>
    %cst_27 = arith.constant 1.000000e+00 : f32
    %64 = vector.broadcast %cst_27 : f32 to vector<512x128xf32>
    %65 = arith.addf %64, %63 : vector<512x128xf32>
    %66 = arith.divf %64, %65 : vector<512x128xf32>
    %cst_28 = arith.constant 5.000000e-01 : f32
    %67 = vector.broadcast %cst_28 : f32 to vector<512x128xf32>
    %68 = arith.subf %66, %67 : vector<512x128xf32>
    %cst_29 = arith.constant 2.000000e+00 : f32
    %69 = vector.broadcast %cst_29 : f32 to vector<512x128xf32>
    %70 = arith.mulf %68, %69 : vector<512x128xf32>
    %71 = tpu.iota {dimensions = array<i32: 1>} : vector<512x128xi32>
    %c2_i32 = arith.constant 2 : i32
    %72 = vector.broadcast %c2_i32 : i32 to vector<512x128xi32>
    %73 = arith.cmpi slt, %71, %72 : vector<512x128xi32>
    %74 = arith.select %73, %46, %70 : vector<512x128xi1>, vector<512x128xf32>
    %c0_30 = arith.constant 0 : index
    %c0_31 = arith.constant 0 : index
    %75 = vector.load %arg8[%c0_30, %c0_31] : memref<512x128xf32, #tpu.memory_space<vmem>>, vector<512x128xf32>
    tpu.vector_store %arg8[%c0_30, %c0_31], %74 {strides = array<i32>} : memref<512x128xf32, #tpu.memory_space<vmem>>, vector<512x128xf32>,
    return
  }
  func.func @transform_0(%arg0: i32) -> (i32, i32) {
    %c0_i32 = arith.constant 0 : i32
    %c0_i32_0 = arith.constant 0 : i32
    return %arg0, %c0_i32 : i32, i32
  }
  func.func @transform_1(%arg0: i32) -> (i32, i32) {
    %c0_i32 = arith.constant 0 : i32
    %c0_i32_0 = arith.constant 0 : i32
    return %arg0, %c0_i32 : i32, i32
  }
  func.func @transform_2(%arg0: i32) -> (i32, i32) {
    %c0_i32 = arith.constant 0 : i32
    %c0_i32_0 = arith.constant 0 : i32
    %c0_i32_1 = arith.constant 0 : i32
    return %c0_i32, %c0_i32_0 : i32, i32
  }
  func.func @transform_3(%arg0: i32) -> (i32, i32) {
    %c0_i32 = arith.constant 0 : i32
    %c0_i32_0 = arith.constant 0 : i32
    %c0_i32_1 = arith.constant 0 : i32
    return %c0_i32, %c0_i32_0 : i32, i32
  }
  func.func @transform_4(%arg0: i32) -> (i32, i32) {
    %c0_i32 = arith.constant 0 : i32
    %c0_i32_0 = arith.constant 0 : i32
    %c0_i32_1 = arith.constant 0 : i32
    return %c0_i32, %c0_i32_0 : i32, i32
  }
  func.func @transform_5(%arg0: i32) -> (i32, i32) {
    %c0_i32 = arith.constant 0 : i32
    %c0_i32_0 = arith.constant 0 : i32
    %c0_i32_1 = arith.constant 0 : i32
    return %c0_i32, %c0_i32_0 : i32, i32
  }
  func.func @transform_6(%arg0: i32) -> (i32, i32) {
    %c0_i32 = arith.constant 0 : i32
    %c0_i32_0 = arith.constant 0 : i32
    %c0_i32_1 = arith.constant 0 : i32
    return %c0_i32, %c0_i32_0 : i32, i32
  }
  func.func @transform_7(%arg0: i32) -> (i32, i32) {
    %c0_i32 = arith.constant 0 : i32
    %c0_i32_0 = arith.constant 0 : i32
    return %arg0, %c0_i32 : i32, i32
  }
}

</mosaic_0001>

<bundles_post_ra>
// kernel: pet_forward.3
= control target key start
LH: loop header
LB: loop body
LE: loop exit
PB: predicated region body
PF: predicated region fallthrough
CT: control target
= control target key end

     0   :  { %s637_s12 = smov 0   ;;  %s702_s0 = inlined_call_operand.vmem [shape: bf16[256,8], index: 0, kind: input, shape index: {}]   ;;  %s703_s1 = inlined_call_operand.vmem [shape: bf16[8,32], index: 1, kind: input, shape index: {}]   ;;  %s704_s2 = inlined_call_operand.vmem [shape: f32[1,32], index: 2, kind: input, shape index: {}]   ;;  %s705_s3 = inlined_call_operand.vmem [shape: bf16[256,32], index: 3, kind: output, shape index: {}]  }
   0x1 LB: > { %s502_s13 = sadd.s32 4294967295, %s615_s12   ;;  %p506_p0 = scmp.ge.s32.totalorder %s615_s12, 1  ;;  %s615_s12 = sphi %s637_s12, %s13_s12  }
   0x2   : > { %p138_p1 = scmp.lt.s32.totalorder %s615_s12, 3 }
   0x4   : > { %p139_p2 = pnand %p506_p0, %p138_p1 }
   0x5   : > { %s507_s16 = sshll.u32 (!%p139_p2), %s502_s13, 4 }
   0x6   : > { %142 = sbr.rel (%p139_p2) target bundleno = 229 (0xe5), region = 32  ;;  %p163_p3 = scmp.lt.s32.totalorder (!%p139_p2), %s507_s16, 31 }
   0xb   : > { %v191_v0 = vld [vmem:[%s703_s1] sm:$0xf]  ;;  %vm264_vm0 = vcmask 1043456   ;;  %s707_s16 = smov (!%p163_p3, %s507_s16), 31  ;;  %vm239_vm1 = vcmask 64512   ;;  %vm429_vm2 = vcmask 257024  }
   0xc   : > { %591 = vmatprep.subr.msk.bf16.mxu0 %vm264_vm0, %v191_v0  ;;  %592 = vmatprep.subr.msk.bf16.mxu1 %vm264_vm0, %v191_v0  ;;  %v266_v1 = vsel %vm264_vm0, %v191_v0, 0  ;;  %s508_s17 = sshll.u32 %s707_s16, 2  ;;  %v511_v10 = vld [vmem:[%s704_s2] ss:$0 sm:$0xff] }
   0xd   : > { %572 = vmatpush3.bf16.msra.mxu0 %v266_v1  ;;  %590 = vmatpush3.bf16.msra.mxu1 %v266_v1  ;;  %s166_s20 = scalar_lea.vmem %s702_s0, %s508_s17  ;;  %s665_s25 = scalar_lea.vmem %s705_s3, %s508_s17 }
   0xe   : > { %v601_v2 = vld [vmem:[%s166_s20] sm:$0xff]   ;;  %v603_v4 = vld [vmem:[%s166_s20 + $0x8] sm:$0xff]   ;;  %v605_v6 = vld [vmem:[%s166_s20 + $0x10] sm:$0xff]  }
   0xf   : > { %v602_v3 = vld [vmem:[%s166_s20 + $0x20] sm:$0xff]   ;;  %573 = vmatprep.mubr.msk.bf16.mxu0 %vm239_vm1, %v601_v2  ;;  %v604_v5 = vld [vmem:[%s166_s20 + $0x28] sm:$0xff]   ;;  %v606_v7 = vld [vmem:[%s166_s20 + $0x30] sm:$0xff]  }
  0x10   : > { %581 = vmatprep.mubr.msk.bf16.mxu1 %vm239_vm1, %v602_v3  ;;  %574 = vmatmul.mubr.msk.bf16.vlgmr.msra.gmra.mxu0 %vm239_vm1, %v603_v4  ;;  %v607_v8 = vld [vmem:[%s166_s20 + $0x18] sm:$0xff]  }
  0x11   : > { %582 = vmatmul.mubr.msk.bf16.vlgmr.msra.gmra.mxu1 %vm239_vm1, %v604_v5  ;;  %577 = vmatprep.mubr.msk.bf16.mxu0 %vm239_vm1, %v605_v6  ;;  %v608_v9 = vld [vmem:[%s166_s20 + $0x38] sm:$0xff]  }
  0x12   : > { %585 = vmatprep.mubr.msk.bf16.mxu1 %vm239_vm1, %v606_v7 }
  0x18   : > { %578 = vmatmul.mubr.msk.bf16.gmra.mxu0 %vm239_vm1, %v607_v8 }
  0x19   : > { %586 = vmatmul.mubr.msk.bf16.gmra.mxu1 %vm239_vm1, %v608_v9 }
  0xd0   : > { %v575_v11 = vpop.f32.mrf.mxu0 }
  0xd1   : > { %v311_v12 = vadd.f32 %v575_v11, %v511_v10  ;;  %v583_v13 = vpop.f32.mrf.mxu1 }
  0xd2   : > { %v343_v14 = vadd.f32 %v583_v13, %v511_v10  ;;  %v302_v15 = vpop.f32.mrf.mxu0 }
  0xd3   : > { %v548_v16 = vpack.c.bf16 %v311_v12, %v311_v12  ;;  %v303_v17 = vadd.f32 %v511_v10, %v302_v15  ;;  %v334_v18 = vpop.f32.mrf.mxu1 }
  0xd4   : > { %v556_v19 = vpack.c.bf16 %v343_v14, %v343_v14  ;;  %v335_v20 = vadd.f32 %v511_v10, %v334_v18  ;;  %v576_v21 = vpop.f32.mrf.mxu0 }
  0xd5   : > { %432 = vst.msk [vmem:[%s665_s25 + $0x8] sm:$0xf] %vm429_vm2, %v548_v16  ;;  %v546_v22 = vpack.c.bf16 %v303_v17, %v303_v17  ;;  %v314_v23 = vadd.f32 %v576_v21, %v511_v10  ;;  %v584_v24 = vpop.f32.mrf.mxu1 }
  0xd6   : > { %440 = vst.msk [vmem:[%s665_s25 + $0x28] sm:$0xf] %vm429_vm2, %v556_v19  ;;  %v554_v25 = vpack.c.bf16 %v335_v20, %v335_v20  ;;  %v346_v26 = vadd.f32 %v584_v24, %v511_v10  ;;  %v305_v27 = vpop.f32.mrf.mxu0 }
  0xd7   : > { %430 = vst.msk [vmem:[%s665_s25] sm:$0xf] %vm429_vm2, %v546_v22  ;;  %v549_v28 = vpack.c.bf16 %v314_v23, %v314_v23  ;;  %v306_v29 = vadd.f32 %v511_v10, %v305_v27  ;;  %v337_v30 = vpop.f32.mrf.mxu1 }
  0xd8   : > { %438 = vst.msk [vmem:[%s665_s25 + $0x20] sm:$0xf] %vm429_vm2, %v554_v25  ;;  %v557_v31 = vpack.c.bf16 %v346_v26, %v346_v26  ;;  %v338_v32 = vadd.f32 %v511_v10, %v337_v30  ;;  %v579_v33 = vpop.f32.mrf.mxu0 }
  0xd9   : > { %433 = vst.msk [vmem:[%s665_s25 + $0xc] sm:$0xf] %vm429_vm2, %v549_v28  ;;  %v547_v34 = vpack.c.bf16 %v306_v29, %v306_v29  ;;  %v327_v35 = vadd.f32 %v579_v33, %v511_v10  ;;  %v587_v36 = vpop.f32.mrf.mxu1 }
  0xda   : > { %441 = vst.msk [vmem:[%s665_s25 + $0x2c] sm:$0xf] %vm429_vm2, %v557_v31  ;;  %v555_v37 = vpack.c.bf16 %v338_v32, %v338_v32  ;;  %v359_v38 = vadd.f32 %v587_v36, %v511_v10  ;;  %v318_v39 = vpop.f32.mrf.mxu0 }
  0xdb   : > { %431 = vst.msk [vmem:[%s665_s25 + $0x4] sm:$0xf] %vm429_vm2, %v547_v34  ;;  %v552_v40 = vpack.c.bf16 %v327_v35, %v327_v35  ;;  %v319_v41 = vadd.f32 %v511_v10, %v318_v39  ;;  %v350_v42 = vpop.f32.mrf.mxu1 }
  0xdc   : > { %439 = vst.msk [vmem:[%s665_s25 + $0x24] sm:$0xf] %vm429_vm2, %v555_v37  ;;  %v560_v43 = vpack.c.bf16 %v359_v38, %v359_v38  ;;  %v351_v44 = vadd.f32 %v511_v10, %v350_v42  ;;  %v580_v45 = vpop.f32.mrf.mxu0 }
  0xdd   : > { %436 = vst.msk [vmem:[%s665_s25 + $0x18] sm:$0xf] %vm429_vm2, %v552_v40  ;;  %v550_v46 = vpack.c.bf16 %v319_v41, %v319_v41  ;;  %v330_v47 = vadd.f32 %v580_v45, %v511_v10  ;;  %v588_v48 = vpop.f32.mrf.mxu1 }
  0xde   : > { %444 = vst.msk [vmem:[%s665_s25 + $0x38] sm:$0xf] %vm429_vm2, %v560_v43  ;;  %v558_v49 = vpack.c.bf16 %v351_v44, %v351_v44  ;;  %v362_v50 = vadd.f32 %v588_v48, %v511_v10  ;;  %v321_v51 = vpop.f32.mrf.mxu0 }
  0xdf   : > { %434 = vst.msk [vmem:[%s665_s25 + $0x10] sm:$0xf] %vm429_vm2, %v550_v46  ;;  %v553_v52 = vpack.c.bf16 %v330_v47, %v330_v47  ;;  %v322_v53 = vadd.f32 %v511_v10, %v321_v51  ;;  %v353_v54 = vpop.f32.mrf.mxu1 }
  0xe0   : > { %442 = vst.msk [vmem:[%s665_s25 + $0x30] sm:$0xf] %vm429_vm2, %v558_v49  ;;  %v561_v55 = vpack.c.bf16 %v362_v50, %v362_v50  ;;  %v354_v56 = vadd.f32 %v511_v10, %v353_v54 }
  0xe1   : > { %437 = vst.msk [vmem:[%s665_s25 + $0x1c] sm:$0xf] %vm429_vm2, %v553_v52  ;;  %v551_v57 = vpack.c.bf16 %v322_v53, %v322_v53 }
  0xe2   : > { %445 = vst.msk [vmem:[%s665_s25 + $0x3c] sm:$0xf] %vm429_vm2, %v561_v55  ;;  %v559_v58 = vpack.c.bf16 %v354_v56, %v354_v56 }
  0xe3   : > { %435 = vst.msk [vmem:[%s665_s25 + $0x14] sm:$0xf] %vm429_vm2, %v551_v57 }
  0xe4   : > { %443 = vst.msk [vmem:[%s665_s25 + $0x34] sm:$0xf] %vm429_vm2, %v559_v58 }
  0xe5 PF: > { %s13_s12 = sadd.s32 1, %s615_s12  }
  0xe6   : > { %p10_p4 = scmp.ge.s32.totalorder %s13_s12, 4  }
  0xe8   :  { %12 = sbr.rel (!%p10_p4) target bundleno = 1 (0x1), region = 62 }

// kernel: pet_forward.4
= control target key start
LH: loop header
LB: loop body
LE: loop exit
PB: predicated region body
PF: predicated region fallthrough
CT: control target
= control target key end

     0   :  { %s1736_s18 = smov 0   ;;  %s2205_s0 = inlined_call_operand.vmem [shape: bf16[256,32], index: 0, kind: input, shape index: {}]   ;;  %s2206_s1 = inlined_call_operand.vmem [shape: f32[8,32], index: 1, kind: input, shape index: {}]   ;;  %s2207_s2 = inlined_call_operand.vmem [shape: bf16[64,32], index: 2, kind: input, shape index: {}]   ;;  %s2208_s3 = inlined_call_operand.vmem [shape: bf16[64,128], index: 3, kind: input, shape index: {}]   ;;  %s2209_s4 = inlined_call_operand.vmem [shape: f32[2,128], index: 4, kind: input, shape index: {}]   ;;  %s2210_s5 = inlined_call_operand.vmem [shape: f32[256,128], index: 5, kind: output, shape index: {}]  }
   0x1 LB: > { %s1344_s19 = sadd.s32 4294967295, %s1704_s18   ;;  %p1348_p0 = scmp.ge.s32.totalorder %s1704_s18, 1  ;;  %s1704_s18 = sphi %s1736_s18, %s15_s18  }
   0x2   : > { %p188_p1 = scmp.lt.s32.totalorder %s1704_s18, 3 }
   0x4   : > { %p189_p2 = pnand %p1348_p0, %p188_p1 }
   0x5   : > { %s1349_s20 = sshll.u32 (!%p189_p2), %s1344_s19, 4 }
   0x6   : > { %192 = sbr.rel (%p189_p2) target bundleno = 1014 (0x3f6), region = 40  ;;  %p217_p3 = scmp.lt.s32.totalorder (!%p189_p2), %s1349_s20, 31 }
   0xb   : > { %s2212_s20 = smov (!%p217_p3, %s1349_s20), 31  ;;  %vm278_vm0 = vcmask 261120  }
   0xc   : > { %s1350_s21 = sshll.u32 %s2212_s20, 2  ;;  %s1352_s22 = sshll.u32 %s2212_s20, 3 }
   0xd   : > { %s1750_s24 = scalar_lea.vmem %s2205_s0, %s1350_s21  ;;  %s2120_s25 = scalar_lea.vmem %s2210_s5, %s1352_s22 }
   0xe   : > { %v1428_v0 = vld [vmem:[%s1750_s24] sm:$0xff]   ;;  %v1459_v1 = vld [vmem:[%s1750_s24 + $0x8] sm:$0xff]   ;;  %v1460_v2 = vld [vmem:[%s1750_s24 + $0x10] sm:$0xff]  }
   0xf   : > { %v1429_v3 = vunpack.c.l.bf16 %v1428_v0  ;;  %v1433_v4 = vunpack.c.l.bf16 %v1459_v1  ;;  %v1430_v5 = vunpack.c.h.bf16 %v1428_v0  ;;  %v1434_v6 = vunpack.c.h.bf16 %v1459_v1  ;;  %v1461_v13 = vld [vmem:[%s1750_s24 + $0x18] sm:$0xff]   ;;  %v1462_v22 = vld [vmem:[%s1750_s24 + $0x20] sm:$0xff]   ;;  %v1463_v29 = vld [vmem:[%s1750_s24 + $0x28] sm:$0xff]  }
  0x10   : > { %v1437_v7 = vunpack.c.l.bf16 %v1460_v2  ;;  %v1438_v8 = vunpack.c.h.bf16 %v1460_v2  ;;  %v1441_v16 = vunpack.c.l.bf16 %v1461_v13  ;;  %v1442_v17 = vunpack.c.h.bf16 %v1461_v13  ;;  %v1464_v36 = vld [vmem:[%s1750_s24 + $0x30] sm:$0xff]   ;;  %v1465_v43 = vld [vmem:[%s1750_s24 + $0x38] sm:$0xff]  }
  0x11   : > { %v1755_v9 = vadd.f32 %v1429_v3, %v1429_v3  ;;  %v1757_v10 = vadd.f32 %v1433_v4, %v1433_v4  ;;  %v1759_v11 = vadd.f32 %v1430_v5, %v1430_v5  ;;  %v1761_v12 = vadd.f32 %v1434_v6, %v1434_v6 }
  0x12   : > { %v1772_v20 = vadd.f32 %v1437_v7, %v1437_v7  ;;  %v1774_v21 = vadd.f32 %v1438_v8, %v1438_v8  ;;  %v1777_v23 = vadd.f32 %v1441_v16, %v1441_v16  ;;  %v1779_v24 = vadd.f32 %v1442_v17, %v1442_v17 }
  0x13   : > { %v279_v14 = vsel %vm278_vm0, %v1755_v9, 0.0  ;;  %v285_v15 = vsel %vm278_vm0, %v1757_v10, 0.0  ;;  %v282_v18 = vsel %vm278_vm0, %v1759_v11, 0.0  ;;  %v288_v19 = vsel %vm278_vm0, %v1761_v12, 0.0 }
  0x14   : > { %280 = vadd.xlane.f32.xlu0 %v279_v14  ;;  %286 = vadd.xlane.f32.xlu1 %v285_v15  ;;  %v291_v25 = vsel %vm278_vm0, %v1772_v20, 0.0  ;;  %v294_v26 = vsel %vm278_vm0, %v1774_v21, 0.0  ;;  %v1445_v27 = vunpack.c.l.bf16 %v1462_v22  ;;  %v1446_v28 = vunpack.c.h.bf16 %v1462_v22 }
  0x15   : > { %v297_v30 = vsel %vm278_vm0, %v1777_v23, 0.0  ;;  %v300_v31 = vsel %vm278_vm0, %v1779_v24, 0.0  ;;  %v1449_v34 = vunpack.c.l.bf16 %v1463_v29  ;;  %v1450_v35 = vunpack.c.h.bf16 %v1463_v29 }
  0x16   : > { %v1790_v32 = vadd.f32 %v1445_v27, %v1445_v27  ;;  %v1792_v33 = vadd.f32 %v1446_v28, %v1446_v28  ;;  %v1453_v37 = vunpack.c.l.bf16 %v1464_v36  ;;  %v1454_v38 = vunpack.c.h.bf16 %v1464_v36 }
  0x17   : > { %v1799_v41 = vadd.f32 %v1449_v34, %v1449_v34  ;;  %v1801_v42 = vadd.f32 %v1450_v35, %v1450_v35  ;;  %v1457_v44 = vunpack.c.l.bf16 %v1465_v43  ;;  %v1458_v45 = vunpack.c.h.bf16 %v1465_v43 }
  0x18   : > { %283 = vadd.xlane.f32.xlu0 %v282_v18  ;;  %289 = vadd.xlane.f32.xlu1 %v288_v19  ;;  %v303_v39 = vsel %vm278_vm0, %v1790_v32, 0.0  ;;  %v306_v40 = vsel %vm278_vm0, %v1792_v33, 0.0  ;;  %v1808_v48 = vadd.f32 %v1453_v37, %v1453_v37  ;;  %v1810_v49 = vadd.f32 %v1454_v38, %v1454_v38 }
  0x19   : > { %v309_v46 = vsel %vm278_vm0, %v1799_v41, 0.0  ;;  %v312_v47 = vsel %vm278_vm0, %v1801_v42, 0.0  ;;  %v1816_v52 = vadd.f32 %v1457_v44, %v1457_v44  ;;  %v1818_v53 = vadd.f32 %v1458_v45, %v1458_v45 }
  0x1a   : > { %v315_v50 = vsel %vm278_vm0, %v1808_v48, 0.0  ;;  %v318_v51 = vsel %vm278_vm0, %v1810_v49, 0.0 }
  0x1b   : > { %v321_v54 = vsel %vm278_vm0, %v1816_v52, 0.0  ;;  %v324_v55 = vsel %vm278_vm0, %v1818_v53, 0.0 }
  0x1c   : > { %292 = vadd.xlane.f32.xlu0 %v291_v25  ;;  %295 = vadd.xlane.f32.xlu1 %v294_v26 }
  0x20   : > { %298 = vadd.xlane.f32.xlu0 %v297_v30  ;;  %301 = vadd.xlane.f32.xlu1 %v300_v31 }
  0x24   : > { %304 = vadd.xlane.f32.xlu0 %v303_v39  ;;  %307 = vadd.xlane.f32.xlu1 %v306_v40 }
  0x28   : > { %310 = vadd.xlane.f32.xlu0 %v309_v46  ;;  %313 = vadd.xlane.f32.xlu1 %v312_v47 }
  0x2c   : > { %316 = vadd.xlane.f32.xlu0 %v315_v50  ;;  %319 = vadd.xlane.f32.xlu1 %v318_v51 }
  0x30   : > { %322 = vadd.xlane.f32.xlu0 %v321_v54  ;;  %325 = vadd.xlane.f32.xlu1 %v324_v55 }
  0x9d   : > { %v281_v56 = vpop.xlane.xlu0 %280  ;;  %v287_v57 = vpop.xlane.xlu1 %286 }
  0x9e   : > { %v328_v58 = vmul.f32 0.03125, %v281_v56  ;;  %v330_v59 = vmul.f32 0.03125, %v287_v57 }
  0xa0   : > { %v1825_v60 = vsub.f32 %v1755_v9, %v328_v58  ;;  %v1828_v61 = vsub.f32 %v1757_v10, %v330_v59 }
  0xa1   : > { %v284_v62 = vpop.xlane.xlu0 %283  ;;  %v290_v63 = vpop.xlane.xlu1 %289 }
  0xa2   : > { %v329_v0 = vmul.f32 0.03125, %v284_v62  ;;  %v331_v1 = vmul.f32 0.03125, %v290_v63  ;;  %v360_v2 = vmul.f32 %v1825_v60, %v1825_v60  ;;  %v362_v3 = vmul.f32 %v1828_v61, %v1828_v61 }
  0xa4   : > { %v1835_v4 = vsub.f32 %v1759_v11, %v329_v0  ;;  %v1838_v5 = vsub.f32 %v1761_v12, %v331_v1  ;;  %v376_v6 = vsel %vm278_vm0, %v360_v2, 0.0  ;;  %v382_v9 = vsel %vm278_vm0, %v362_v3, 0.0 }
  0xa5   : > { %377 = vadd.xlane.f32.xlu0 %v376_v6  ;;  %v293_v7 = vpop.xlane.xlu0 %292  ;;  %v296_v8 = vpop.xlane.xlu1 %295 }
  0xa6   : > { %v332_v10 = vmul.f32 0.03125, %v293_v7  ;;  %v333_v13 = vmul.f32 0.03125, %v296_v8  ;;  %v361_v14 = vmul.f32 %v1835_v4, %v1835_v4  ;;  %v363_v15 = vmul.f32 %v1838_v5, %v1838_v5 }
  0xa8   : > { %v1847_v11 = vsub.f32 %v1772_v20, %v332_v10  ;;  %v1850_v12 = vsub.f32 %v1774_v21, %v333_v13  ;;  %v379_v16 = vsel %vm278_vm0, %v361_v14, 0.0  ;;  %v385_v19 = vsel %vm278_vm0, %v363_v15, 0.0  ;;  %v1595_v15 = vld [vmem:[%s2207_s2 + $0x8] sm:$0xff]  }
  0xa9   : > { %383 = vadd.xlane.f32.xlu0 %v382_v9  ;;  %380 = vadd.xlane.f32.xlu1 %v379_v16  ;;  %v299_v17 = vpop.xlane.xlu0 %298  ;;  %v302_v18 = vpop.xlane.xlu1 %301  ;;  %v1596_v16 = vld [vmem:[%s2208_s3] sm:$0xff]  }
  0xaa   : > { %v334_v22 = vmul.f32 0.03125, %v299_v17  ;;  %v335_v25 = vmul.f32 0.03125, %v302_v18  ;;  %v364_v26 = vmul.f32 %v1847_v11, %v1847_v11  ;;  %v365_v20 = vmul.f32 %v1850_v12, %v1850_v12  ;;  %1526 = vmatprep.subr.bf16.mxu1 %v1595_v15  ;;  %v1597_v17 = vld [vmem:[%s2207_s2] sm:$0xff]   ;;  %v1935_v18 = vld [vmem:[%s2207_s2 + $0x18] sm:$0xff]  }
  0xab   : > { %1527 = vmatpush3.bf16.msra.mxu1 %v1595_v15 }
  0xac   : > { %v1859_v27 = vsub.f32 %v1777_v23, %v334_v22  ;;  %v1862_v21 = vsub.f32 %v1779_v24, %v335_v25  ;;  %v388_v28 = vsel %vm278_vm0, %v364_v26, 0.0  ;;  %v391_v31 = vsel %vm278_vm0, %v365_v20, 0.0  ;;  %1528 = vmatprep.subr.bf16.mxu1 %v1597_v17 }
  0xad   : > { %386 = vadd.xlane.f32.xlu1 %v385_v19  ;;  %389 = vadd.xlane.f32.xlu0 %v388_v28  ;;  %v305_v29 = vpop.xlane.xlu0 %304  ;;  %v308_v30 = vpop.xlane.xlu1 %307 }
  0xae   : > { %v336_v34 = vmul.f32 0.03125, %v305_v29  ;;  %v337_v35 = vmul.f32 0.03125, %v308_v30  ;;  %v366_v36 = vmul.f32 %v1859_v27, %v1859_v27  ;;  %v367_v23 = vmul.f32 %v1862_v21, %v1862_v21 }
  0xaf   : > { %1529 = vmatpush3.bf16.msra.mxu1 %v1597_v17  ;;  %v488_v30 = vlaneseq }
  0xb0   : > { %v1871_v37 = vsub.f32 %v1790_v32, %v336_v34  ;;  %v1874_v24 = vsub.f32 %v1792_v33, %v337_v35  ;;  %v394_v38 = vsel %vm278_vm0, %v366_v36, 0.0  ;;  %v397_v43 = vsel %vm278_vm0, %v367_v23, 0.0 }
  0xb1   : > { %392 = vadd.xlane.f32.xlu1 %v391_v31  ;;  %395 = vadd.xlane.f32.xlu0 %v394_v38  ;;  %v311_v39 = vpop.xlane.xlu0 %310  ;;  %v314_v40 = vpop.xlane.xlu1 %313 }
  0xb2   : > { %v338_v44 = vmul.f32 0.03125, %v311_v39  ;;  %v339_v45 = vmul.f32 0.03125, %v314_v40  ;;  %v368_v46 = vmul.f32 %v1871_v37, %v1871_v37  ;;  %v369_v32 = vmul.f32 %v1874_v24, %v1874_v24 }
  0xb3   : > { %v1939_v39 = vshrl.u32 %v488_v30, 7 }
  0xb4   : > { %v1883_v47 = vsub.f32 %v1799_v41, %v338_v44  ;;  %v1886_v33 = vsub.f32 %v1801_v42, %v339_v45  ;;  %v400_v50 = vsel %vm278_vm0, %v368_v46, 0.0  ;;  %v403_v55 = vsel %vm278_vm0, %v369_v32, 0.0 }
  0xb5   : > { %398 = vadd.xlane.f32.xlu1 %v397_v43  ;;  %401 = vadd.xlane.f32.xlu0 %v400_v50  ;;  %v317_v51 = vpop.xlane.xlu0 %316  ;;  %v320_v54 = vpop.xlane.xlu1 %319  ;;  %v490_v50 = vsub.s32 1, %v1939_v39 }
  0xb6   : > { %v340_v56 = vmul.f32 0.03125, %v317_v51  ;;  %v341_v57 = vmul.f32 0.03125, %v320_v54  ;;  %v370_v58 = vmul.f32 %v1883_v47, %v1883_v47  ;;  %v371_v41 = vmul.f32 %v1886_v33, %v1886_v33 }
  0xb8   : > { %v1895_v59 = vsub.f32 %v1808_v48, %v340_v56  ;;  %v1898_v42 = vsub.f32 %v1810_v49, %v341_v57  ;;  %v406_v62 = vsel %vm278_vm0, %v370_v58, 0.0  ;;  %v409_v1 = vsel %vm278_vm0, %v371_v41, 0.0 }
  0xb9   : > { %404 = vadd.xlane.f32.xlu1 %v403_v55  ;;  %407 = vadd.xlane.f32.xlu0 %v406_v62  ;;  %v323_v63 = vpop.xlane.xlu0 %322  ;;  %v326_v0 = vpop.xlane.xlu1 %325  ;;  %v1945_v55 = vld [vmem:[%s2206_s1] sm:$0xff] }
  0xba   : > { %v342_v2 = vmul.f32 0.03125, %v323_v63  ;;  %v343_v3 = vmul.f32 0.03125, %v326_v0  ;;  %v372_v6 = vmul.f32 %v1895_v59, %v1895_v59  ;;  %v373_v48 = vmul.f32 %v1898_v42, %v1898_v42 }
  0xbb   : > { %v1950_v63 = vrot.slane %v1945_v55, %v490_v50  ;;  %v510_v0 = vsub.s32 2, %v1939_v39 }
  0xbc   : > { %v1907_v7 = vsub.f32 %v1816_v52, %v342_v2  ;;  %v1910_v49 = vsub.f32 %v1818_v53, %v343_v3  ;;  %v412_v8 = vsel %vm278_vm0, %v372_v6, 0.0  ;;  %v415_v9 = vsel %vm278_vm0, %v373_v48, 0.0  ;;  %v1594_v53 = vld [vmem:[%s2208_s3 + $0x8] sm:$0xff]  }
  0xbd   : > { %410 = vadd.xlane.f32.xlu1 %v409_v1  ;;  %413 = vadd.xlane.f32.xlu0 %v412_v8 }
  0xbe   : > { %v374_v10 = vmul.f32 %v1907_v7, %v1907_v7  ;;  %v375_v13 = vmul.f32 %v1910_v49, %v1910_v49  ;;  %1506 = vmatprep.subr.bf16.mxu0 %v1594_v53 }
  0xbf   : > { %1507 = vmatpush3.bf16.msra.mxu0 %v1594_v53 }
  0xc0   : > { %v418_v14 = vsel %vm278_vm0, %v374_v10, 0.0  ;;  %v421_v52 = vsel %vm278_vm0, %v375_v13, 0.0  ;;  %1508 = vmatprep.subr.bf16.mxu0 %v1596_v16 }
  0xc1   : > { %416 = vadd.xlane.f32.xlu1 %v415_v9  ;;  %419 = vadd.xlane.f32.xlu0 %v418_v14  ;;  %v1956_v14 = vrot.slane %v1945_v55, %v510_v0 }
  0xc3   : > { %1509 = vmatpush3.bf16.msra.mxu0 %v1596_v16 }
  0xc4   : > { %1546 = vmatprep.subr.bf16.mxu0 %v1935_v18 }
  0xc5   : > { %422 = vadd.xlane.f32.xlu1 %v421_v52 }
 0x12e   : > { %v378_v19 = vpop.xlane.xlu0 %377 }
 0x12f   : > { %v424_v22 = vmul.f32 0.03125, %v378_v19 }
 0x131   : > { %v440_v25 = vadd.f32 1e-05, %v424_v22 }
 0x132   : > { %v381_v26 = vpop.xlane.xlu1 %380  ;;  %v384_v20 = vpop.xlane.xlu0 %383 }
 0x133   : > { %1602 = vrsqrt.f32 %v440_v25  ;;  %v425_v28 = vmul.f32 0.03125, %v381_v26  ;;  %v426_v29 = vmul.f32 0.03125, %v384_v20 }
 0x135   : > { %v441_v31 = vadd.f32 1e-05, %v425_v28  ;;  %v442_v34 = vadd.f32 1e-05, %v426_v29 }
 0x136   : > { %v387_v35 = vpop.xlane.xlu1 %386  ;;  %v390_v36 = vpop.xlane.xlu0 %389 }
 0x137   : > { %1604 = vrsqrt.f32 %v441_v31  ;;  %v427_v23 = vmul.f32 0.03125, %v387_v35  ;;  %v428_v38 = vmul.f32 0.03125, %v390_v36 }
 0x138   : > { %1606 = vrsqrt.f32 %v442_v34 }
 0x139   : > { %v443_v40 = vadd.f32 1e-05, %v427_v23  ;;  %v444_v43 = vadd.f32 1e-05, %v428_v38 }
 0x13a   : > { %v393_v44 = vpop.xlane.xlu1 %392  ;;  %v396_v45 = vpop.xlane.xlu0 %395 }
 0x13b   : > { %1608 = vrsqrt.f32 %v443_v40  ;;  %v429_v46 = vmul.f32 0.03125, %v393_v44  ;;  %v430_v32 = vmul.f32 0.03125, %v396_v45 }
 0x13c   : > { %1610 = vrsqrt.f32 %v444_v43 }
 0x13d   : > { %v445_v51 = vadd.f32 1e-05, %v429_v46  ;;  %v446_v54 = vadd.f32 1e-05, %v430_v32 }
 0x13e   : > { %v399_v56 = vpop.xlane.xlu1 %398  ;;  %v402_v57 = vpop.xlane.xlu0 %401 }
 0x13f   : > { %1612 = vrsqrt.f32 %v445_v51  ;;  %v431_v58 = vmul.f32 0.03125, %v399_v56  ;;  %v432_v41 = vmul.f32 0.03125, %v402_v57 }
 0x140   : > { %v1603_v62 = vpop.eup %1602  ;;  %1614 = vrsqrt.f32 %v446_v54 }
 0x141   : > { %v447_v1 = vadd.f32 1e-05, %v431_v58  ;;  %v448_v2 = vadd.f32 1e-05, %v432_v41  ;;  %v472_v3 = vmul.f32 %v1603_v62, %v1825_v60 }
 0x142   : > { %v405_v6 = vpop.xlane.xlu1 %404  ;;  %v408_v48 = vpop.xlane.xlu0 %407 }
 0x143   : > { %1616 = vrsqrt.f32 %v447_v1  ;;  %v433_v8 = vmul.f32 0.03125, %v405_v6  ;;  %v434_v9 = vmul.f32 0.03125, %v408_v48  ;;  %v492_v13 = vmul.f32 %v1950_v63, %v472_v3 }
 0x144   : > { %v1605_v10 = vpop.eup %1604  ;;  %1618 = vrsqrt.f32 %v448_v2 }
 0x145   : > { %v1607_v52 = vpop.eup %1606  ;;  %v449_v53 = vadd.f32 1e-05, %v433_v8  ;;  %v450_v15 = vadd.f32 1e-05, %v434_v9  ;;  %v473_v16 = vmul.f32 %v1605_v10, %v1835_v4  ;;  %v512_v28 = vadd.f32 %v1956_v14, %v492_v13 }
 0x146   : > { %v411_v17 = vpop.xlane.xlu1 %410  ;;  %v414_v19 = vpop.xlane.xlu0 %413  ;;  %v474_v60 = vmul.f32 %v1607_v52, %v1828_v61 }
 0x147   : > { %1620 = vrsqrt.f32 %v449_v53  ;;  %v435_v22 = vmul.f32 0.03125, %v411_v17  ;;  %v436_v25 = vmul.f32 0.03125, %v414_v19  ;;  %v493_v26 = vmul.f32 %v1950_v63, %v473_v16 }
 0x148   : > { %v1609_v20 = vpop.eup %1608  ;;  %1622 = vrsqrt.f32 %v450_v15  ;;  %v494_v61 = vmul.f32 %v1950_v63, %v474_v60 }
 0x149   : > { %v1611_v29 = vpop.eup %1610  ;;  %v451_v31 = vadd.f32 1e-05, %v435_v22  ;;  %v452_v34 = vadd.f32 1e-05, %v436_v25  ;;  %v513_v35 = vadd.f32 %v1956_v14, %v493_v26  ;;  %v475_v4 = vmul.f32 %v1609_v20, %v1838_v5 }
 0x14a   : > { %v417_v36 = vpop.xlane.xlu1 %416  ;;  %v420_v23 = vpop.xlane.xlu0 %419  ;;  %v476_v38 = vmul.f32 %v1611_v29, %v1847_v11  ;;  %v514_v57 = vadd.f32 %v1956_v14, %v494_v61 }
 0x14b   : > { %1624 = vrsqrt.f32 %v451_v31  ;;  %v437_v40 = vmul.f32 0.03125, %v417_v36  ;;  %v438_v43 = vmul.f32 0.03125, %v420_v23  ;;  %v528_v44 = vpack.c.bf16 %v513_v35, %v512_v28 }
 0x14c   : > { %v1613_v45 = vpop.eup %1612  ;;  %1626 = vrsqrt.f32 %v452_v34  ;;  %v495_v46 = vmul.f32 %v1950_v63, %v475_v4  ;;  %v496_v56 = vmul.f32 %v1950_v63, %v476_v38 }
 0x14d   : > { %v1615_v32 = vpop.eup %1614  ;;  %v453_v51 = vadd.f32 1e-05, %v437_v40  ;;  %v454_v54 = vadd.f32 1e-05, %v438_v43  ;;  %1510 = vmatprep.mubr.msk.bf16.mxu0 %vm278_vm0, %v528_v44  ;;  %1530 = vmatprep.mubr.msk.bf16.mxu1 %vm278_vm0, %v528_v44  ;;  %v477_v5 = vmul.f32 %v1613_v45, %v1850_v12  ;;  %v1599_v12 = vld [vmem:[%s2207_s2 + $0x10] sm:$0xff]  }
 0x14e   : > { %v423_v11 = vpop.xlane.xlu1 %422  ;;  %v515_v58 = vadd.f32 %v1956_v14, %v495_v46  ;;  %v478_v41 = vmul.f32 %v1615_v32, %v1859_v27  ;;  %v516_v8 = vadd.f32 %v1956_v14, %v496_v56 }
 0x14f   : > { %1628 = vrsqrt.f32 %v453_v51  ;;  %v439_v62 = vmul.f32 0.03125, %v423_v11  ;;  %v497_v0 = vmul.f32 %v1950_v63, %v477_v5  ;;  %v692_v5 = vsub.s32 3, %v1939_v39 }
 0x150   : > { %v1617_v1 = vpop.eup %1616  ;;  %1630 = vrsqrt.f32 %v454_v54  ;;  %v529_v2 = vpack.c.bf16 %v515_v58, %v514_v57  ;;  %v498_v3 = vmul.f32 %v1950_v63, %v478_v41 }
 0x151   : > { %v1619_v6 = vpop.eup %1618  ;;  %v455_v48 = vadd.f32 1e-05, %v439_v62  ;;  %v517_v9 = vadd.f32 %v1956_v14, %v497_v0  ;;  %v479_v27 = vmul.f32 %v1617_v1, %v1862_v21  ;;  %v693_v56 = vrot.slane %v1945_v55, %v692_v5 }
 0x152   : > { %1511 = vmatmul.mubr.msk.bf16.vlgmr.msra.gmra.mxu0 %vm278_vm0, %v529_v2  ;;  %1531 = vmatmul.mubr.msk.bf16.vlgmr.msra.gmra.mxu1 %vm278_vm0, %v529_v2  ;;  %v480_v10 = vmul.f32 %v1619_v6, %v1871_v37  ;;  %v518_v15 = vadd.f32 %v1956_v14, %v498_v3 }
 0x153   : > { %1632 = vrsqrt.f32 %v455_v48  ;;  %v530_v13 = vpack.c.bf16 %v517_v9, %v516_v8  ;;  %v499_v52 = vmul.f32 %v1950_v63, %v479_v27  ;;  %1547 = vmatpush3.bf16.msra.mxu0 %v1935_v18 }
 0x154   : > { %v1621_v53 = vpop.eup %1620  ;;  %1548 = vmatprep.subr.bf16.mxu0 %v1599_v12  ;;  %v500_v37 = vmul.f32 %v1950_v63, %v480_v10 }
 0x155   : > { %v1623_v16 = vpop.eup %1622  ;;  %1514 = vmatprep.mubr.msk.bf16.mxu0 %vm278_vm0, %v530_v13  ;;  %1534 = vmatprep.mubr.msk.bf16.mxu1 %vm278_vm0, %v530_v13  ;;  %v519_v21 = vadd.f32 %v1956_v14, %v499_v52  ;;  %v481_v17 = vmul.f32 %v1621_v53, %v1874_v24 }
 0x156   : > { %v482_v19 = vmul.f32 %v1623_v16, %v1883_v47  ;;  %v520_v20 = vadd.f32 %v1956_v14, %v500_v37 }
 0x157   : > { %v531_v60 = vpack.c.bf16 %v519_v21, %v518_v15  ;;  %v501_v18 = vmul.f32 %v1950_v63, %v481_v17  ;;  %1549 = vmatpush3.bf16.msra.mxu0 %v1599_v12 }
 0x158   : > { %v1625_v22 = vpop.eup %1624  ;;  %v502_v25 = vmul.f32 %v1950_v63, %v482_v19 }
 0x159   : > { %v1627_v26 = vpop.eup %1626  ;;  %v521_v28 = vadd.f32 %v1956_v14, %v501_v18  ;;  %v483_v29 = vmul.f32 %v1625_v22, %v1886_v33 }
 0x15a   : > { %1515 = vmatmul.mubr.msk.bf16.gmra.mxu0 %vm278_vm0, %v531_v60  ;;  %1535 = vmatmul.mubr.msk.bf16.gmra.mxu1 %vm278_vm0, %v531_v60  ;;  %v484_v24 = vmul.f32 %v1627_v26, %v1895_v59  ;;  %v522_v35 = vadd.f32 %v1956_v14, %v502_v25 }
 0x15b   : > { %v532_v47 = vpack.c.bf16 %v521_v28, %v520_v20  ;;  %v503_v31 = vmul.f32 %v1950_v63, %v483_v29 }
 0x15c   : > { %v1629_v34 = vpop.eup %1628  ;;  %v504_v23 = vmul.f32 %v1950_v63, %v484_v24 }
 0x15d   : > { %v1631_v4 = vpop.eup %1630  ;;  %1518 = vmatprep.mubr.msk.bf16.mxu0 %vm278_vm0, %v532_v47  ;;  %1538 = vmatprep.mubr.msk.bf16.mxu1 %vm278_vm0, %v532_v47  ;;  %v523_v36 = vadd.f32 %v1956_v14, %v503_v31  ;;  %v485_v33 = vmul.f32 %v1629_v34, %v1898_v42 }
 0x15e   : > { %v486_v61 = vmul.f32 %v1631_v4, %v1907_v7  ;;  %v524_v43 = vadd.f32 %v1956_v14, %v504_v23 }
 0x15f   : > { %v533_v59 = vpack.c.bf16 %v523_v36, %v522_v35  ;;  %v505_v38 = vmul.f32 %v1950_v63, %v485_v33 }
 0x160   : > { %v1633_v40 = vpop.eup %1632  ;;  %v506_v46 = vmul.f32 %v1950_v63, %v486_v61 }
 0x161   : > { %v525_v44 = vadd.f32 %v1956_v14, %v505_v38  ;;  %v487_v45 = vmul.f32 %v1633_v40, %v1910_v49  ;;  %v1600_v49 = vld [vmem:[%s2208_s3 + $0x18] sm:$0xff]  }
 0x162   : > { %1519 = vmatmul.mubr.msk.bf16.gmra.mxu0 %vm278_vm0, %v533_v59  ;;  %1539 = vmatmul.mubr.msk.bf16.gmra.mxu1 %vm278_vm0, %v533_v59  ;;  %v526_v7 = vadd.f32 %v1956_v14, %v506_v46 }
 0x163   : > { %v534_v42 = vpack.c.bf16 %v525_v44, %v524_v43  ;;  %v507_v32 = vmul.f32 %v1950_v63, %v487_v45  ;;  %v1601_v63 = vld [vmem:[%s2208_s3 + $0x10] sm:$0xff]   ;;  %1566 = vmatprep.subr.bf16.mxu1 %v1600_v49 }
 0x164   : > { %1567 = vmatpush3.bf16.msra.mxu1 %v1600_v49 }
 0x165   : > { %1522 = vmatprep.mubr.msk.bf16.mxu0 %vm278_vm0, %v534_v42  ;;  %1542 = vmatprep.mubr.msk.bf16.mxu1 %vm278_vm0, %v534_v42  ;;  %v527_v51 = vadd.f32 %v1956_v14, %v507_v32 }
 0x166   : > { %1568 = vmatprep.subr.bf16.mxu1 %v1601_v63 }
 0x167   : > { %v535_v54 = vpack.c.bf16 %v527_v51, %v526_v7 }
 0x168   : > { %1569 = vmatpush3.bf16.msra.mxu1 %v1601_v63 }
 0x16a   : > { %1523 = vmatmul.mubr.msk.bf16.gmra.mxu0 %vm278_vm0, %v535_v54  ;;  %1543 = vmatmul.mubr.msk.bf16.gmra.mxu1 %vm278_vm0, %v535_v54 }
 0x212   : > { %v1532_v14 = vpop.f32.mrf.mxu1  ;;  %v2040_v49 = vpop.f32.mrf.mxu0 }
 0x213   : > { %v749_v62 = vadd.f32 %v1532_v14, %v693_v56 }
 0x214   : > { %v740_v11 = vpop.f32.mrf.mxu1  ;;  %v2042_v63 = vpop.f32.mrf.mxu0 }
 0x215   : > { %v741_v58 = vadd.f32 %v740_v11, %v693_v56  ;;  %v805_v48 = vmax.f32 %v749_v62, 0.0 }
 0x216   : > { %v1533_v57 = vpop.f32.mrf.mxu1  ;;  %v2044_v5 = vpop.f32.mrf.mxu0 }
 0x217   : > { %v752_v41 = vadd.f32 %v1533_v57, %v693_v56  ;;  %v803_v12 = vmax.f32 %v741_v58, 0.0 }
 0x218   : > { %v743_v0 = vpop.f32.mrf.mxu1  ;;  %v2046_v14 = vpop.f32.mrf.mxu0 }
 0x219   : > { %v744_v1 = vadd.f32 %v743_v0, %v693_v56  ;;  %v806_v2 = vmax.f32 %v752_v41, 0.0 }
 0x21a   : > { %v1536_v3 = vpop.f32.mrf.mxu1  ;;  %v2048_v11 = vpop.f32.mrf.mxu0 }
 0x21b   : > { %v804_v6 = vmax.f32 %v744_v1, 0.0  ;;  %v820_v27 = vpack.c.bf16 %v806_v2, %v805_v48  ;;  %v765_v53 = vadd.f32 %v1536_v3, %v693_v56  ;;  %v829_v48 = vsub.s32 4, %v1939_v39 }
 0x21c   : > { %v756_v8 = vpop.f32.mrf.mxu1 }
 0x21d   : > { %v819_v9 = vpack.c.bf16 %v804_v6, %v803_v12  ;;  %v757_v13 = vadd.f32 %v756_v8, %v693_v56  ;;  %v809_v60 = vmax.f32 %v765_v53, 0.0 }
 0x21e   : > { %v1537_v10 = vpop.f32.mrf.mxu1 }
 0x21f   : > { %v768_v52 = vadd.f32 %v1537_v10, %v693_v56  ;;  %1550 = vmatprep.mubr.msk.bf16.mxu0 %vm278_vm0, %v819_v9  ;;  %v807_v37 = vmax.f32 %v757_v13, 0.0  ;;  %v830_v9 = vrot.slane %v1945_v55, %v829_v48 }
 0x220   : > { %v759_v15 = vpop.f32.mrf.mxu1  ;;  %1551 = vmatmul.mubr.msk.bf16.vlgmr.msra.gmra.mxu0 %vm278_vm0, %v820_v27 }
 0x221   : > { %v760_v16 = vadd.f32 %v759_v15, %v693_v56  ;;  %v810_v21 = vmax.f32 %v768_v52, 0.0 }
 0x222   : > { %v1540_v17 = vpop.f32.mrf.mxu1 }
 0x223   : > { %v808_v19 = vmax.f32 %v760_v16, 0.0  ;;  %v822_v25 = vpack.c.bf16 %v810_v21, %v809_v60  ;;  %v781_v29 = vadd.f32 %v1540_v17, %v693_v56 }
 0x224   : > { %v772_v18 = vpop.f32.mrf.mxu1 }
 0x225   : > { %v821_v22 = vpack.c.bf16 %v808_v19, %v807_v37  ;;  %v773_v20 = vadd.f32 %v772_v18, %v693_v56  ;;  %v813_v36 = vmax.f32 %v781_v29, 0.0 }
 0x226   : > { %v1541_v26 = vpop.f32.mrf.mxu1 }
 0x227   : > { %v784_v28 = vadd.f32 %v1541_v26, %v693_v56  ;;  %1554 = vmatprep.mubr.msk.bf16.mxu0 %vm278_vm0, %v821_v22  ;;  %v811_v35 = vmax.f32 %v773_v20, 0.0 }
 0x228   : > { %v775_v24 = vpop.f32.mrf.mxu1  ;;  %1555 = vmatmul.mubr.msk.bf16.gmra.mxu0 %vm278_vm0, %v822_v25 }
 0x229   : > { %v776_v47 = vadd.f32 %v775_v24, %v693_v56  ;;  %v814_v31 = vmax.f32 %v784_v28, 0.0 }
 0x22a   : > { %v1544_v34 = vpop.f32.mrf.mxu1 }
 0x22b   : > { %v812_v4 = vmax.f32 %v776_v47, 0.0  ;;  %v824_v61 = vpack.c.bf16 %v814_v31, %v813_v36  ;;  %v797_v43 = vadd.f32 %v1544_v34, %v693_v56 }
 0x22c   : > { %v788_v33 = vpop.f32.mrf.mxu1 }
 0x22d   : > { %v823_v23 = vpack.c.bf16 %v812_v4, %v811_v35  ;;  %v789_v38 = vadd.f32 %v788_v33, %v693_v56  ;;  %v817_v7 = vmax.f32 %v797_v43, 0.0 }
 0x22e   : > { %v1545_v59 = vpop.f32.mrf.mxu1 }
 0x22f   : > { %v800_v40 = vadd.f32 %v1545_v59, %v693_v56  ;;  %1558 = vmatprep.mubr.msk.bf16.mxu0 %vm278_vm0, %v823_v23  ;;  %v815_v42 = vmax.f32 %v789_v38, 0.0 }
 0x230   : > { %v791_v44 = vpop.f32.mrf.mxu1  ;;  %1559 = vmatmul.mubr.msk.bf16.gmra.mxu0 %vm278_vm0, %v824_v61 }
 0x231   : > { %v792_v45 = vadd.f32 %v791_v44, %v693_v56  ;;  %v818_v46 = vmax.f32 %v800_v40, 0.0  ;;  %v2050_v56 = vpop.f32.mrf.mxu0 }
 0x233   : > { %v816_v32 = vmax.f32 %v792_v45, 0.0  ;;  %v826_v54 = vpack.c.bf16 %v818_v46, %v817_v7  ;;  %v2052_v57 = vpop.f32.mrf.mxu0 }
 0x235   : > { %v825_v51 = vpack.c.bf16 %v816_v32, %v815_v42  ;;  %v2054_v58 = vpop.f32.mrf.mxu0 }
 0x237   : > { %1562 = vmatprep.mubr.msk.bf16.mxu0 %vm278_vm0, %v825_v51  ;;  %v2056_v41 = vpop.f32.mrf.mxu0 }
 0x238   : > { %1563 = vmatmul.mubr.msk.bf16.gmra.mxu0 %vm278_vm0, %v826_v54 }
 0x239   : > { %v2058_v62 = vpop.f32.mrf.mxu0 }
 0x23b   : > { %v2060_v0 = vpop.f32.mrf.mxu0 }
 0x23d   : > { %v2062_v1 = vpop.f32.mrf.mxu0 }
 0x23f   : > { %v2064_v2 = vpop.f32.mrf.mxu0 }
 0x241   : > { %v2066_v3 = vpop.f32.mrf.mxu0 }
 0x243   : > { %v2068_v12 = vpop.f32.mrf.mxu0 }
 0x245   : > { %v2070_v6 = vpop.f32.mrf.mxu0 }
 0x2e0   : > { %v1552_v8 = vpop.f32.mrf.mxu0 }
 0x2e1   : > { %v910_v53 = vadd.f32 %v1552_v8, %v830_v9 }
 0x2e2   : > { %v901_v27 = vpop.f32.mrf.mxu0 }
 0x2e3   : > { %v902_v13 = vadd.f32 %v901_v27, %v830_v9  ;;  %v966_v60 = vmax.f32 %v910_v53, 0.0 }
 0x2e4   : > { %v1553_v10 = vpop.f32.mrf.mxu0 }
 0x2e5   : > { %v913_v52 = vadd.f32 %v1553_v10, %v830_v9  ;;  %v964_v37 = vmax.f32 %v902_v13, 0.0 }
 0x2e6   : > { %v904_v15 = vpop.f32.mrf.mxu0 }
 0x2e7   : > { %v905_v16 = vadd.f32 %v904_v15, %v830_v9  ;;  %v967_v21 = vmax.f32 %v913_v52, 0.0 }
 0x2e8   : > { %v1556_v17 = vpop.f32.mrf.mxu0 }
 0x2e9   : > { %v965_v19 = vmax.f32 %v905_v16, 0.0  ;;  %v981_v25 = vpack.c.bf16 %v967_v21, %v966_v60  ;;  %v926_v55 = vadd.f32 %v1556_v17, %v830_v9  ;;  %v2085_v60 = vld [vmem:[%s2209_s4] sm:$0x3] }
 0x2ea   : > { %v917_v18 = vpop.f32.mrf.mxu0 }
 0x2eb   : > { %v980_v22 = vpack.c.bf16 %v965_v19, %v964_v37  ;;  %v918_v20 = vadd.f32 %v917_v18, %v830_v9  ;;  %v970_v4 = vmax.f32 %v926_v55, 0.0  ;;  %v2090_v18 = vrot.slane %v2085_v60, %v490_v50 }
 0x2ec   : > { %v1557_v26 = vpop.f32.mrf.mxu0 }
 0x2ed   : > { %v929_v28 = vadd.f32 %v1557_v26, %v830_v9  ;;  %1570 = vmatprep.mubr.msk.bf16.mxu1 %vm278_vm0, %v980_v22  ;;  %v968_v34 = vmax.f32 %v918_v20, 0.0 }
 0x2ee   : > { %v920_v29 = vpop.f32.mrf.mxu0  ;;  %1571 = vmatmul.mubr.msk.bf16.vlgmr.msra.gmra.mxu1 %vm278_vm0, %v981_v25 }
 0x2ef   : > { %v921_v24 = vadd.f32 %v920_v29, %v830_v9  ;;  %v971_v47 = vmax.f32 %v929_v28, 0.0 }
 0x2f0   : > { %v1560_v31 = vpop.f32.mrf.mxu0 }
 0x2f1   : > { %v969_v35 = vmax.f32 %v921_v24, 0.0  ;;  %v983_v23 = vpack.c.bf16 %v971_v47, %v970_v4  ;;  %v942_v40 = vadd.f32 %v1560_v31, %v830_v9 }
 0x2f2   : > { %v933_v36 = vpop.f32.mrf.mxu0 }
 0x2f3   : > { %v982_v33 = vpack.c.bf16 %v969_v35, %v968_v34  ;;  %v934_v59 = vadd.f32 %v933_v36, %v830_v9  ;;  %v974_v7 = vmax.f32 %v942_v40, 0.0 }
 0x2f4   : > { %v1561_v61 = vpop.f32.mrf.mxu0 }
 0x2f5   : > { %v945_v38 = vadd.f32 %v1561_v61, %v830_v9  ;;  %1574 = vmatprep.mubr.msk.bf16.mxu1 %vm278_vm0, %v982_v33  ;;  %v972_v42 = vmax.f32 %v934_v59, 0.0 }
 0x2f6   : > { %v936_v43 = vpop.f32.mrf.mxu0  ;;  %1575 = vmatmul.mubr.msk.bf16.gmra.mxu1 %vm278_vm0, %v983_v23 }
 0x2f7   : > { %v937_v44 = vadd.f32 %v936_v43, %v830_v9  ;;  %v975_v45 = vmax.f32 %v945_v38, 0.0 }
 0x2f8   : > { %v1564_v46 = vpop.f32.mrf.mxu0 }
 0x2f9   : > { %v973_v32 = vmax.f32 %v937_v44, 0.0  ;;  %v985_v48 = vpack.c.bf16 %v975_v45, %v974_v7  ;;  %v958_v13 = vadd.f32 %v1564_v46, %v830_v9 }
 0x2fa   : > { %v949_v51 = vpop.f32.mrf.mxu0 }
 0x2fb   : > { %v984_v54 = vpack.c.bf16 %v973_v32, %v972_v42  ;;  %v950_v27 = vadd.f32 %v949_v51, %v830_v9  ;;  %v978_v17 = vmax.f32 %v958_v13, 0.0 }
 0x2fc   : > { %v1565_v8 = vpop.f32.mrf.mxu0 }
 0x2fd   : > { %v961_v10 = vadd.f32 %v1565_v8, %v830_v9  ;;  %1578 = vmatprep.mubr.msk.bf16.mxu1 %vm278_vm0, %v984_v54  ;;  %v976_v16 = vmax.f32 %v950_v27, 0.0 }
 0x2fe   : > { %v952_v52 = vpop.f32.mrf.mxu0  ;;  %1579 = vmatmul.mubr.msk.bf16.gmra.mxu1 %vm278_vm0, %v985_v48 }
 0x2ff   : > { %v953_v53 = vadd.f32 %v952_v52, %v830_v9  ;;  %v979_v15 = vmax.f32 %v961_v10, 0.0 }
 0x301   : > { %v977_v21 = vmax.f32 %v953_v53, 0.0  ;;  %v987_v19 = vpack.c.bf16 %v979_v15, %v978_v17 }
 0x303   : > { %v986_v37 = vpack.c.bf16 %v977_v21, %v976_v16 }
 0x305   : > { %1582 = vmatprep.mubr.msk.bf16.mxu1 %vm278_vm0, %v986_v37 }
 0x306   : > { %1583 = vmatmul.mubr.msk.bf16.gmra.mxu1 %vm278_vm0, %v987_v19 }
 0x3ae   : > { %v1572_v9 = vpop.f32.mrf.mxu1 }
 0x3af   : > { %v1071_v22 = vadd.f32 %v1572_v9, %v2090_v18 }
 0x3b0   : > { %v1062_v25 = vpop.f32.mrf.mxu1 }
 0x3b1   : > { %v1395_v26 = vmul.f32 -1.442695, %v1071_v22  ;;  %v1063_v20 = vadd.f32 %v1062_v25, %v2090_v18 }
 0x3b2   : > { %v1573_v28 = vpop.f32.mrf.mxu1 }
 0x3b3   : > { %1634 = vpow2.f32 %v1395_v26  ;;  %v1393_v55 = vmul.f32 -1.442695, %v1063_v20  ;;  %v1074_v29 = vadd.f32 %v1573_v28, %v2090_v18 }
 0x3b4   : > { %v1065_v24 = vpop.f32.mrf.mxu1 }
 0x3b5   : > { %1636 = vpow2.f32 %v1393_v55  ;;  %v1396_v47 = vmul.f32 -1.442695, %v1074_v29  ;;  %v1066_v31 = vadd.f32 %v1065_v24, %v2090_v18  ;;  %v555_v24 = vsub.s32 0, %v1939_v39 }
 0x3b6   : > { %v1576_v34 = vpop.f32.mrf.mxu1 }
 0x3b7   : > { %1638 = vpow2.f32 %v1396_v47  ;;  %v1394_v50 = vmul.f32 -1.442695, %v1066_v31  ;;  %v1087_v35 = vadd.f32 %v1576_v34, %v2090_v18  ;;  %v2113_v39 = vrot.slane %v2085_v60, %v555_v24 }
 0x3b8   : > { %v1078_v4 = vpop.f32.mrf.mxu1 }
 0x3b9   : > { %1640 = vpow2.f32 %v1394_v50  ;;  %v1399_v36 = vmul.f32 -1.442695, %v1087_v35  ;;  %v1079_v33 = vadd.f32 %v1078_v4, %v2090_v18  ;;  %v636_v60 = vadd.f32 %v2040_v49, %v2113_v39 }
 0x3ba   : > { %v1577_v23 = vpop.f32.mrf.mxu1 }
 0x3bb   : > { %1642 = vpow2.f32 %v1399_v36  ;;  %v1397_v61 = vmul.f32 -1.442695, %v1079_v33  ;;  %v1090_v59 = vadd.f32 %v1577_v23, %v2090_v18 }
 0x3bc   : > { %v1081_v38 = vpop.f32.mrf.mxu1 }
 0x3bd   : > { %1644 = vpow2.f32 %v1397_v61  ;;  %v1400_v40 = vmul.f32 -1.442695, %v1090_v59  ;;  %v1082_v43 = vadd.f32 %v1081_v38, %v2090_v18  ;;  %v2110_v59 = vand.u32 127, %v488_v30 }
 0x3be   : > { %v1580_v44 = vpop.f32.mrf.mxu1 }
 0x3bf   : > { %1646 = vpow2.f32 %v1400_v40  ;;  %v1398_v45 = vmul.f32 -1.442695, %v1082_v43  ;;  %v1103_v46 = vadd.f32 %v1580_v44, %v2090_v18  ;;  %vm1255_vm1 = vcmp.lt.s32.totalorder %v2110_v59, 2 }
 0x3c0   : > { %v1635_v42 = vpop.eup %1634  ;;  %v1094_v32 = vpop.f32.mrf.mxu1 }
 0x3c1   : > { %v1175_v7 = vadd.f32 1.0, %v1635_v42  ;;  %1648 = vpow2.f32 %v1398_v45  ;;  %v1403_v51 = vmul.f32 -1.442695, %v1103_v46  ;;  %v1095_v54 = vadd.f32 %v1094_v32, %v2090_v18 }
 0x3c2   : > { %v1637_v48 = vpop.eup %1636  ;;  %v1581_v8 = vpop.f32.mrf.mxu1 }
 0x3c3   : > { %1650 = vrcp.f32 %v1175_v7  ;;  %v1173_v27 = vadd.f32 1.0, %v1637_v48  ;;  %v1401_v10 = vmul.f32 -1.442695, %v1095_v54  ;;  %v1106_v13 = vadd.f32 %v1581_v8, %v2090_v18 }
 0x3c4   : > { %v1639_v52 = vpop.eup %1638  ;;  %1652 = vpow2.f32 %v1403_v51  ;;  %v1097_v53 = vpop.f32.mrf.mxu1  ;;  %v628_v48 = vadd.f32 %v2042_v63, %v2113_v39 }
 0x3c5   : > { %1654 = vrcp.f32 %v1173_v27  ;;  %v1176_v15 = vadd.f32 1.0, %v1639_v52  ;;  %v1404_v16 = vmul.f32 -1.442695, %v1106_v13  ;;  %v1098_v21 = vadd.f32 %v1097_v53, %v2090_v18 }
 0x3c6   : > { %v1641_v17 = vpop.eup %1640  ;;  %1656 = vpow2.f32 %v1401_v10  ;;  %v1584_v37 = vpop.f32.mrf.mxu1  ;;  %v639_v53 = vadd.f32 %v2044_v5, %v2113_v39 }
 0x3c7   : > { %1658 = vrcp.f32 %v1176_v15  ;;  %v1174_v19 = vadd.f32 1.0, %v1641_v17  ;;  %v1402_v9 = vmul.f32 -1.442695, %v1098_v21  ;;  %v1119_v22 = vadd.f32 %v1584_v37, %v2090_v18 }
 0x3c8   : > { %v1643_v25 = vpop.eup %1642  ;;  %1660 = vpow2.f32 %v1404_v16  ;;  %v1110_v26 = vpop.f32.mrf.mxu1 }
 0x3c9   : > { %1662 = vrcp.f32 %v1174_v19  ;;  %v1179_v20 = vadd.f32 1.0, %v1643_v25  ;;  %v1407_v28 = vmul.f32 -1.442695, %v1119_v22  ;;  %v1111_v55 = vadd.f32 %v1110_v26, %v2090_v18 }
 0x3ca   : > { %v1645_v29 = vpop.eup %1644  ;;  %1664 = vpow2.f32 %v1402_v9  ;;  %v1585_v47 = vpop.f32.mrf.mxu1  ;;  %v631_v19 = vadd.f32 %v2046_v14, %v2113_v39 }
 0x3cb   : > { %1666 = vrcp.f32 %v1179_v20  ;;  %v1177_v31 = vadd.f32 1.0, %v1645_v29  ;;  %v1405_v34 = vmul.f32 -1.442695, %v1111_v55  ;;  %v1122_v50 = vadd.f32 %v1585_v47, %v2090_v18 }
 0x3cc   : > { %v1647_v35 = vpop.eup %1646  ;;  %1668 = vpow2.f32 %v1407_v28  ;;  %v1113_v4 = vpop.f32.mrf.mxu1  ;;  %v652_v28 = vadd.f32 %v2048_v11, %v2113_v39 }
 0x3cd   : > { %1670 = vrcp.f32 %v1177_v31  ;;  %v1180_v36 = vadd.f32 1.0, %v1647_v35  ;;  %v1408_v33 = vmul.f32 -1.442695, %v1122_v50  ;;  %v1114_v23 = vadd.f32 %v1113_v4, %v2090_v18 }
 0x3ce   : > { %v1649_v61 = vpop.eup %1648  ;;  %1672 = vpow2.f32 %v1405_v34  ;;  %v644_v34 = vadd.f32 %v2050_v56, %v2113_v39 }
 0x3cf   : > { %1674 = vrcp.f32 %v1180_v36  ;;  %v1178_v38 = vadd.f32 1.0, %v1649_v61  ;;  %v1406_v40 = vmul.f32 -1.442695, %v1114_v23  ;;  %v655_v23 = vadd.f32 %v2052_v57, %v2113_v39 }
 0x3d0   : > { %v1651_v43 = vpop.eup %1650  ;;  %1676 = vpow2.f32 %v1408_v33 }
 0x3d1   : > { %v1653_v44 = vpop.eup %1652  ;;  %v1411_v45 = vadd.f32 -0.5, %v1651_v43  ;;  %1678 = vrcp.f32 %v1178_v38 }
 0x3d2   : > { %v1655_v46 = vpop.eup %1654  ;;  %v1183_v18 = vadd.f32 1.0, %v1653_v44  ;;  %1680 = vpow2.f32 %v1406_v40  ;;  %v647_v44 = vadd.f32 %v2054_v58, %v2113_v39 }
 0x3d3   : > { %v1657_v30 = vpop.eup %1656  ;;  %v1239_v42 = vmul.f32 2.0, %v1411_v45  ;;  %v1409_v32 = vadd.f32 -0.5, %v1655_v46 }
 0x3d4   : > { %v1659_v7 = vpop.eup %1658  ;;  %1682 = vrcp.f32 %v1183_v18  ;;  %v1181_v51 = vadd.f32 1.0, %v1657_v30 }
 0x3d5   : > { %v1661_v54 = vpop.eup %1660  ;;  %v1258_v8 = vsel %vm1255_vm1, %v636_v60, %v1239_v42  ;;  %v1237_v27 = vmul.f32 2.0, %v1409_v32  ;;  %v1412_v10 = vadd.f32 -0.5, %v1659_v7  ;;  %v668_v60 = vadd.f32 %v2056_v41, %v2113_v39 }
 0x3d6   : > { %v1663_v13 = vpop.eup %1662  ;;  %1274 = vst [vmem:[%s2120_s25 + $0x10] sm:$0xff] %v1258_v8  ;;  %1684 = vrcp.f32 %v1181_v51  ;;  %v1184_v52 = vadd.f32 1.0, %v1661_v54  ;;  %v660_v7 = vadd.f32 %v2058_v62, %v2113_v39  ;;  %v663_v62 = vadd.f32 %v2062_v1, %v2113_v39 }
 0x3d7   : > { %v1665_v49 = vpop.eup %1664  ;;  %v1256_v15 = vsel %vm1255_vm1, %v628_v48, %v1237_v27  ;;  %v1240_v16 = vmul.f32 2.0, %v1412_v10  ;;  %v1410_v21 = vadd.f32 -0.5, %v1663_v13  ;;  %v671_v27 = vadd.f32 %v2060_v0, %v2113_v39 }
 0x3d8   : > { %v1667_v63 = vpop.eup %1666  ;;  %1272 = vst [vmem:[%s2120_s25] sm:$0xff] %v1256_v15  ;;  %1686 = vrcp.f32 %v1184_v52  ;;  %v1182_v17 = vadd.f32 1.0, %v1665_v49  ;;  %v684_v0 = vadd.f32 %v2064_v2, %v2113_v39  ;;  %v676_v1 = vadd.f32 %v2066_v3, %v2113_v39 }
 0x3d9   : > { %v1669_v37 = vpop.eup %1668  ;;  %v1259_v9 = vsel %vm1255_vm1, %v639_v53, %v1240_v16  ;;  %v1238_v22 = vmul.f32 2.0, %v1410_v21  ;;  %v1415_v25 = vadd.f32 -0.5, %v1667_v63  ;;  %v687_v2 = vadd.f32 %v2068_v12, %v2113_v39 }
 0x3da   : > { %v1671_v5 = vpop.eup %1670  ;;  %1275 = vst [vmem:[%s2120_s25 + $0x18] sm:$0xff] %v1259_v9  ;;  %1688 = vrcp.f32 %v1182_v17  ;;  %v1187_v26 = vadd.f32 1.0, %v1669_v37  ;;  %v679_v3 = vadd.f32 %v2070_v6, %v2113_v39 }
 0x3db   : > { %v1673_v20 = vpop.eup %1672  ;;  %v1257_v55 = vsel %vm1255_vm1, %v631_v19, %v1238_v22  ;;  %v1243_v29 = vmul.f32 2.0, %v1415_v25  ;;  %v1413_v24 = vadd.f32 -0.5, %v1671_v5 }
 0x3dc   : > { %v1675_v14 = vpop.eup %1674  ;;  %1273 = vst [vmem:[%s2120_s25 + $0x8] sm:$0xff] %v1257_v55  ;;  %1690 = vrcp.f32 %v1187_v26  ;;  %v1185_v47 = vadd.f32 1.0, %v1673_v20 }
 0x3dd   : > { %v1677_v31 = vpop.eup %1676  ;;  %v1262_v50 = vsel %vm1255_vm1, %v652_v28, %v1243_v29  ;;  %v1241_v35 = vmul.f32 2.0, %v1413_v24  ;;  %v1416_v4 = vadd.f32 -0.5, %v1675_v14 }
 0x3de   : > { %v1679_v11 = vpop.eup %1678  ;;  %1278 = vst [vmem:[%s2120_s25 + $0x30] sm:$0xff] %v1262_v50  ;;  %1692 = vrcp.f32 %v1185_v47  ;;  %v1188_v36 = vadd.f32 1.0, %v1677_v31 }
 0x3df   : > { %v1681_v33 = vpop.eup %1680  ;;  %v1260_v61 = vsel %vm1255_vm1, %v644_v34, %v1241_v35  ;;  %v1244_v38 = vmul.f32 2.0, %v1416_v4  ;;  %v1414_v56 = vadd.f32 -0.5, %v1679_v11 }
 0x3e0   : > { %1276 = vst [vmem:[%s2120_s25 + $0x20] sm:$0xff] %v1260_v61  ;;  %1694 = vrcp.f32 %v1188_v36  ;;  %v1186_v40 = vadd.f32 1.0, %v1681_v33 }
 0x3e1   : > { %v1683_v43 = vpop.eup %1682  ;;  %v1263_v45 = vsel %vm1255_vm1, %v655_v23, %v1244_v38  ;;  %v1242_v46 = vmul.f32 2.0, %v1414_v56 }
 0x3e2   : > { %1279 = vst [vmem:[%s2120_s25 + $0x38] sm:$0xff] %v1263_v45  ;;  %v1419_v57 = vadd.f32 -0.5, %v1683_v43  ;;  %1696 = vrcp.f32 %v1186_v40 }
 0x3e3   : > { %v1685_v18 = vpop.eup %1684  ;;  %v1261_v30 = vsel %vm1255_vm1, %v647_v44, %v1242_v46 }
 0x3e4   : > { %1277 = vst [vmem:[%s2120_s25 + $0x28] sm:$0xff] %v1261_v30  ;;  %v1247_v42 = vmul.f32 2.0, %v1419_v57  ;;  %v1417_v32 = vadd.f32 -0.5, %v1685_v18 }
 0x3e5   : > { %v1687_v58 = vpop.eup %1686 }
 0x3e6   : > { %v1266_v51 = vsel %vm1255_vm1, %v668_v60, %v1247_v42  ;;  %v1245_v54 = vmul.f32 2.0, %v1417_v32  ;;  %v1420_v48 = vadd.f32 -0.5, %v1687_v58 }
 0x3e7   : > { %v1689_v8 = vpop.eup %1688  ;;  %1282 = vst [vmem:[%s2120_s25 + $0x50] sm:$0xff] %v1266_v51 }
 0x3e8   : > { %v1264_v41 = vsel %vm1255_vm1, %v660_v7, %v1245_v54  ;;  %v1248_v10 = vmul.f32 2.0, %v1420_v48  ;;  %v1418_v13 = vadd.f32 -0.5, %v1689_v8 }
 0x3e9   : > { %v1691_v52 = vpop.eup %1690  ;;  %1280 = vst [vmem:[%s2120_s25 + $0x40] sm:$0xff] %v1264_v41 }
 0x3ea   : > { %v1267_v49 = vsel %vm1255_vm1, %v671_v27, %v1248_v10  ;;  %v1246_v53 = vmul.f32 2.0, %v1418_v13  ;;  %v1423_v15 = vadd.f32 -0.5, %v1691_v52 }
 0x3eb   : > { %v1693_v16 = vpop.eup %1692  ;;  %1283 = vst [vmem:[%s2120_s25 + $0x58] sm:$0xff] %v1267_v49 }
 0x3ec   : > { %v1265_v21 = vsel %vm1255_vm1, %v663_v62, %v1246_v53  ;;  %v1251_v63 = vmul.f32 2.0, %v1423_v15  ;;  %v1421_v17 = vadd.f32 -0.5, %v1693_v16 }
 0x3ed   : > { %v1695_v37 = vpop.eup %1694  ;;  %1281 = vst [vmem:[%s2120_s25 + $0x48] sm:$0xff] %v1265_v21 }
 0x3ee   : > { %v1270_v19 = vsel %vm1255_vm1, %v684_v0, %v1251_v63  ;;  %v1249_v9 = vmul.f32 2.0, %v1421_v17  ;;  %v1424_v22 = vadd.f32 -0.5, %v1695_v37 }
 0x3ef   : > { %v1697_v25 = vpop.eup %1696  ;;  %1286 = vst [vmem:[%s2120_s25 + $0x70] sm:$0xff] %v1270_v19 }
 0x3f0   : > { %v1268_v5 = vsel %vm1255_vm1, %v676_v1, %v1249_v9  ;;  %v1252_v26 = vmul.f32 2.0, %v1424_v22  ;;  %v1422_v20 = vadd.f32 -0.5, %v1697_v25 }
 0x3f1   : > { %1284 = vst [vmem:[%s2120_s25 + $0x60] sm:$0xff] %v1268_v5 }
 0x3f2   : > { %v1271_v28 = vsel %vm1255_vm1, %v687_v2, %v1252_v26  ;;  %v1250_v55 = vmul.f32 2.0, %v1422_v20 }
 0x3f3   : > { %1287 = vst [vmem:[%s2120_s25 + $0x78] sm:$0xff] %v1271_v28 }
 0x3f4   : > { %v1269_v29 = vsel %vm1255_vm1, %v679_v3, %v1250_v55 }
 0x3f5   : > { %1285 = vst [vmem:[%s2120_s25 + $0x68] sm:$0xff] %v1269_v29 }
 0x3f6 PF: > { %s15_s18 = sadd.s32 1, %s1704_s18  }
 0x3f7   : > { %p12_p4 = scmp.ge.s32.totalorder %s15_s18, 4  }
 0x3f9   :  { %14 = sbr.rel (!%p12_p4) target bundleno = 1 (0x1), region = 70 }

// kernel: pet_forward.5
= control target key start
LH: loop header
LB: loop body
LE: loop exit
PB: predicated region body
PF: predicated region fallthrough
CT: control target
= control target key end

     0   :  { %s6040_s24 = smov 0   ;;  %s8125_s0 = inlined_call_operand.vmem [shape: bf16[1024,8], index: 0, kind: input, shape index: {}]   ;;  %s8126_s1 = inlined_call_operand.vmem [shape: bf16[1024,32], index: 1, kind: input, shape index: {}]   ;;  %s8127_s2 = inlined_call_operand.vmem [shape: bf16[8,32], index: 2, kind: input, shape index: {}]   ;;  %s8128_s3 = inlined_call_operand.vmem [shape: f32[8,32], index: 3, kind: input, shape index: {}]   ;;  %s8129_s4 = inlined_call_operand.vmem [shape: bf16[64,32], index: 4, kind: input, shape index: {}]   ;;  %s8130_s5 = inlined_call_operand.vmem [shape: bf16[64,128], index: 5, kind: input, shape index: {}]   ;;  %s8131_s6 = inlined_call_operand.vmem [shape: f32[2,128], index: 6, kind: input, shape index: {}]   ;;  %s8132_s7 = inlined_call_operand.vmem [shape: f32[1024,128], index: 7, kind: output, shape index: {}]  }
   0x1 LB: > { %s4547_s25 = sadd.s32 4294967295, %s5998_s24   ;;  %p4551_p0 = scmp.ge.s32.totalorder %s5998_s24, 1  ;;  %s5998_s24 = sphi %s6040_s24, %s17_s24  }
   0x2   : > { %p249_p1 = scmp.lt.s32.totalorder %s5998_s24, 3 }
   0x4   : > { %p250_p2 = pnand %p4551_p0, %p249_p1 }
   0x6   : > { %253 = sbr.rel (%p250_p2) target bundleno = 1416 (0x588), region = 48 }
   0xb   : > { %v498_v0 = vld [vmem:[%s8127_s2] sm:$0xf]  ;;  %vm760_vm0 = vcmask 1043456   ;;  %s4552_s28 = sshll.u32 %s4547_s25, 6  ;;  %vm663_vm1 = vcmask 64512   ;;  %v8133_v34 = vlaneseq  ;;  %vm1117_vm2 = vcmask 261120  }
   0xc   : > { %5556 = vmatprep.subr.msk.bf16.mxu0 %vm760_vm0, %v498_v0  ;;  %5557 = vmatprep.subr.msk.bf16.mxu1 %vm760_vm0, %v498_v0  ;;  %v762_v1 = vsel %vm760_vm0, %v498_v0, 0  ;;  %p287_p3 = scmp.lt.s32.totalorder %s4552_s28, 127  ;;  %v305_v37 = vld [vmem:[%s8128_s3] sm:$0xff] }
   0xd   : > { %5217 = vmatpush3.bf16.msra.mxu0 %v762_v1  ;;  %5555 = vmatpush3.bf16.msra.mxu1 %v762_v1  ;;  %v6126_v35 = vshrl.u32 %v8133_v34, 7 }
   0xe   : > { %s8307_s28 = smov (!%p287_p3, %s4552_s28), 127 }
   0xf   : > { %s4553_s29 = sshll.u32 %s8307_s28, 2  ;;  %8177 = vst [vmem:[#allocation2_spill] sm:$0xff] %v6126_v35  ;;  %v8134_v36 = vsub.s32 0, %v6126_v35  ;;  %s4557_s16 = sshll.u32 %s8307_s28, 3 }
  0x10   : > { %s6059_s9 = scalar_lea.vmem %s8125_s0, %s4553_s29  ;;  %s6134_s12 = scalar_lea.vmem %s8126_s1, %s4553_s29 }
  0x11   : > { %v5566_v2 = vld [vmem:[%s6059_s9] sm:$0xff]   ;;  %v5568_v4 = vld [vmem:[%s6059_s9 + $0x8] sm:$0xff]   ;;  %v5570_v6 = vld [vmem:[%s6059_s9 + $0x10] sm:$0xff]   ;;  %v6142_v39 = vrot.slane %v305_v37, %v8134_v36  ;;  %s7710_s28 = scalar_lea.vmem %s8132_s7, %s4557_s16 }
  0x12   : > { %v5567_v3 = vld [vmem:[%s6059_s9 + $0x80] sm:$0xff]   ;;  %5218 = vmatprep.mubr.msk.bf16.mxu0 %vm663_vm1, %v5566_v2  ;;  %v5569_v5 = vld [vmem:[%s6059_s9 + $0x88] sm:$0xff]   ;;  %v5572_v7 = vld [vmem:[%s6059_s9 + $0x90] sm:$0xff]  }
  0x13   : > { %5250 = vmatprep.mubr.msk.bf16.mxu1 %vm663_vm1, %v5567_v3  ;;  %5219 = vmatmul.mubr.msk.bf16.vlgmr.msra.gmra.mxu0 %vm663_vm1, %v5568_v4  ;;  %v5571_v8 = vld [vmem:[%s6059_s9 + $0x18] sm:$0xff]   ;;  %v5574_v10 = vld [vmem:[%s6059_s9 + $0x20] sm:$0xff]   ;;  %v5575_v12 = vld [vmem:[%s6059_s9 + $0x28] sm:$0xff]  }
  0x14   : > { %5251 = vmatmul.mubr.msk.bf16.vlgmr.msra.gmra.mxu1 %vm663_vm1, %v5569_v5  ;;  %5222 = vmatprep.mubr.msk.bf16.mxu0 %vm663_vm1, %v5570_v6  ;;  %v5573_v9 = vld [vmem:[%s6059_s9 + $0x98] sm:$0xff]   ;;  %v5576_v11 = vld [vmem:[%s6059_s9 + $0xa0] sm:$0xff]   ;;  %v5577_v13 = vld [vmem:[%s6059_s9 + $0xa8] sm:$0xff]  }
  0x15   : > { %5254 = vmatprep.mubr.msk.bf16.mxu1 %vm663_vm1, %v5572_v7  ;;  %v5578_v14 = vld [vmem:[%s6059_s9 + $0x30] sm:$0xff]   ;;  %v5579_v16 = vld [vmem:[%s6059_s9 + $0x38] sm:$0xff]   ;;  %v5582_v18 = vld [vmem:[%s6059_s9 + $0x40] sm:$0xff]  }
  0x16   : > { %v5580_v15 = vld [vmem:[%s6059_s9 + $0xb0] sm:$0xff]   ;;  %v5581_v17 = vld [vmem:[%s6059_s9 + $0xb8] sm:$0xff]   ;;  %v5584_v19 = vld [vmem:[%s6059_s9 + $0xc0] sm:$0xff]  }
  0x17   : > { %v5583_v20 = vld [vmem:[%s6059_s9 + $0x48] sm:$0xff]   ;;  %v5586_v22 = vld [vmem:[%s6059_s9 + $0x50] sm:$0xff]   ;;  %v5587_v24 = vld [vmem:[%s6059_s9 + $0x58] sm:$0xff]  }
  0x18   : > { %v5585_v21 = vld [vmem:[%s6059_s9 + $0xc8] sm:$0xff]   ;;  %v5588_v23 = vld [vmem:[%s6059_s9 + $0xd0] sm:$0xff]   ;;  %v5589_v25 = vld [vmem:[%s6059_s9 + $0xd8] sm:$0xff]  }
  0x19   : > { %v5590_v26 = vld [vmem:[%s6059_s9 + $0x60] sm:$0xff]   ;;  %v5591_v28 = vld [vmem:[%s6059_s9 + $0x68] sm:$0xff]   ;;  %v5592_v29 = vld [vmem:[%s6059_s9 + $0x70] sm:$0xff]  }
  0x1a   : > { %v5594_v27 = vld [vmem:[%s6059_s9 + $0xe0] sm:$0xff]   ;;  %v5595_v30 = vld [vmem:[%s6059_s9 + $0xe8] sm:$0xff]   ;;  %v5596_v31 = vld [vmem:[%s6059_s9 + $0xf0] sm:$0xff]  }
  0x1b   : > { %5223 = vmatmul.mubr.msk.bf16.gmra.mxu0 %vm663_vm1, %v5571_v8  ;;  %v5593_v32 = vld [vmem:[%s6059_s9 + $0x78] sm:$0xff]   ;;  %v5016_v38 = vld [vmem:[%s6134_s12 + $0x8] sm:$0xff]   ;;  %v4889_v42 = vld [vmem:[%s6134_s12] sm:$0xff]  }
  0x1c   : > { %5255 = vmatmul.mubr.msk.bf16.gmra.mxu1 %vm663_vm1, %v5573_v9  ;;  %5226 = vmatprep.mubr.msk.bf16.mxu0 %vm663_vm1, %v5574_v10  ;;  %v5597_v33 = vld [vmem:[%s6059_s9 + $0xf8] sm:$0xff]   ;;  %v5032_v40 = vld [vmem:[%s6134_s12 + $0x88] sm:$0xff]   ;;  %v4894_v41 = vunpack.c.l.bf16 %v5016_v38  ;;  %v4890_v49 = vunpack.c.l.bf16 %v4889_v42  ;;  %v5031_v50 = vld [vmem:[%s6134_s12 + $0x80] sm:$0xff]   ;;  %v4895_v54 = vunpack.c.h.bf16 %v5016_v38 }
  0x1d   : > { %5258 = vmatprep.mubr.msk.bf16.mxu1 %vm663_vm1, %v5576_v11  ;;  %v4958_v44 = vunpack.c.l.bf16 %v5032_v40  ;;  %v4959_v60 = vunpack.c.h.bf16 %v5032_v40  ;;  %v4954_v61 = vunpack.c.l.bf16 %v5031_v50  ;;  %v4955_v10 = vunpack.c.h.bf16 %v5031_v50 }
  0x23   : > { %5227 = vmatmul.mubr.msk.bf16.gmra.mxu0 %vm663_vm1, %v5575_v12 }
  0x24   : > { %5259 = vmatmul.mubr.msk.bf16.gmra.mxu1 %vm663_vm1, %v5577_v13  ;;  %5230 = vmatprep.mubr.msk.bf16.mxu0 %vm663_vm1, %v5578_v14 }
  0x25   : > { %5262 = vmatprep.mubr.msk.bf16.mxu1 %vm663_vm1, %v5580_v15  ;;  %v4891_v15 = vunpack.c.h.bf16 %v4889_v42 }
  0x2b   : > { %5231 = vmatmul.mubr.msk.bf16.gmra.mxu0 %vm663_vm1, %v5579_v16  ;;  %v5018_v16 = vld [vmem:[%s6134_s12 + $0x18] sm:$0xff]  }
  0x2c   : > { %5263 = vmatmul.mubr.msk.bf16.gmra.mxu1 %vm663_vm1, %v5581_v17  ;;  %5234 = vmatprep.mubr.msk.bf16.mxu0 %vm663_vm1, %v5582_v18 }
  0x2d   : > { %5266 = vmatprep.mubr.msk.bf16.mxu1 %vm663_vm1, %v5584_v19 }
  0x33   : > { %5235 = vmatmul.mubr.msk.bf16.gmra.mxu0 %vm663_vm1, %v5583_v20 }
  0x34   : > { %5267 = vmatmul.mubr.msk.bf16.gmra.mxu1 %vm663_vm1, %v5585_v21  ;;  %5238 = vmatprep.mubr.msk.bf16.mxu0 %vm663_vm1, %v5586_v22 }
  0x35   : > { %5270 = vmatprep.mubr.msk.bf16.mxu1 %vm663_vm1, %v5588_v23  ;;  %v4903_v23 = vunpack.c.h.bf16 %v5018_v16 }
  0x3b   : > { %5239 = vmatmul.mubr.msk.bf16.gmra.mxu0 %vm663_vm1, %v5587_v24 }
  0x3c   : > { %5271 = vmatmul.mubr.msk.bf16.gmra.mxu1 %vm663_vm1, %v5589_v25  ;;  %5242 = vmatprep.mubr.msk.bf16.mxu0 %vm663_vm1, %v5590_v26 }
  0x3d   : > { %5274 = vmatprep.mubr.msk.bf16.mxu1 %vm663_vm1, %v5594_v27 }
  0x43   : > { %5243 = vmatmul.mubr.msk.bf16.gmra.mxu0 %vm663_vm1, %v5591_v28  ;;  %v4902_v28 = vunpack.c.l.bf16 %v5018_v16 }
  0x44   : > { %5246 = vmatprep.mubr.msk.bf16.mxu0 %vm663_vm1, %v5592_v29  ;;  %5275 = vmatmul.mubr.msk.bf16.gmra.mxu1 %vm663_vm1, %v5595_v30  ;;  %v5034_v29 = vld [vmem:[%s6134_s12 + $0x98] sm:$0xff]  }
  0x45   : > { %5278 = vmatprep.mubr.msk.bf16.mxu1 %vm663_vm1, %v5596_v31  ;;  %v4967_v40 = vunpack.c.h.bf16 %v5034_v29 }
  0x4b   : > { %5247 = vmatmul.mubr.msk.bf16.gmra.mxu0 %vm663_vm1, %v5593_v32 }
  0x4c   : > { %5279 = vmatmul.mubr.msk.bf16.gmra.mxu1 %vm663_vm1, %v5597_v33 }
  0xd3   : > { %v5220_v43 = vpop.f32.mrf.mxu0 }
  0xd4   : > { %v807_v45 = vadd.f32 %v5220_v43, %v6142_v39  ;;  %v5252_v46 = vpop.f32.mrf.mxu1 }
  0xd5   : > { %v935_v47 = vadd.f32 %v5252_v46, %v6142_v39  ;;  %v798_v48 = vpop.f32.mrf.mxu0  ;;  %v5017_v46 = vld [vmem:[%s6134_s12 + $0x10] sm:$0xff]  }
  0xd6   : > { %v799_v51 = vadd.f32 %v798_v48, %v6142_v39  ;;  %v926_v52 = vpop.f32.mrf.mxu1  ;;  %v6150_v53 = vadd.f32 %v4894_v41, %v807_v45 }
  0xd7   : > { %v5221_v55 = vpop.f32.mrf.mxu0  ;;  %v6152_v56 = vadd.f32 %v4958_v44, %v935_v47  ;;  %v927_v62 = vadd.f32 %v926_v52, %v6142_v39  ;;  %v4966_v44 = vunpack.c.l.bf16 %v5034_v29  ;;  %v4899_v52 = vunpack.c.h.bf16 %v5017_v46 }
  0xd8   : > { %v810_v57 = vadd.f32 %v5221_v55, %v6142_v39  ;;  %v5253_v58 = vpop.f32.mrf.mxu1  ;;  %v1124_v59 = vsel %vm1117_vm2, %v6150_v53, 0.0  ;;  %v6161_v2 = vadd.f32 %v4890_v49, %v799_v51 }
  0xd9   : > { %v938_v63 = vadd.f32 %v5253_v58, %v6142_v39  ;;  %v1220_v0 = vsel %vm1117_vm2, %v6152_v56, 0.0  ;;  %1125 = vadd.xlane.f32.xlu1 %v1124_v59  ;;  %v801_v1 = vpop.f32.mrf.mxu0  ;;  %v6173_v14 = vadd.f32 %v4954_v61, %v927_v62  ;;  %v4898_v58 = vunpack.c.l.bf16 %v5017_v46  ;;  %v5033_v59 = vld [vmem:[%s6134_s12 + $0x90] sm:$0xff]   ;;  %v5019_v46 = vld [vmem:[%s6134_s12 + $0x20] sm:$0xff]  }
  0xda   : > { %1221 = vadd.xlane.f32.xlu0 %v1220_v0  ;;  %v929_v3 = vpop.f32.mrf.mxu1  ;;  %v6163_v4 = vadd.f32 %v4895_v54, %v810_v57  ;;  %v802_v11 = vadd.f32 %v801_v1, %v6142_v39  ;;  %v1118_v13 = vsel %vm1117_vm2, %v6161_v2, 0.0  ;;  %v4963_v1 = vunpack.c.h.bf16 %v5033_v59 }
  0xdb   : > { %v5224_v5 = vpop.f32.mrf.mxu0  ;;  %v930_v6 = vadd.f32 %v929_v3, %v6142_v39  ;;  %v6168_v9 = vadd.f32 %v4959_v60, %v938_v63  ;;  %v1214_v26 = vsel %vm1117_vm2, %v6173_v14, 0.0 }
  0xdc   : > { %v5256_v7 = vpop.f32.mrf.mxu1  ;;  %v1127_v8 = vsel %vm1117_vm2, %v6163_v4, 0.0  ;;  %v823_v24 = vadd.f32 %v5224_v5, %v6142_v39  ;;  %v6184_v27 = vadd.f32 %v4891_v15, %v802_v11 }
  0xdd   : > { %1128 = vadd.xlane.f32.xlu1 %v1127_v8  ;;  %v814_v12 = vpop.f32.mrf.mxu0  ;;  %v1223_v21 = vsel %vm1117_vm2, %v6168_v9, 0.0  ;;  %v6179_v22 = vadd.f32 %v4955_v10, %v930_v6  ;;  %v951_v41 = vadd.f32 %v5256_v7, %v6142_v39  ;;  %v4962_v8 = vunpack.c.l.bf16 %v5033_v59  ;;  %v5020_v10 = vld [vmem:[%s6134_s12 + $0x28] sm:$0xff]  }
  0xde   : > { %1119 = vadd.xlane.f32.xlu0 %v1118_v13  ;;  %v942_v17 = vpop.f32.mrf.mxu1  ;;  %v1121_v42 = vsel %vm1117_vm2, %v6184_v27, 0.0  ;;  %v6195_v43 = vadd.f32 %v4902_v28, %v823_v24  ;;  %v815_v54 = vadd.f32 %v814_v12, %v6142_v39  ;;  %v4910_v24 = vunpack.c.l.bf16 %v5020_v10 }
  0xdf   : > { %v5225_v18 = vpop.f32.mrf.mxu0  ;;  %v1217_v33 = vsel %vm1117_vm2, %v6179_v22, 0.0  ;;  %v6208_v57 = vadd.f32 %v4966_v44, %v951_v41  ;;  %v943_v5 = vadd.f32 %v942_v17, %v6142_v39  ;;  %v4911_v17 = vunpack.c.h.bf16 %v5020_v10 }
  0xe0   : > { %v826_v19 = vadd.f32 %v5225_v18, %v6142_v39  ;;  %v5257_v20 = vpop.f32.mrf.mxu1  ;;  %v1136_v55 = vsel %vm1117_vm2, %v6195_v43, 0.0  ;;  %v6221_v7 = vadd.f32 %v4898_v58, %v815_v54 }
  0xe1   : > { %1224 = vadd.xlane.f32.xlu1 %v1223_v21  ;;  %v817_v25 = vpop.f32.mrf.mxu0  ;;  %v954_v32 = vadd.f32 %v5257_v20, %v6142_v39  ;;  %v1232_v6 = vsel %vm1117_vm2, %v6208_v57, 0.0  ;;  %v6236_v21 = vadd.f32 %v4962_v8, %v943_v5 }
  0xe2   : > { %1215 = vadd.xlane.f32.xlu0 %v1214_v26  ;;  %v945_v30 = vpop.f32.mrf.mxu1  ;;  %v6190_v37 = vadd.f32 %v4903_v23, %v826_v19  ;;  %v818_v48 = vadd.f32 %v817_v25, %v6142_v39  ;;  %v1130_v20 = vsel %vm1117_vm2, %v6221_v7, 0.0  ;;  %v5036_v25 = vld [vmem:[%s6134_s12 + $0xa8] sm:$0xff]  }
  0xe3   : > { %v5228_v31 = vpop.f32.mrf.mxu0  ;;  %v6203_v50 = vadd.f32 %v4967_v40, %v954_v32  ;;  %v946_v62 = vadd.f32 %v945_v30, %v6142_v39  ;;  %v1226_v40 = vsel %vm1117_vm2, %v6236_v21, 0.0  ;;  %v4974_v44 = vunpack.c.l.bf16 %v5036_v25 }
  0xe4   : > { %v5260_v38 = vpop.f32.mrf.mxu1  ;;  %v1139_v49 = vsel %vm1117_vm2, %v6190_v37, 0.0  ;;  %v6214_v0 = vadd.f32 %v4899_v52, %v818_v48  ;;  %v839_v19 = vadd.f32 %v5228_v31, %v6142_v39  ;;  %v4975_v31 = vunpack.c.h.bf16 %v5036_v25 }
  0xe5   : > { %1218 = vadd.xlane.f32.xlu1 %v1217_v33  ;;  %v830_v47 = vpop.f32.mrf.mxu0  ;;  %v1235_v63 = vsel %vm1117_vm2, %v6203_v50, 0.0  ;;  %v6229_v16 = vadd.f32 %v4963_v1, %v946_v62  ;;  %v967_v33 = vadd.f32 %v5260_v38, %v6142_v39  ;;  %v4907_v52 = vunpack.c.h.bf16 %v5019_v46 }
  0xe6   : > { %1122 = vadd.xlane.f32.xlu0 %v1121_v42  ;;  %v6197_v45 = vpop.f32.mrf.mxu1  ;;  %v1133_v15 = vsel %vm1117_vm2, %v6214_v0, 0.0  ;;  %v6251_v41 = vadd.f32 %v4910_v24, %v839_v19  ;;  %v4906_v62 = vunpack.c.l.bf16 %v5019_v46  ;;  %v5022_v19 = vld [vmem:[%s6134_s12 + $0x38] sm:$0xff]  }
  0xe7   : > { %v5229_v61 = vpop.f32.mrf.mxu0  ;;  %v1229_v29 = vsel %vm1117_vm2, %v6229_v16, 0.0  ;;  %v4918_v46 = vunpack.c.l.bf16 %v5022_v19 }
  0xe8   : > { %v5261_v51 = vpop.f32.mrf.mxu1  ;;  %v842_v13 = vadd.f32 %v5229_v61, %v6142_v39  ;;  %v1148_v58 = vsel %vm1117_vm2, %v6251_v41, 0.0  ;;  %v6268_v61 = vadd.f32 %v4974_v44, %v967_v33 }
  0xe9   : > { %1140 = vadd.xlane.f32.xlu1 %v1139_v49  ;;  %v833_v12 = vpop.f32.mrf.mxu0  ;;  %v970_v28 = vadd.f32 %v5261_v51, %v6142_v39 }
  0xea   : > { %1137 = vadd.xlane.f32.xlu0 %v1136_v55  ;;  %v961_v60 = vpop.f32.mrf.mxu1  ;;  %v6244_v30 = vadd.f32 %v4911_v17, %v842_v13  ;;  %v834_v49 = vadd.f32 %v833_v12, %v6142_v39  ;;  %v831_v55 = vadd.f32 %v830_v47, %v6142_v39  ;;  %8179 = vst [vmem:[#allocation4_spill] sm:$0xff] %v6268_v61  ;;  %v1244_v13 = vsel %vm1117_vm2, %v6268_v61, 0.0  ;;  %v5023_v61 = vld [vmem:[%s6134_s12 + $0x40] sm:$0xff]  }
  0xeb   : > { %v5232_v23 = vpop.f32.mrf.mxu0  ;;  %v6261_v38 = vadd.f32 %v4975_v31, %v970_v28  ;;  %v962_v5 = vadd.f32 %v961_v60, %v6142_v39  ;;  %v959_v12 = vadd.f32 %v6197_v45, %v6142_v39 }
  0xec   : > { %v6216_v3 = vpop.f32.mrf.mxu1  ;;  %v1151_v51 = vsel %vm1117_vm2, %v6244_v30, 0.0  ;;  %v6276_v8 = vadd.f32 %v4907_v52, %v834_v49  ;;  %v6284_v17 = vadd.f32 %v4906_v62, %v831_v55  ;;  %v855_v33 = vadd.f32 %v5232_v23, %v6142_v39  ;;  %v5038_v49 = vld [vmem:[%s6134_s12 + $0xb8] sm:$0xff]  }
  0xed   : > { %1236 = vadd.xlane.f32.xlu1 %v1235_v63  ;;  %v6253_v42 = vpop.f32.mrf.mxu0  ;;  %8178 = vst [vmem:[#allocation3_spill] sm:$0xff] %v6261_v38  ;;  %v5035_v63 = vld [vmem:[%s6134_s12 + $0xa0] sm:$0xff]  }
  0xee   : > { %1233 = vadd.xlane.f32.xlu0 %v1232_v6  ;;  %v6224_v11 = vpop.f32.mrf.mxu1  ;;  %v1247_v6 = vsel %vm1117_vm2, %v6261_v38, 0.0  ;;  %v4971_v47 = vunpack.c.h.bf16 %v5035_v63  ;;  %v4970_v60 = vunpack.c.l.bf16 %v5035_v63  ;;  %v1145_v45 = vsel %vm1117_vm2, %v6276_v8, 0.0 }
  0xef   : > { %v5233_v59 = vpop.f32.mrf.mxu0  ;;  %v983_v63 = vadd.f32 %v6216_v3, %v6142_v39 }
  0xf0   : > { %v6231_v18 = vpop.f32.mrf.mxu1  ;;  %v858_v25 = vadd.f32 %v5233_v59, %v6142_v39  ;;  %v6294_v28 = vadd.f32 %v4971_v47, %v962_v5  ;;  %v6301_v44 = vadd.f32 %v4970_v60, %v959_v12  ;;  %v4983_v59 = vunpack.c.h.bf16 %v5038_v49 }
  0xf1   : > { %1134 = vadd.xlane.f32.xlu1 %v1133_v15  ;;  %v849_v15 = vpop.f32.mrf.mxu0  ;;  %v986_v55 = vadd.f32 %v6231_v18, %v6142_v39  ;;  %v4982_v47 = vunpack.c.l.bf16 %v5038_v49  ;;  %v5021_v18 = vld [vmem:[%s6134_s12 + $0x30] sm:$0xff]  }
  0xf2   : > { %1131 = vadd.xlane.f32.xlu0 %v1130_v20  ;;  %v6239_v26 = vpop.f32.mrf.mxu1  ;;  %8180 = vst [vmem:[#allocation5_spill] sm:$0xff] %v6301_v44  ;;  %v1241_v23 = vsel %vm1117_vm2, %v6294_v28, 0.0  ;;  %v1238_v5 = vsel %vm1117_vm2, %v6301_v44, 0.0  ;;  %v850_v60 = vadd.f32 %v849_v15, %v6142_v39  ;;  %v4915_v3 = vunpack.c.h.bf16 %v5021_v18 }
  0xf3   : > { %v6289_v24 = vpop.f32.mrf.mxu0  ;;  %v4914_v15 = vunpack.c.l.bf16 %v5021_v18 }
  0xf4   : > { %v6246_v32 = vpop.f32.mrf.mxu1  ;;  %v6345_v34 = vadd.f32 %v4915_v3, %v850_v60 }
  0xf5   : > { %1230 = vadd.xlane.f32.xlu1 %v1229_v29  ;;  %v4919_v29 = vunpack.c.h.bf16 %v5022_v19  ;;  %v6306_v52 = vpop.f32.mrf.mxu0 }
  0xf6   : > { %1227 = vadd.xlane.f32.xlu0 %v1226_v40  ;;  %v6256_v48 = vpop.f32.mrf.mxu1  ;;  %v1142_v40 = vsel %vm1117_vm2, %v6284_v17, 0.0 }
  0xf8   : > { %v6263_v54 = vpop.f32.mrf.mxu1 }
  0xf9   : > { %1152 = vadd.xlane.f32.xlu1 %v1151_v51 }
  0xfa   : > { %1149 = vadd.xlane.f32.xlu0 %v1148_v58  ;;  %v6271_v1 = vpop.f32.mrf.mxu1  ;;  %v6312_v58 = vadd.f32 %v4919_v29, %v858_v25  ;;  %v6328_v25 = vadd.f32 %v4983_v59, %v986_v55  ;;  %v978_v59 = vadd.f32 %v6239_v26, %v6142_v39 }
  0xfc   : > { %v6278_v10 = vpop.f32.mrf.mxu1  ;;  %v1163_v19 = vsel %vm1117_vm2, %v6312_v58, 0.0  ;;  %8181 = vst [vmem:[#allocation6_spill] sm:$0xff] %v6328_v25 }
  0xfd   : > { %1248 = vadd.xlane.f32.xlu1 %v1247_v6  ;;  %v6320_v6 = vadd.f32 %v4918_v46, %v855_v33  ;;  %v847_v33 = vadd.f32 %v6253_v42, %v6142_v39  ;;  %v6337_v46 = vadd.f32 %v4982_v47, %v983_v63  ;;  %v975_v63 = vadd.f32 %v6224_v11, %v6142_v39 }
  0xfe   : > { %1245 = vadd.xlane.f32.xlu0 %v1244_v13  ;;  %v6287_v20 = vpop.f32.mrf.mxu1  ;;  %v5237_v13 = vpop.f32.mrf.mxu0  ;;  %v1157_v11 = vsel %vm1117_vm2, %v6345_v34, 0.0 }
  0xff   : > { %8182 = vst [vmem:[#allocation7_spill] sm:$0xff] %v6337_v46  ;;  %v1256_v47 = vsel %vm1117_vm2, %v6337_v46, 0.0  ;;  %v6352_v18 = vadd.f32 %v4914_v15, %v847_v33  ;;  %v871_v33 = vadd.f32 %v6289_v24, %v6142_v39 }
 0x100   : > { %v6296_v31 = vpop.f32.mrf.mxu1  ;;  %v865_v55 = vpop.f32.mrf.mxu0 }
 0x101   : > { %1146 = vadd.xlane.f32.xlu1 %v1145_v45  ;;  %v5037_v45 = vld [vmem:[%s6134_s12 + $0xb0] sm:$0xff]  }
 0x102   : > { %1143 = vadd.xlane.f32.xlu0 %v1142_v40  ;;  %v6304_v51 = vpop.f32.mrf.mxu1  ;;  %v1160_v40 = vsel %vm1117_vm2, %v6320_v6, 0.0  ;;  %v4978_v42 = vunpack.c.l.bf16 %v5037_v45 }
 0x104   : > { %v6314_v62 = vpop.f32.mrf.mxu1  ;;  %v6368_v15 = vadd.f32 %v4978_v42, %v975_v63  ;;  %v999_v42 = vadd.f32 %v6246_v32, %v6142_v39  ;;  %v863_v32 = vadd.f32 %v6306_v52, %v6142_v39 }
 0x105   : > { %1242 = vadd.xlane.f32.xlu1 %v1241_v23  ;;  %v4979_v23 = vunpack.c.h.bf16 %v5037_v45  ;;  %v874_v45 = vadd.f32 %v5237_v13, %v6142_v39  ;;  %v5040_v13 = vld [vmem:[%s6134_s12 + $0xc8] sm:$0xff]  }
 0x106   : > { %1239 = vadd.xlane.f32.xlu0 %v1238_v5  ;;  %v6323_v12 = vpop.f32.mrf.mxu1  ;;  %v1259_v5 = vsel %vm1117_vm2, %v6328_v25, 0.0  ;;  %8184 = vst [vmem:[#allocation9_spill] sm:$0xff] %v6368_v15  ;;  %v1250_v63 = vsel %vm1117_vm2, %v6368_v15, 0.0 }
 0x108   : > { %v6331_v29 = vpop.f32.mrf.mxu1 }
 0x109   : > { %1164 = vadd.xlane.f32.xlu1 %v1163_v19  ;;  %v5024_v19 = vld [vmem:[%s6134_s12 + $0x48] sm:$0xff]  }
 0x10a   : > { %1161 = vadd.xlane.f32.xlu0 %v1160_v40  ;;  %v6339_v49 = vpop.f32.mrf.mxu1  ;;  %v5240_v40 = vpop.f32.mrf.mxu0  ;;  %v4927_v3 = vunpack.c.h.bf16 %v5024_v19  ;;  %v4926_v35 = vunpack.c.l.bf16 %v5024_v19  ;;  %v4991_v19 = vunpack.c.h.bf16 %v5040_v13 }
 0x10c   : > { %v5280_v36 = vpop.f32.mrf.mxu1 }
 0x10d   : > { %1260 = vadd.xlane.f32.xlu1 %v1259_v5  ;;  %v6355_v26 = vadd.f32 %v5280_v36, %v6142_v39  ;;  %v6362_v5 = vadd.f32 %v4979_v23, %v978_v59  ;;  %v1154_v36 = vsel %vm1117_vm2, %v6352_v18, 0.0  ;;  %v1002_v23 = vadd.f32 %v6263_v54, %v6142_v39 }
 0x10e   : > { %1257 = vadd.xlane.f32.xlu0 %v1256_v47  ;;  %v6357_v60 = vpop.f32.mrf.mxu1  ;;  %v6370_v47 = vpop.f32.mrf.mxu0  ;;  %v6380_v59 = vadd.f32 %v4927_v3, %v874_v45  ;;  %v866_v54 = vadd.f32 %v865_v55, %v6142_v39 }
 0x10f   : > { %8183 = vst [vmem:[#allocation8_spill] sm:$0xff] %v6362_v5  ;;  %v1253_v24 = vsel %vm1117_vm2, %v6362_v5, 0.0  ;;  %v6392_v45 = vadd.f32 %v4991_v19, %v1002_v23  ;;  %v4923_v5 = vunpack.c.h.bf16 %v5023_v61  ;;  %v994_v23 = vadd.f32 %v6271_v1, %v6142_v39 }
 0x110   : > { %v5281_v46 = vpop.f32.mrf.mxu1  ;;  %v1175_v3 = vsel %vm1117_vm2, %v6380_v59, 0.0 }
 0x111   : > { %1158 = vadd.xlane.f32.xlu1 %v1157_v11  ;;  %v6374_v25 = vadd.f32 %v5281_v46, %v6142_v39  ;;  %v6386_v46 = vadd.f32 %v4926_v35, %v871_v33  ;;  %v5241_v11 = vpop.f32.mrf.mxu0  ;;  %8185 = vst [vmem:[#allocation10_spill] sm:$0xff] %v6392_v45  ;;  %v1271_v19 = vsel %vm1117_vm2, %v6392_v45, 0.0  ;;  %v6405_v15 = vadd.f32 %v4923_v5, %v866_v54 }
 0x112   : > { %1155 = vadd.xlane.f32.xlu0 %v1154_v36  ;;  %v4990_v36 = vunpack.c.l.bf16 %v5040_v13  ;;  %v890_v45 = vadd.f32 %v5241_v11, %v6142_v39  ;;  %v1018_v11 = vadd.f32 %v6296_v31, %v6142_v39 }
 0x113   : > { %v1172_v35 = vsel %vm1117_vm2, %v6386_v46, 0.0  ;;  %v881_v13 = vpop.f32.mrf.mxu0  ;;  %v1169_v5 = vsel %vm1117_vm2, %v6405_v15, 0.0 }
 0x114   : > { %v6398_v33 = vadd.f32 %v4990_v36, %v999_v42 }
 0x115   : > { %1254 = vadd.xlane.f32.xlu1 %v1253_v24  ;;  %v4922_v24 = vunpack.c.l.bf16 %v5023_v61  ;;  %v5244_v55 = vpop.f32.mrf.mxu0 }
 0x116   : > { %1251 = vadd.xlane.f32.xlu0 %v1250_v63  ;;  %8186 = vst [vmem:[#allocation11_spill] sm:$0xff] %v6398_v33  ;;  %v5039_v63 = vld [vmem:[%s6134_s12 + $0xc0] sm:$0xff]   ;;  %v1268_v61 = vsel %vm1117_vm2, %v6398_v33, 0.0  ;;  %v903_v44 = vadd.f32 %v5244_v55, %v6142_v39 }
 0x117   : > { %v4987_v52 = vunpack.c.h.bf16 %v5039_v63  ;;  %v6411_v42 = vadd.f32 %v4922_v24, %v863_v32  ;;  %v4986_v36 = vunpack.c.l.bf16 %v5039_v63  ;;  %v6414_v1 = vpop.f32.mrf.mxu0 }
 0x119   : > { %1176 = vadd.xlane.f32.xlu1 %v1175_v3  ;;  %v991_v3 = vadd.f32 %v6256_v48, %v6142_v39  ;;  %v6419_v54 = vadd.f32 %v4987_v52, %v994_v23  ;;  %v1166_v32 = vsel %vm1117_vm2, %v6411_v42, 0.0  ;;  %v5245_v33 = vpop.f32.mrf.mxu0 }
 0x11a   : > { %1173 = vadd.xlane.f32.xlu0 %v1172_v35  ;;  %v5026_v35 = vld [vmem:[%s6134_s12 + $0x58] sm:$0xff]  }
 0x11b   : > { %8187 = vst [vmem:[#allocation12_spill] sm:$0xff] %v6419_v54  ;;  %v4935_v48 = vunpack.c.h.bf16 %v5026_v35  ;;  %v6424_v24 = vadd.f32 %v4986_v36, %v991_v3  ;;  %v4934_v63 = vunpack.c.l.bf16 %v5026_v35  ;;  %v1265_v23 = vsel %vm1117_vm2, %v6419_v54, 0.0  ;;  %v897_v31 = vpop.f32.mrf.mxu0 }
 0x11c   : > { %v882_v54 = vadd.f32 %v881_v13, %v6142_v39  ;;  %v5028_v13 = vld [vmem:[%s6134_s12 + $0x68] sm:$0xff]  }
 0x11d   : > { %1272 = vadd.xlane.f32.xlu1 %v1271_v19  ;;  %v887_v19 = vadd.f32 %v5240_v40, %v6142_v39  ;;  %8188 = vst [vmem:[#allocation13_spill] sm:$0xff] %v6424_v24  ;;  %v6431_v52 = vadd.f32 %v4935_v48, %v890_v45  ;;  %v1262_v3 = vsel %vm1117_vm2, %v6424_v24, 0.0  ;;  %v5248_v24 = vpop.f32.mrf.mxu0 }
 0x11e   : > { %1269 = vadd.xlane.f32.xlu0 %v1268_v61  ;;  %v5042_v61 = vld [vmem:[%s6134_s12 + $0xd8] sm:$0xff]  }
 0x11f   : > { %v4999_v40 = vunpack.c.h.bf16 %v5042_v61  ;;  %v6437_v36 = vadd.f32 %v4934_v63, %v887_v19  ;;  %v4998_v35 = vunpack.c.l.bf16 %v5042_v61  ;;  %v1187_v45 = vsel %vm1117_vm2, %v6431_v52, 0.0 }
 0x121   : > { %1170 = vadd.xlane.f32.xlu1 %v1169_v5  ;;  %v1015_v5 = vadd.f32 %v6278_v10, %v6142_v39  ;;  %v6443_v48 = vadd.f32 %v4999_v40, %v1018_v11  ;;  %v1184_v19 = vsel %vm1117_vm2, %v6437_v36, 0.0  ;;  %v1010_v11 = vadd.f32 %v6304_v51, %v6142_v39 }
 0x122   : > { %1167 = vadd.xlane.f32.xlu0 %v1166_v32  ;;  %v5025_v32 = vld [vmem:[%s6134_s12 + $0x50] sm:$0xff]   ;;  %v4943_v51 = vunpack.c.h.bf16 %v5028_v13 }
 0x123   : > { %8189 = vst [vmem:[#allocation14_spill] sm:$0xff] %v6443_v48  ;;  %v4931_v10 = vunpack.c.h.bf16 %v5025_v32  ;;  %v6449_v63 = vadd.f32 %v4998_v35, %v1015_v5  ;;  %v4930_v61 = vunpack.c.l.bf16 %v5025_v32  ;;  %v1283_v40 = vsel %vm1117_vm2, %v6443_v48, 0.0  ;;  %v910_v48 = vpop.f32.mrf.mxu0 }
 0x125   : > { %1266 = vadd.xlane.f32.xlu1 %v1265_v23  ;;  %v879_v23 = vadd.f32 %v6370_v47, %v6142_v39  ;;  %8190 = vst [vmem:[#allocation15_spill] sm:$0xff] %v6449_v63  ;;  %v6457_v38 = vadd.f32 %v4931_v10, %v882_v54  ;;  %v1280_v5 = vsel %vm1117_vm2, %v6449_v63, 0.0  ;;  %v4942_v54 = vunpack.c.l.bf16 %v5028_v13  ;;  %v5027_v10 = vld [vmem:[%s6134_s12 + $0x60] sm:$0xff]   ;;  %v5249_v63 = vpop.f32.mrf.mxu0 }
 0x126   : > { %1263 = vadd.xlane.f32.xlu0 %v1262_v3  ;;  %v5041_v3 = vld [vmem:[%s6134_s12 + $0xd0] sm:$0xff]   ;;  %v4939_v55 = vunpack.c.h.bf16 %v5027_v10  ;;  %v895_v13 = vadd.f32 %v6414_v1, %v6142_v39 }
 0x127   : > { %v4995_v47 = vunpack.c.h.bf16 %v5041_v3  ;;  %v6463_v35 = vadd.f32 %v4930_v61, %v879_v23  ;;  %v4994_v32 = vunpack.c.l.bf16 %v5041_v3 }
 0x129   : > { %1188 = vadd.xlane.f32.xlu1 %v1187_v45  ;;  %v1007_v45 = vadd.f32 %v6287_v20, %v6142_v39  ;;  %v1181_v20 = vsel %vm1117_vm2, %v6457_v38, 0.0  ;;  %v1178_v23 = vsel %vm1117_vm2, %v6463_v35, 0.0 }
 0x12a   : > { %1185 = vadd.xlane.f32.xlu0 %v1184_v19  ;;  %v906_v19 = vadd.f32 %v5245_v33, %v6142_v39  ;;  %v898_v33 = vadd.f32 %v897_v31, %v6142_v39 }
 0x12b   : > { %v6474_v61 = vadd.f32 %v4994_v32, %v1007_v45  ;;  %v922_v32 = vadd.f32 %v5249_v63, %v6142_v39 }
 0x12c   : > { %v6477_v3 = vadd.f32 %v4943_v51, %v906_v19  ;;  %v6491_v1 = vadd.f32 %v4939_v55, %v898_v33  ;;  %v919_v19 = vadd.f32 %v5248_v24, %v6142_v39  ;;  %v911_v24 = vadd.f32 %v910_v48, %v6142_v39 }
 0x12d   : > { %1284 = vadd.xlane.f32.xlu1 %v1283_v40  ;;  %v6470_v40 = vadd.f32 %v4995_v47, %v1010_v11  ;;  %8191 = vst [vmem:[#allocation16_spill] sm:$0xff] %v6474_v61  ;;  %v4938_v11 = vunpack.c.l.bf16 %v5027_v10  ;;  %v5030_v47 = vld [vmem:[%s6134_s12 + $0x78] sm:$0xff]   ;;  %v1274_v45 = vsel %vm1117_vm2, %v6474_v61, 0.0  ;;  %v913_v10 = vpop.f32.mrf.mxu0  ;;  %v5043_v61 = vld [vmem:[%s6134_s12 + $0xe0] sm:$0xff]   ;;  %v1023_v48 = vadd.f32 %v6323_v12, %v6142_v39 }
 0x12e   : > { %1281 = vadd.xlane.f32.xlu0 %v1280_v5  ;;  %v6481_v5 = vadd.f32 %v4942_v54, %v903_v44  ;;  %v1199_v31 = vsel %vm1117_vm2, %v6477_v3, 0.0  ;;  %v4951_v44 = vunpack.c.h.bf16 %v5030_v47  ;;  %v914_v63 = vadd.f32 %v913_v10, %v6142_v39 }
 0x12f   : > { %v6496_v54 = vadd.f32 %v4938_v11, %v895_v13  ;;  %v1031_v12 = vadd.f32 %v6314_v62, %v6142_v39  ;;  %v1039_v62 = vadd.f32 %v6357_v60, %v6142_v39 }
 0x130   : > { %v1196_v51 = vsel %vm1117_vm2, %v6481_v5, 0.0  ;;  %v6502_v33 = vadd.f32 %v4951_v44, %v922_v32  ;;  %v1026_v32 = vadd.f32 %v6339_v49, %v6142_v39 }
 0x131   : > { %1182 = vadd.xlane.f32.xlu1 %v1181_v20  ;;  %v1277_v20 = vsel %vm1117_vm2, %v6470_v40, 0.0  ;;  %v1190_v13 = vsel %vm1117_vm2, %v6496_v54, 0.0 }
 0x132   : > { %1179 = vadd.xlane.f32.xlu0 %v1178_v23  ;;  %v4950_v23 = vunpack.c.l.bf16 %v5030_v47 }
 0x134   : > { %v6507_v11 = vadd.f32 %v4950_v23, %v919_v19  ;;  %v5002_v23 = vunpack.c.l.bf16 %v5043_v61 }
 0x135   : > { %1278 = vadd.xlane.f32.xlu1 %v1277_v20  ;;  %v5029_v20 = vld [vmem:[%s6134_s12 + $0x70] sm:$0xff]  }
 0x136   : > { %1275 = vadd.xlane.f32.xlu0 %v1274_v45  ;;  %v1193_v45 = vsel %vm1117_vm2, %v6491_v1, 0.0  ;;  %v4947_v55 = vunpack.c.h.bf16 %v5029_v20  ;;  %v4946_v47 = vunpack.c.l.bf16 %v5029_v20  ;;  %v1208_v19 = vsel %vm1117_vm2, %v6507_v11, 0.0  ;;  %v5044_v20 = vld [vmem:[%s6134_s12 + $0xe8] sm:$0xff]  }
 0x138   : > { %v6514_v44 = vadd.f32 %v4947_v55, %v914_v63  ;;  %v6520_v10 = vadd.f32 %v4946_v47, %v911_v24  ;;  %v5007_v55 = vunpack.c.h.bf16 %v5044_v20  ;;  %v5006_v47 = vunpack.c.l.bf16 %v5044_v20 }
 0x139   : > { %1200 = vadd.xlane.f32.xlu1 %v1199_v31  ;;  %v1211_v31 = vsel %vm1117_vm2, %v6502_v33, 0.0 }
 0x13a   : > { %1197 = vadd.xlane.f32.xlu0 %v1196_v51  ;;  %v5003_v51 = vunpack.c.h.bf16 %v5043_v61  ;;  %v1205_v49 = vsel %vm1117_vm2, %v6514_v44, 0.0  ;;  %v1202_v24 = vsel %vm1117_vm2, %v6520_v10, 0.0  ;;  %v1041_v61 = vpop.f32.mrf.mxu1 }
 0x13c   : > { %v6527_v63 = vadd.f32 %v5003_v51, %v1026_v32  ;;  %v1042_v32 = vadd.f32 %v1041_v61, %v6142_v39 }
 0x13d   : > { %1194 = vadd.xlane.f32.xlu1 %v1193_v45  ;;  %v1034_v45 = vadd.f32 %v6331_v29, %v6142_v39 }
 0x13e   : > { %1191 = vadd.xlane.f32.xlu0 %v1190_v13  ;;  %v6533_v13 = vadd.f32 %v5002_v23, %v1023_v48  ;;  %v1289_v29 = vsel %vm1117_vm2, %v6527_v63, 0.0  ;;  %v6545_v23 = vadd.f32 %v5006_v47, %v1031_v12 }
 0x13f   : > { %v6539_v51 = vadd.f32 %v5007_v55, %v1034_v45 }
 0x140   : > { %v1286_v48 = vsel %vm1117_vm2, %v6533_v13, 0.0  ;;  %v1292_v45 = vsel %vm1117_vm2, %v6545_v23, 0.0 }
 0x141   : > { %1212 = vadd.xlane.f32.xlu1 %v1211_v31  ;;  %v5045_v31 = vld [vmem:[%s6134_s12 + $0xf0] sm:$0xff]  }
 0x142   : > { %1209 = vadd.xlane.f32.xlu0 %v1208_v19  ;;  %v5011_v19 = vunpack.c.h.bf16 %v5045_v31  ;;  %v5010_v20 = vunpack.c.l.bf16 %v5045_v31 }
 0x144   : > { %v6553_v55 = vadd.f32 %v5010_v20, %v1039_v62 }
 0x145   : > { %1206 = vadd.xlane.f32.xlu1 %v1205_v49  ;;  %v1295_v49 = vsel %vm1117_vm2, %v6539_v51, 0.0 }
 0x146   : > { %1203 = vadd.xlane.f32.xlu0 %v1202_v24  ;;  %v6549_v24 = vadd.f32 %v5011_v19, %v1042_v32  ;;  %v1298_v60 = vsel %vm1117_vm2, %v6553_v55, 0.0 }
 0x148   : > { %v1301_v39 = vsel %vm1117_vm2, %v6549_v24, 0.0 }
 0x149   : > { %1290 = vadd.xlane.f32.xlu1 %v1289_v29 }
 0x14a   : > { %1287 = vadd.xlane.f32.xlu0 %v1286_v48 }
 0x14d   : > { %1296 = vadd.xlane.f32.xlu1 %v1295_v49 }
 0x14e   : > { %1293 = vadd.xlane.f32.xlu0 %v1292_v45 }
 0x151   : > { %1302 = vadd.xlane.f32.xlu1 %v1301_v39 }
 0x152   : > { %1299 = vadd.xlane.f32.xlu0 %v1298_v60 }
 0x162   : > { %v1126_v12 = vpop.xlane.xlu1 %1125 }
 0x163   : > { %v6559_v61 = vpop.xlane.xlu0 %1221  ;;  %v1313_v47 = vmul.f32 0.03125, %v1126_v12 }
 0x165   : > { %v6562_v31 = vsub.f32 %v6150_v53, %v1313_v47 }
 0x166   : > { %v1129_v29 = vpop.xlane.xlu1 %1128 }
 0x167   : > { %8192 = vst [vmem:[#allocation17_spill] sm:$0xff] %v6562_v31  ;;  %v1314_v32 = vmul.f32 0.03125, %v1129_v29  ;;  %v1120_v19 = vpop.xlane.xlu0 %1119  ;;  %v1441_v62 = vmul.f32 %v6562_v31, %v6562_v31 }
 0x168   : > { %v1311_v48 = vmul.f32 0.03125, %v1120_v19 }
 0x169   : > { %v6567_v20 = vsub.f32 %v6163_v4, %v1314_v32  ;;  %v1509_v49 = vsel %vm1117_vm2, %v1441_v62, 0.0 }
 0x16a   : > { %v6571_v45 = vsub.f32 %v6161_v2, %v1311_v48  ;;  %v6573_v39 = vpop.xlane.xlu1 %1224  ;;  %1510 = vadd.xlane.f32.xlu0 %v1509_v49 }
 0x16b   : > { %8193 = vst [vmem:[#allocation18_spill] sm:$0xff] %v6567_v20  ;;  %v6575_v53 = vpop.xlane.xlu0 %1215  ;;  %v1442_v60 = vmul.f32 %v6567_v20, %v6567_v20 }
 0x16c   : > { %8194 = vst [vmem:[#allocation19_spill] sm:$0xff] %v6571_v45  ;;  %v1439_v12 = vmul.f32 %v6571_v45, %v6571_v45 }
 0x16d   : > { %v1512_v47 = vsel %vm1117_vm2, %v1442_v60, 0.0 }
 0x16e   : > { %v6582_v4 = vpop.xlane.xlu1 %1218  ;;  %1513 = vadd.xlane.f32.xlu1 %v1512_v47  ;;  %v1503_v29 = vsel %vm1117_vm2, %v1439_v12, 0.0 }
 0x16f   : > { %1504 = vadd.xlane.f32.xlu0 %v1503_v29  ;;  %v1123_v2 = vpop.xlane.xlu0 %1122 }
 0x170   : > { %v1312_v32 = vmul.f32 0.03125, %v1123_v2 }
 0x172   : > { %v6586_v19 = vsub.f32 %v6184_v27, %v1312_v32  ;;  %v1141_v62 = vpop.xlane.xlu1 %1140 }
 0x173   : > { %v1318_v48 = vmul.f32 0.03125, %v1141_v62  ;;  %v1138_v49 = vpop.xlane.xlu0 %1137 }
 0x174   : > { %8195 = vst [vmem:[#allocation20_spill] sm:$0xff] %v6586_v19  ;;  %v1317_v31 = vmul.f32 0.03125, %v1138_v49  ;;  %v1440_v45 = vmul.f32 %v6586_v19, %v6586_v19 }
 0x175   : > { %v6591_v60 = vsub.f32 %v6190_v37, %v1318_v48 }
 0x176   : > { %v6594_v47 = vsub.f32 %v6195_v43, %v1317_v31  ;;  %v6596_v12 = vpop.xlane.xlu1 %1236  ;;  %v1506_v29 = vsel %vm1117_vm2, %v1440_v45, 0.0 }
 0x177   : > { %8196 = vst [vmem:[#allocation21_spill] sm:$0xff] %v6591_v60  ;;  %1507 = vadd.xlane.f32.xlu1 %v1506_v29  ;;  %v6599_v27 = vpop.xlane.xlu0 %1233  ;;  %v1446_v2 = vmul.f32 %v6591_v60, %v6591_v60 }
 0x178   : > { %8197 = vst [vmem:[#allocation22_spill] sm:$0xff] %v6594_v47  ;;  %v1445_v32 = vmul.f32 %v6594_v47, %v6594_v47 }
 0x179   : > { %v1524_v62 = vsel %vm1117_vm2, %v1446_v2, 0.0 }
 0x17a   : > { %v1135_v37 = vpop.xlane.xlu1 %1134  ;;  %v1521_v48 = vsel %vm1117_vm2, %v1445_v32, 0.0 }
 0x17b   : > { %v1316_v43 = vmul.f32 0.03125, %v1135_v37  ;;  %1525 = vadd.xlane.f32.xlu1 %v1524_v62  ;;  %1522 = vadd.xlane.f32.xlu0 %v1521_v48  ;;  %v1132_v31 = vpop.xlane.xlu0 %1131 }
 0x17c   : > { %v1315_v49 = vmul.f32 0.03125, %v1132_v31 }
 0x17d   : > { %v6608_v45 = vsub.f32 %v6214_v0, %v1316_v43 }
 0x17e   : > { %v6611_v29 = vsub.f32 %v6221_v7, %v1315_v49  ;;  %v6613_v60 = vpop.xlane.xlu1 %1230 }
 0x17f   : > { %8198 = vst [vmem:[#allocation23_spill] sm:$0xff] %v6608_v45  ;;  %v6615_v19 = vpop.xlane.xlu0 %1227  ;;  %v1444_v2 = vmul.f32 %v6608_v45, %v6608_v45 }
 0x180   : > { %8199 = vst [vmem:[#allocation24_spill] sm:$0xff] %v6611_v29  ;;  %v1443_v32 = vmul.f32 %v6611_v29, %v6611_v29 }
 0x181   : > { %v1518_v62 = vsel %vm1117_vm2, %v1444_v2, 0.0 }
 0x182   : > { %v1153_v37 = vpop.xlane.xlu1 %1152  ;;  %1519 = vadd.xlane.f32.xlu1 %v1518_v62  ;;  %v1515_v0 = vsel %vm1117_vm2, %v1443_v32, 0.0 }
 0x183   : > { %v1322_v48 = vmul.f32 0.03125, %v1153_v37  ;;  %1516 = vadd.xlane.f32.xlu0 %v1515_v0  ;;  %v1150_v7 = vpop.xlane.xlu0 %1149 }
 0x184   : > { %v1321_v43 = vmul.f32 0.03125, %v1150_v7 }
 0x185   : > { %v6624_v31 = vsub.f32 %v6244_v30, %v1322_v48 }
 0x186   : > { %v6627_v49 = vsub.f32 %v6251_v41, %v1321_v43  ;;  %v6629_v45 = vpop.xlane.xlu1 %1248 }
 0x187   : > { %8200 = vst [vmem:[#allocation25_spill] sm:$0xff] %v6624_v31  ;;  %v6631_v47 = vpop.xlane.xlu0 %1245  ;;  %v1450_v2 = vmul.f32 %v6624_v31, %v6624_v31 }
 0x188   : > { %8201 = vst [vmem:[#allocation26_spill] sm:$0xff] %v6627_v49  ;;  %v1449_v32 = vmul.f32 %v6627_v49, %v6627_v49 }
 0x189   : > { %v1536_v62 = vsel %vm1117_vm2, %v1450_v2, 0.0 }
 0x18a   : > { %v1147_v37 = vpop.xlane.xlu1 %1146  ;;  %1537 = vadd.xlane.f32.xlu1 %v1536_v62  ;;  %v1533_v30 = vsel %vm1117_vm2, %v1449_v32, 0.0 }
 0x18b   : > { %v1320_v0 = vmul.f32 0.03125, %v1147_v37  ;;  %1534 = vadd.xlane.f32.xlu0 %v1533_v30  ;;  %v1144_v41 = vpop.xlane.xlu0 %1143 }
 0x18c   : > { %v1319_v48 = vmul.f32 0.03125, %v1144_v41  ;;  %v5599_v41 = vld [vmem:[%s8129_s4 + $0x8] sm:$0xff]  }
 0x18d   : > { %v6640_v7 = vsub.f32 %v6276_v8, %v1320_v0  ;;  %v5598_v0 = vld [vmem:[%s8130_s5 + $0x8] sm:$0xff]   ;;  %5350 = vmatprep.subr.bf16.mxu0 %v5599_v41 }
 0x18e   : > { %v6643_v43 = vsub.f32 %v6284_v17, %v1319_v48  ;;  %v6645_v31 = vpop.xlane.xlu1 %1242  ;;  %5282 = vmatprep.subr.bf16.mxu1 %v5598_v0  ;;  %5351 = vmatpush3.bf16.msra.mxu0 %v5599_v41 }
 0x18f   : > { %8202 = vst [vmem:[#allocation27_spill] sm:$0xff] %v6640_v7  ;;  %v6647_v29 = vpop.xlane.xlu0 %1239  ;;  %v1448_v2 = vmul.f32 %v6640_v7, %v6640_v7  ;;  %5283 = vmatpush3.bf16.msra.mxu1 %v5598_v0 }
 0x190   : > { %8203 = vst [vmem:[#allocation28_spill] sm:$0xff] %v6643_v43  ;;  %v1447_v32 = vmul.f32 %v6643_v43, %v6643_v43 }
 0x191   : > { %v1530_v62 = vsel %vm1117_vm2, %v1448_v2, 0.0 }
 0x192   : > { %v1165_v37 = vpop.xlane.xlu1 %1164  ;;  %1531 = vadd.xlane.f32.xlu1 %v1530_v62  ;;  %v1527_v8 = vsel %vm1117_vm2, %v1447_v32, 0.0 }
 0x193   : > { %v1326_v30 = vmul.f32 0.03125, %v1165_v37  ;;  %1528 = vadd.xlane.f32.xlu0 %v1527_v8  ;;  %v1162_v17 = vpop.xlane.xlu0 %1161  ;;  %v5600_v8 = vld [vmem:[%s8130_s5] sm:$0xff]  }
 0x194   : > { %v1325_v48 = vmul.f32 0.03125, %v1162_v17  ;;  %5284 = vmatprep.subr.bf16.mxu1 %v5600_v8 }
 0x195   : > { %v6662_v43 = vsub.f32 %v6312_v58, %v1326_v30  ;;  %v5601_v58 = vld [vmem:[%s8129_s4] sm:$0xff]   ;;  %5285 = vmatpush3.bf16.msra.mxu1 %v5600_v8 }
 0x196   : > { %v6665_v2 = vsub.f32 %v6320_v6, %v1325_v48  ;;  %v6667_v32 = vpop.xlane.xlu1 %1260  ;;  %5352 = vmatprep.subr.bf16.mxu0 %v5601_v58 }
 0x197   : > { %8204 = vst [vmem:[#allocation29_spill] sm:$0xff] %v6662_v43  ;;  %v6669_v62 = vpop.xlane.xlu0 %1257  ;;  %v1454_v37 = vmul.f32 %v6662_v43, %v6662_v43  ;;  %5353 = vmatpush3.bf16.msra.mxu0 %v5601_v58 }
 0x198   : > { %8205 = vst [vmem:[#allocation30_spill] sm:$0xff] %v6665_v2  ;;  %v1453_v6 = vmul.f32 %v6665_v2, %v6665_v2 }
 0x199   : > { %v1548_v30 = vsel %vm1117_vm2, %v1454_v37, 0.0 }
 0x19a   : > { %v1159_v17 = vpop.xlane.xlu1 %1158  ;;  %1549 = vadd.xlane.f32.xlu1 %v1548_v30  ;;  %v1545_v0 = vsel %vm1117_vm2, %v1453_v6, 0.0 }
 0x19b   : > { %v1324_v41 = vmul.f32 0.03125, %v1159_v17  ;;  %1546 = vadd.xlane.f32.xlu0 %v1545_v0  ;;  %v1156_v48 = vpop.xlane.xlu0 %1155 }
 0x19c   : > { %v1323_v43 = vmul.f32 0.03125, %v1156_v48 }
 0x19d   : > { %v6684_v7 = vsub.f32 %v6345_v34, %v1324_v41 }
 0x19e   : > { %v6687_v49 = vsub.f32 %v6352_v18, %v1323_v43  ;;  %v6689_v2 = vpop.xlane.xlu1 %1254 }
 0x19f   : > { %8206 = vst [vmem:[#allocation31_spill] sm:$0xff] %v6684_v7  ;;  %v6691_v37 = vpop.xlane.xlu0 %1251  ;;  %v1452_v30 = vmul.f32 %v6684_v7, %v6684_v7 }
 0x1a0   : > { %8207 = vst [vmem:[#allocation32_spill] sm:$0xff] %v6687_v49  ;;  %v1451_v8 = vmul.f32 %v6687_v49, %v6687_v49 }
 0x1a1   : > { %v1542_v6 = vsel %vm1117_vm2, %v1452_v30, 0.0 }
 0x1a2   : > { %v1177_v58 = vpop.xlane.xlu1 %1176  ;;  %1543 = vadd.xlane.f32.xlu1 %v1542_v6  ;;  %v1539_v34 = vsel %vm1117_vm2, %v1451_v8, 0.0 }
 0x1a3   : > { %v1330_v17 = vmul.f32 0.03125, %v1177_v58  ;;  %1540 = vadd.xlane.f32.xlu0 %v1539_v34  ;;  %v1174_v18 = vpop.xlane.xlu0 %1173 }
 0x1a4   : > { %v1329_v43 = vmul.f32 0.03125, %v1174_v18 }
 0x1a5   : > { %v6700_v0 = vsub.f32 %v6380_v59, %v1330_v17 }
 0x1a6   : > { %v6703_v41 = vsub.f32 %v6386_v46, %v1329_v43  ;;  %v6705_v48 = vpop.xlane.xlu1 %1272 }
 0x1a7   : > { %8208 = vst [vmem:[#allocation33_spill] sm:$0xff] %v6700_v0  ;;  %v6707_v7 = vpop.xlane.xlu0 %1269  ;;  %v1458_v30 = vmul.f32 %v6700_v0, %v6700_v0 }
 0x1a8   : > { %8209 = vst [vmem:[#allocation34_spill] sm:$0xff] %v6703_v41  ;;  %v1457_v8 = vmul.f32 %v6703_v41, %v6703_v41 }
 0x1a9   : > { %v1560_v6 = vsel %vm1117_vm2, %v1458_v30, 0.0 }
 0x1aa   : > { %v1171_v58 = vpop.xlane.xlu1 %1170  ;;  %1561 = vadd.xlane.f32.xlu1 %v1560_v6  ;;  %v1557_v59 = vsel %vm1117_vm2, %v1457_v8, 0.0 }
 0x1ab   : > { %v1328_v34 = vmul.f32 0.03125, %v1171_v58  ;;  %1558 = vadd.xlane.f32.xlu0 %v1557_v59  ;;  %v1168_v46 = vpop.xlane.xlu0 %1167 }
 0x1ac   : > { %v1327_v17 = vmul.f32 0.03125, %v1168_v46 }
 0x1ad   : > { %v6716_v18 = vsub.f32 %v6405_v15, %v1328_v34 }
 0x1ae   : > { %v6719_v43 = vsub.f32 %v6411_v42, %v1327_v17  ;;  %v6721_v0 = vpop.xlane.xlu1 %1266 }
 0x1af   : > { %8210 = vst [vmem:[#allocation35_spill] sm:$0xff] %v6716_v18  ;;  %v6723_v49 = vpop.xlane.xlu0 %1263  ;;  %v1456_v30 = vmul.f32 %v6716_v18, %v6716_v18 }
 0x1b0   : > { %8211 = vst [vmem:[#allocation36_spill] sm:$0xff] %v6719_v43  ;;  %v1455_v8 = vmul.f32 %v6719_v43, %v6719_v43 }
 0x1b1   : > { %v1554_v6 = vsel %vm1117_vm2, %v1456_v30, 0.0 }
 0x1b2   : > { %v1189_v58 = vpop.xlane.xlu1 %1188  ;;  %1555 = vadd.xlane.f32.xlu1 %v1554_v6  ;;  %v1551_v15 = vsel %vm1117_vm2, %v1455_v8, 0.0 }
 0x1b3   : > { %v1334_v59 = vmul.f32 0.03125, %v1189_v58  ;;  %1552 = vadd.xlane.f32.xlu0 %v1551_v15  ;;  %v1186_v42 = vpop.xlane.xlu0 %1185  ;;  %v5046_v15 = vld [vmem:[%s6134_s12 + $0xf8] sm:$0xff]  }
 0x1b4   : > { %v1333_v34 = vmul.f32 0.03125, %v1186_v42  ;;  %v5015_v41 = vunpack.c.h.bf16 %v5046_v15 }
 0x1b5   : > { %v6732_v46 = vsub.f32 %v6431_v52, %v1334_v59 }
 0x1b6   : > { %v6735_v17 = vsub.f32 %v6437_v36, %v1333_v34  ;;  %v6737_v18 = vpop.xlane.xlu1 %1284 }
 0x1b7   : > { %8212 = vst [vmem:[#allocation37_spill] sm:$0xff] %v6732_v46  ;;  %v6739_v43 = vpop.xlane.xlu0 %1281  ;;  %v1462_v30 = vmul.f32 %v6732_v46, %v6732_v46 }
 0x1b8   : > { %8213 = vst [vmem:[#allocation38_spill] sm:$0xff] %v6735_v17  ;;  %v1461_v8 = vmul.f32 %v6735_v17, %v6735_v17  ;;  %v5014_v17 = vunpack.c.l.bf16 %v5046_v15 }
 0x1b9   : > { %v1572_v6 = vsel %vm1117_vm2, %v1462_v30, 0.0 }
 0x1ba   : > { %v1183_v58 = vpop.xlane.xlu1 %1182  ;;  %1573 = vadd.xlane.f32.xlu1 %v1572_v6  ;;  %v1569_v52 = vsel %vm1117_vm2, %v1461_v8, 0.0 }
 0x1bb   : > { %v1332_v59 = vmul.f32 0.03125, %v1183_v58  ;;  %1570 = vadd.xlane.f32.xlu0 %v1569_v52  ;;  %v1180_v36 = vpop.xlane.xlu0 %1179 }
 0x1bc   : > { %v1331_v42 = vmul.f32 0.03125, %v1180_v36 }
 0x1bd   : > { %v6749_v34 = vsub.f32 %v6457_v38, %v1332_v59  ;;  %v6764_v38 = vadd.f32 %v5015_v41, %v6374_v25  ;;  %v6768_v59 = vadd.f32 %v5014_v17, %v6355_v26 }
 0x1be   : > { %v6752_v46 = vsub.f32 %v6463_v35, %v1331_v42  ;;  %v6754_v20 = vpop.xlane.xlu1 %1278 }
 0x1bf   : > { %8214 = vst [vmem:[#allocation39_spill] sm:$0xff] %v6749_v34  ;;  %v6756_v30 = vpop.xlane.xlu0 %1275  ;;  %v1460_v8 = vmul.f32 %v6749_v34, %v6749_v34  ;;  %v1307_v42 = vsel %vm1117_vm2, %v6764_v38, 0.0  ;;  %v1304_v25 = vsel %vm1117_vm2, %v6768_v59, 0.0 }
 0x1c0   : > { %8215 = vst [vmem:[#allocation40_spill] sm:$0xff] %v6752_v46  ;;  %v1459_v6 = vmul.f32 %v6752_v46, %v6752_v46 }
 0x1c1   : > { %v1566_v58 = vsel %vm1117_vm2, %v1460_v8, 0.0 }
 0x1c2   : > { %v1201_v52 = vpop.xlane.xlu1 %1200  ;;  %1567 = vadd.xlane.f32.xlu1 %v1566_v58  ;;  %v1563_v35 = vsel %vm1117_vm2, %v1459_v6, 0.0 }
 0x1c3   : > { %1564 = vadd.xlane.f32.xlu0 %v1563_v35  ;;  %v1198_v15 = vpop.xlane.xlu0 %1197  ;;  %v1338_v36 = vmul.f32 0.03125, %v1201_v52 }
 0x1c4   : > { %v1337_v34 = vmul.f32 0.03125, %v1198_v15 }
 0x1c5   : > { %v6775_v6 = vsub.f32 %v6477_v3, %v1338_v36 }
 0x1c6   : > { %v1195_v46 = vpop.xlane.xlu1 %1194  ;;  %1308 = vadd.xlane.f32.xlu1 %v1307_v42  ;;  %v6781_v17 = vsub.f32 %v6481_v5, %v1337_v34 }
 0x1c7   : > { %v1336_v41 = vmul.f32 0.03125, %v1195_v46  ;;  %1305 = vadd.xlane.f32.xlu0 %v1304_v25  ;;  %v1192_v8 = vpop.xlane.xlu0 %1191 }
 0x1c8   : > { %v1335_v58 = vmul.f32 0.03125, %v1192_v8  ;;  %v1465_v34 = vmul.f32 %v6781_v17, %v6781_v17 }
 0x1c9   : > { %v6778_v26 = vsub.f32 %v6491_v1, %v1336_v41  ;;  %v1466_v1 = vmul.f32 %v6775_v6, %v6775_v6 }
 0x1ca   : > { %v6784_v52 = vsub.f32 %v6496_v54, %v1335_v58  ;;  %v1213_v35 = vpop.xlane.xlu1 %1212 }
 0x1cb   : > { %v1210_v15 = vpop.xlane.xlu0 %1209  ;;  %v1464_v46 = vmul.f32 %v6778_v26, %v6778_v26  ;;  %v1342_v25 = vmul.f32 0.03125, %v1213_v35 }
 0x1cc   : > { %8216 = vst [vmem:[#allocation41_spill] sm:$0xff] %v6784_v52  ;;  %v1463_v42 = vmul.f32 %v6784_v52, %v6784_v52  ;;  %v1341_v36 = vmul.f32 0.03125, %v1210_v15  ;;  %v1344_v52 = vmul.f32 0.03125, %v6582_v4  ;;  %v1584_v15 = vsel %vm1117_vm2, %v1466_v1, 0.0 }
 0x1cd   : > { %v1578_v3 = vsel %vm1117_vm2, %v1464_v46, 0.0  ;;  %v6798_v35 = vsub.f32 %v6502_v33, %v1342_v25  ;;  %v1346_v4 = vmul.f32 0.03125, %v6573_v39  ;;  %v1345_v25 = vmul.f32 0.03125, %v6559_v61 }
 0x1ce   : > { %v1207_v5 = vpop.xlane.xlu1 %1206  ;;  %1579 = vadd.xlane.f32.xlu1 %v1578_v3  ;;  %v1575_v54 = vsel %vm1117_vm2, %v1463_v42, 0.0  ;;  %v1343_v3 = vmul.f32 0.03125, %v6575_v53  ;;  %v6806_v42 = vsub.f32 %v6507_v11, %v1341_v36  ;;  %v6818_v53 = vsub.f32 %v6179_v22, %v1344_v52 }
 0x1cf   : > { %v1340_v41 = vmul.f32 0.03125, %v1207_v5  ;;  %1576 = vadd.xlane.f32.xlu0 %v1575_v54  ;;  %v1204_v8 = vpop.xlane.xlu0 %1203  ;;  %v1581_v54 = vsel %vm1117_vm2, %v1465_v34, 0.0  ;;  %v6831_v22 = vsub.f32 %v6168_v9, %v1346_v4  ;;  %v1348_v39 = vmul.f32 0.03125, %v6613_v60 }
 0x1d0   : > { %v1339_v58 = vmul.f32 0.03125, %v1204_v8  ;;  %v6825_v1 = vsub.f32 %v6173_v14, %v1343_v3  ;;  %v1469_v34 = vmul.f32 %v6806_v42, %v6806_v42  ;;  %v1472_v61 = vmul.f32 %v6818_v53, %v6818_v53 }
 0x1d1   : > { %v6801_v46 = vsub.f32 %v6514_v44, %v1340_v41  ;;  %v6838_v14 = vsub.f32 %v6152_v56, %v1345_v25  ;;  %v1347_v41 = vmul.f32 0.03125, %v6615_v19  ;;  %v1350_v9 = vmul.f32 0.03125, %v6596_v12 }
 0x1d2   : > { %v6809_v5 = vsub.f32 %v6520_v10, %v1339_v58  ;;  %1585 = vadd.xlane.f32.xlu1 %v1584_v15  ;;  %v1470_v10 = vmul.f32 %v6798_v35, %v6798_v35  ;;  %v1593_v8 = vsel %vm1117_vm2, %v1469_v34, 0.0  ;;  %v1471_v58 = vmul.f32 %v6825_v1, %v6825_v1  ;;  %v8217_v34 = vld [vmem:[#allocation5_spill] sm:$0xff] }
 0x1d3   : > { %1582 = vadd.xlane.f32.xlu0 %v1581_v54  ;;  %v1468_v33 = vmul.f32 %v6801_v46, %v6801_v46  ;;  %v6846_v60 = vsub.f32 %v6229_v16, %v1348_v39  ;;  %v1602_v15 = vsel %vm1117_vm2, %v1472_v61, 0.0  ;;  %v1474_v56 = vmul.f32 %v6831_v22, %v6831_v22 }
 0x1d4   : > { %v1467_v44 = vmul.f32 %v6809_v5, %v6809_v5  ;;  %v1596_v52 = vsel %vm1117_vm2, %v1470_v10, 0.0  ;;  %v1349_v3 = vmul.f32 0.03125, %v6599_v27  ;;  %v6853_v19 = vsub.f32 %v6236_v21, %v1347_v41 }
 0x1d5   : > { %v1590_v11 = vsel %vm1117_vm2, %v1468_v33, 0.0  ;;  %v1599_v54 = vsel %vm1117_vm2, %v1471_v58, 0.0  ;;  %v1473_v33 = vmul.f32 %v6838_v14, %v6838_v14  ;;  %v6859_v16 = vsub.f32 %v6203_v50, %v1350_v9  ;;  %v6872_v50 = vpop.xlane.xlu0 %1287 }
 0x1d6   : > { %1591 = vadd.xlane.f32.xlu1 %v1590_v11  ;;  %v1587_v36 = vsel %vm1117_vm2, %v1467_v44, 0.0  ;;  %v1352_v12 = vmul.f32 0.03125, %v6645_v31  ;;  %v1608_v44 = vsel %vm1117_vm2, %v1474_v56, 0.0  ;;  %v1476_v27 = vmul.f32 %v6846_v60, %v6846_v60 }
 0x1d7   : > { %1588 = vadd.xlane.f32.xlu0 %v1587_v36  ;;  %v6866_v21 = vsub.f32 %v6208_v57, %v1349_v3  ;;  %v1351_v4 = vmul.f32 0.03125, %v6647_v29  ;;  %v1605_v11 = vsel %vm1117_vm2, %v1473_v33, 0.0  ;;  %v1475_v10 = vmul.f32 %v6853_v19, %v6853_v19 }
 0x1d8   : > { %v1354_v31 = vmul.f32 0.03125, %v6629_v45  ;;  %v6876_v25 = vsub.f32 %v6294_v28, %v1352_v12  ;;  %v1614_v36 = vsel %vm1117_vm2, %v1476_v27, 0.0  ;;  %v1478_v57 = vmul.f32 %v6859_v16, %v6859_v16  ;;  %v6888_v45 = vpop.xlane.xlu1 %1290  ;;  %v8218_v28 = vld [vmem:[#allocation3_spill] sm:$0xff]  ;;  %v8220_v12 = vld [vmem:[#allocation8_spill] sm:$0xff] }
 0x1d9   : > { %v1353_v29 = vmul.f32 0.03125, %v6631_v47  ;;  %v6883_v39 = vsub.f32 %v8217_v34, %v1351_v4  ;;  %v1477_v61 = vmul.f32 %v6866_v21, %v6866_v21  ;;  %v6894_v58 = vpop.xlane.xlu0 %1293  ;;  %v1355_v3 = vmul.f32 0.03125, %v6691_v37 }
 0x1da   : > { %1597 = vadd.xlane.f32.xlu1 %v1596_v52  ;;  %v1611_v52 = vsel %vm1117_vm2, %v1475_v10, 0.0  ;;  %v6891_v41 = vsub.f32 %v8218_v28, %v1354_v31  ;;  %v1620_v47 = vsel %vm1117_vm2, %v1478_v57, 0.0  ;;  %v1480_v9 = vmul.f32 %v6876_v25, %v6876_v25  ;;  %v8221_v10 = vld [vmem:[#allocation9_spill] sm:$0xff]  ;;  %v8223_v28 = vld [vmem:[#allocation7_spill] sm:$0xff] }
 0x1db   : > { %1594 = vadd.xlane.f32.xlu0 %v1593_v8  ;;  %v1356_v8 = vmul.f32 0.03125, %v6689_v2  ;;  %v1479_v33 = vmul.f32 %v6883_v39, %v6883_v39  ;;  %v1358_v2 = vmul.f32 0.03125, %v6667_v32  ;;  %v1357_v37 = vmul.f32 0.03125, %v6669_v62 }
 0x1dc   : > { %v6910_v27 = vpop.xlane.xlu1 %1296  ;;  %v1626_v4 = vsel %vm1117_vm2, %v1480_v9, 0.0  ;;  %v6917_v31 = vsub.f32 %v8221_v10, %v1355_v3 }
 0x1dd   : > { %v6922_v57 = vpop.xlane.xlu0 %1299 }
 0x1de   : > { %1603 = vadd.xlane.f32.xlu1 %v1602_v15  ;;  %v8219_v15 = vld [vmem:[#allocation4_spill] sm:$0xff] }
 0x1df   : > { %1600 = vadd.xlane.f32.xlu0 %v1599_v54  ;;  %v6900_v56 = vsub.f32 %v8219_v15, %v1353_v29  ;;  %v1617_v54 = vsel %vm1117_vm2, %v1477_v61, 0.0  ;;  %v8222_v29 = vld [vmem:[#allocation6_spill] sm:$0xff]  ;;  %v1483_v15 = vmul.f32 %v6917_v31, %v6917_v31 }
 0x1e0   : > { %v6925_v34 = vsub.f32 %v8222_v29, %v1358_v2  ;;  %v6938_v3 = vpop.xlane.xlu1 %1302  ;;  %v1361_v2 = vmul.f32 0.03125, %v6707_v7 }
 0x1e1   : > { %v1481_v32 = vmul.f32 %v6900_v56, %v6900_v56  ;;  %v1635_v10 = vsel %vm1117_vm2, %v1483_v15, 0.0 }
 0x1e2   : > { %1609 = vadd.xlane.f32.xlu1 %v1608_v44  ;;  %v6908_v44 = vsub.f32 %v8220_v12, %v1356_v8  ;;  %v6932_v8 = vsub.f32 %v8223_v28, %v1357_v37  ;;  %v8224_v12 = vld [vmem:[#allocation12_spill] sm:$0xff]  ;;  %v8226_v28 = vld [vmem:[#allocation10_spill] sm:$0xff] }
 0x1e3   : > { %1606 = vadd.xlane.f32.xlu0 %v1605_v11  ;;  %v1482_v11 = vmul.f32 %v6891_v41, %v6891_v41  ;;  %v1629_v9 = vsel %vm1117_vm2, %v1481_v32, 0.0 }
 0x1e4   : > { %v1484_v62 = vmul.f32 %v6908_v44, %v6908_v44 }
 0x1e5   : > { %v1632_v61 = vsel %vm1117_vm2, %v1482_v11, 0.0  ;;  %v8225_v11 = vld [vmem:[#allocation13_spill] sm:$0xff] }
 0x1e6   : > { %1615 = vadd.xlane.f32.xlu1 %v1614_v36  ;;  %v1623_v36 = vsel %vm1117_vm2, %v1479_v33, 0.0  ;;  %v1362_v33 = vmul.f32 0.03125, %v6705_v48  ;;  %v1364_v48 = vmul.f32 0.03125, %v6754_v20 }
 0x1e7   : > { %1612 = vadd.xlane.f32.xlu0 %v1611_v52  ;;  %v1360_v52 = vmul.f32 0.03125, %v6721_v0 }
 0x1ea   : > { %1621 = vadd.xlane.f32.xlu1 %v1620_v47  ;;  %v1359_v47 = vmul.f32 0.03125, %v6723_v49  ;;  %v1638_v49 = vsel %vm1117_vm2, %v1484_v62, 0.0  ;;  %v6957_v62 = vsub.f32 %v8226_v28, %v1362_v33  ;;  %v1367_v28 = vmul.f32 0.03125, %v6872_v50 }
 0x1eb   : > { %1618 = vadd.xlane.f32.xlu0 %v1617_v54  ;;  %v1486_v54 = vmul.f32 %v6925_v34, %v6925_v34 }
 0x1ec   : > { %v6949_v37 = vsub.f32 %v8225_v11, %v1359_v47  ;;  %v8227_v47 = vld [vmem:[#allocation11_spill] sm:$0xff] }
 0x1ee   : > { %1627 = vadd.xlane.f32.xlu1 %v1626_v4  ;;  %v6945_v4 = vsub.f32 %v8224_v12, %v1360_v52  ;;  %v1644_v52 = vsel %vm1117_vm2, %v1486_v54, 0.0  ;;  %v1366_v54 = vmul.f32 0.03125, %v6737_v18 }
 0x1ef   : > { %1624 = vadd.xlane.f32.xlu0 %v1623_v36  ;;  %v1485_v36 = vmul.f32 %v6932_v8, %v6932_v8 }
 0x1f0   : > { %v1488_v15 = vmul.f32 %v6945_v4, %v6945_v4 }
 0x1f1   : > { %v1641_v20 = vsel %vm1117_vm2, %v1485_v36, 0.0  ;;  %v1365_v36 = vmul.f32 0.03125, %v6739_v43 }
 0x1f2   : > { %1633 = vadd.xlane.f32.xlu1 %v1632_v61 }
 0x1f3   : > { %1630 = vadd.xlane.f32.xlu0 %v1629_v9  ;;  %v1511_v0 = vpop.xlane.xlu0 %1510  ;;  %v6960_v9 = vsub.f32 %v8227_v47, %v1361_v2  ;;  %v6970_v2 = vsub.f32 %v6470_v40, %v1364_v48  ;;  %v8229_v40 = vld [vmem:[#allocation14_spill] sm:$0xff] }
 0x1f4   : > { %v1697_v29 = vmul.f32 0.03125, %v1511_v0  ;;  %v1487_v0 = vmul.f32 %v6949_v37, %v6949_v37  ;;  %v6983_v48 = vsub.f32 %v8229_v40, %v1366_v54  ;;  %v7000_v54 = vsub.f32 %v6533_v13, %v1367_v28 }
 0x1f5   : > { %v1492_v43 = vmul.f32 %v6970_v2, %v6970_v2 }
 0x1f6   : > { %1639 = vadd.xlane.f32.xlu1 %v1638_v49  ;;  %v1363_v49 = vmul.f32 0.03125, %v6756_v30  ;;  %v1490_v30 = vmul.f32 %v6957_v62, %v6957_v62  ;;  %v1647_v18 = vsel %vm1117_vm2, %v1487_v0, 0.0 }
 0x1f7   : > { %1636 = vadd.xlane.f32.xlu0 %v1635_v10  ;;  %v1514_v32 = vpop.xlane.xlu1 %1513  ;;  %v1761_v10 = vadd.f32 1e-05, %v1697_v29  ;;  %v1368_v29 = vmul.f32 0.03125, %v6888_v45 }
 0x1f8   : > { %v1698_v7 = vmul.f32 0.03125, %v1514_v32  ;;  %v1505_v61 = vpop.xlane.xlu0 %1504  ;;  %v1650_v32 = vsel %vm1117_vm2, %v1488_v15, 0.0  ;;  %v1656_v15 = vsel %vm1117_vm2, %v1490_v30, 0.0  ;;  %v1494_v30 = vmul.f32 %v6983_v48, %v6983_v48 }
 0x1f9   : > { %v1695_v12 = vmul.f32 0.03125, %v1505_v61  ;;  %v8228_v61 = vld [vmem:[#allocation16_spill] sm:$0xff]  ;;  %v6997_v50 = vsub.f32 %v6527_v63, %v1368_v29 }
 0x1fa   : > { %v1762_v11 = vadd.f32 1e-05, %v1698_v7  ;;  %1645 = vadd.xlane.f32.xlu1 %v1644_v52  ;;  %v1489_v7 = vmul.f32 %v6960_v9, %v6960_v9  ;;  %v6979_v52 = vsub.f32 %v8228_v61, %v1363_v49  ;;  %v8230_v49 = vld [vmem:[#allocation15_spill] sm:$0xff]  ;;  %v1668_v28 = vsel %vm1117_vm2, %v1494_v30, 0.0 }
 0x1fb   : > { %v1759_v33 = vadd.f32 1e-05, %v1695_v12  ;;  %1642 = vadd.xlane.f32.xlu0 %v1641_v20 }
 0x1fc   : > { %5606 = vrsqrt.f32 %v1762_v11  ;;  %v6991_v11 = vsub.f32 %v8230_v49, %v1365_v36  ;;  %v1653_v20 = vsel %vm1117_vm2, %v1489_v7, 0.0  ;;  %v1491_v0 = vmul.f32 %v6979_v52, %v6979_v52 }
 0x1fd   : > { %5608 = vrsqrt.f32 %v1759_v33  ;;  %v1370_v7 = vmul.f32 0.03125, %v6910_v27 }
 0x1fe   : > { %1651 = vadd.xlane.f32.xlu1 %v1650_v32  ;;  %5610 = vrsqrt.f32 %v1761_v10  ;;  %v1662_v32 = vsel %vm1117_vm2, %v1492_v43, 0.0  ;;  %v1659_v63 = vsel %vm1117_vm2, %v1491_v0, 0.0  ;;  %v1493_v13 = vmul.f32 %v6991_v11, %v6991_v11 }
 0x1ff   : > { %1648 = vadd.xlane.f32.xlu0 %v1647_v18  ;;  %v1369_v18 = vmul.f32 0.03125, %v6894_v58  ;;  %v7014_v27 = vsub.f32 %v6539_v51, %v1370_v7  ;;  %v1372_v43 = vmul.f32 0.03125, %v6938_v3  ;;  %v1495_v58 = vmul.f32 %v7000_v54, %v7000_v54 }
 0x200   : > { %v1508_v47 = vpop.xlane.xlu1 %1507  ;;  %v1665_v49 = vsel %vm1117_vm2, %v1493_v13, 0.0 }
 0x201   : > { %v1696_v12 = vmul.f32 0.03125, %v1508_v47  ;;  %v1496_v47 = vmul.f32 %v6997_v50, %v6997_v50 }
 0x202   : > { %1657 = vadd.xlane.f32.xlu1 %v1656_v15  ;;  %v1371_v15 = vmul.f32 0.03125, %v6922_v57  ;;  %v1671_v57 = vsel %vm1117_vm2, %v1495_v58, 0.0 }
 0x203   : > { %v1760_v45 = vadd.f32 1e-05, %v1696_v12  ;;  %1654 = vadd.xlane.f32.xlu0 %v1653_v20  ;;  %v7020_v12 = vsub.f32 %v6545_v23, %v1369_v18  ;;  %v7027_v23 = vsub.f32 %v6549_v24, %v1372_v43  ;;  %v8232_v18 = vld [vmem:[#allocation18_spill] sm:$0xff]  ;;  %v8233_v24 = vld [vmem:[#allocation19_spill] sm:$0xff] }
 0x204   : > { %v1526_v33 = vpop.xlane.xlu1 %1525  ;;  %v1523_v10 = vpop.xlane.xlu0 %1522 }
 0x205   : > { %5612 = vrsqrt.f32 %v1760_v45  ;;  %v1702_v36 = vmul.f32 0.03125, %v1526_v33  ;;  %v1701_v61 = vmul.f32 0.03125, %v1523_v10  ;;  %v8231_v45 = vld [vmem:[#allocation2_spill] sm:$0xff] }
 0x206   : > { %1663 = vadd.xlane.f32.xlu1 %v1662_v32  ;;  %v8176_v33 = vsub.s32 1, %v8231_v45  ;;  %v1674_v32 = vsel %vm1117_vm2, %v1496_v47, 0.0  ;;  %v5990_v47 = vld [vmem:[%s8128_s3] sm:$0xff] }
 0x207   : > { %v1766_v40 = vadd.f32 1e-05, %v1702_v36  ;;  %v1765_v29 = vadd.f32 1e-05, %v1701_v61  ;;  %1660 = vadd.xlane.f32.xlu0 %v1659_v63  ;;  %v1498_v36 = vmul.f32 %v7014_v27, %v7014_v27  ;;  %v7033_v61 = vsub.f32 %v6553_v55, %v1371_v15  ;;  %v8234_v55 = vld [vmem:[#allocation17_spill] sm:$0xff] }
 0x208   : > { %v7044_v43 = vrot.slane %v5990_v47, %v8176_v33  ;;  %v2021_v15 = vsub.s32 2, %v8231_v45 }
 0x209   : > { %5614 = vrsqrt.f32 %v1766_v40  ;;  %v5607_v20 = vpop.eup %5606  ;;  %v1497_v40 = vmul.f32 %v7020_v12, %v7020_v12 }
 0x20a   : > { %5616 = vrsqrt.f32 %v1765_v29  ;;  %1669 = vadd.xlane.f32.xlu1 %v1668_v28  ;;  %v5609_v51 = vpop.eup %5608  ;;  %v1890_v63 = vmul.f32 %v5607_v20, %v8232_v18  ;;  %v1500_v20 = vmul.f32 %v7027_v23, %v7027_v23 }
 0x20b   : > { %1666 = vadd.xlane.f32.xlu0 %v1665_v49  ;;  %v1520_v0 = vpop.xlane.xlu1 %1519  ;;  %v5611_v30 = vpop.eup %5610  ;;  %v1887_v28 = vmul.f32 %v5609_v51, %v8233_v24  ;;  %v1680_v49 = vsel %vm1117_vm2, %v1498_v36, 0.0 }
 0x20c   : > { %v1700_v3 = vmul.f32 0.03125, %v1520_v0  ;;  %v1517_v10 = vpop.xlane.xlu0 %1516  ;;  %v1889_v58 = vmul.f32 %v5611_v30, %v8234_v55  ;;  %v1958_v51 = vmul.f32 %v7044_v43, %v1890_v63  ;;  %v8235_v30 = vld [vmem:[#allocation20_spill] sm:$0xff]  ;;  %v1686_v63 = vsel %vm1117_vm2, %v1500_v20, 0.0 }
 0x20d   : > { %v1699_v7 = vmul.f32 0.03125, %v1517_v10  ;;  %v1499_v10 = vmul.f32 %v7033_v61, %v7033_v61 }
 0x20e   : > { %v1764_v13 = vadd.f32 1e-05, %v1700_v3  ;;  %1675 = vadd.xlane.f32.xlu1 %v1674_v32  ;;  %v1677_v3 = vsel %vm1117_vm2, %v1497_v40, 0.0  ;;  %v1957_v36 = vmul.f32 %v7044_v43, %v1889_v58 }
 0x20f   : > { %v1763_v29 = vadd.f32 1e-05, %v1699_v7  ;;  %1672 = vadd.xlane.f32.xlu0 %v1671_v57  ;;  %v1955_v57 = vmul.f32 %v7044_v43, %v1887_v28 }
 0x210   : > { %5618 = vrsqrt.f32 %v1764_v13 }
 0x211   : > { %5620 = vrsqrt.f32 %v1763_v29  ;;  %v7058_v29 = vrot.slane %v5990_v47, %v2021_v15 }
 0x212   : > { %v5613_v0 = vpop.eup %5612  ;;  %1681 = vadd.xlane.f32.xlu1 %v1680_v49 }
 0x213   : > { %1678 = vadd.xlane.f32.xlu0 %v1677_v3  ;;  %v1538_v32 = vpop.xlane.xlu1 %1537  ;;  %v1888_v7 = vmul.f32 %v5613_v0, %v8235_v30  ;;  %v1683_v3 = vsel %vm1117_vm2, %v1499_v10, 0.0  ;;  %v2026_v0 = vadd.f32 %v7058_v29, %v1958_v51  ;;  %v2023_v58 = vadd.f32 %v7058_v29, %v1955_v57 }
 0x214   : > { %v1706_v18 = vmul.f32 0.03125, %v1538_v32  ;;  %v1535_v13 = vpop.xlane.xlu0 %1534  ;;  %v2025_v15 = vadd.f32 %v7058_v29, %v1957_v36 }
 0x215   : > { %v1705_v24 = vmul.f32 0.03125, %v1535_v13  ;;  %v1956_v40 = vmul.f32 %v7044_v43, %v1888_v7  ;;  %v8236_v7 = vld [vmem:[#allocation22_spill] sm:$0xff]  ;;  %v8237_v13 = vld [vmem:[#allocation21_spill] sm:$0xff] }
 0x216   : > { %v5615_v55 = vpop.eup %5614  ;;  %v1770_v49 = vadd.f32 1e-05, %v1706_v18  ;;  %1687 = vadd.xlane.f32.xlu1 %v1686_v63  ;;  %v2088_v32 = vpack.c.bf16 %v2026_v0, %v2025_v15 }
 0x217   : > { %v5617_v30 = vpop.eup %5616  ;;  %v1769_v28 = vadd.f32 1e-05, %v1705_v24  ;;  %1684 = vadd.xlane.f32.xlu0 %v1683_v3  ;;  %v2024_v47 = vadd.f32 %v7058_v29, %v1956_v40  ;;  %v1894_v63 = vmul.f32 %v5615_v55, %v8237_v13  ;;  %v8238_v3 = vld [vmem:[#allocation23_spill] sm:$0xff] }
 0x218   : > { %5622 = vrsqrt.f32 %v1770_v49  ;;  %v1893_v18 = vmul.f32 %v5617_v30, %v8236_v7 }
 0x219   : > { %v2087_v20 = vpack.c.bf16 %v2024_v47, %v2023_v58  ;;  %5624 = vrsqrt.f32 %v1769_v28  ;;  %v1962_v55 = vmul.f32 %v7044_v43, %v1894_v63  ;;  %v8239_v58 = vld [vmem:[#allocation24_spill] sm:$0xff] }
 0x21a   : > { %v1961_v30 = vmul.f32 %v7044_v43, %v1893_v18 }
 0x21b   : > { %5286 = vmatprep.mubr.msk.bf16.mxu1 %vm1117_vm2, %v2087_v20  ;;  %5354 = vmatprep.mubr.msk.bf16.mxu0 %vm1117_vm2, %v2087_v20  ;;  %v1532_v51 = vpop.xlane.xlu1 %1531  ;;  %v2030_v13 = vadd.f32 %v7058_v29, %v1962_v55 }
 0x21c   : > { %v1704_v10 = vmul.f32 0.03125, %v1532_v51  ;;  %5287 = vmatmul.mubr.msk.bf16.vlgmr.msra.gmra.mxu1 %vm1117_vm2, %v2088_v32  ;;  %5355 = vmatmul.mubr.msk.bf16.vlgmr.msra.gmra.mxu0 %vm1117_vm2, %v2088_v32  ;;  %v1529_v57 = vpop.xlane.xlu0 %1528  ;;  %v2029_v7 = vadd.f32 %v7058_v29, %v1961_v30  ;;  %v8240_v30 = vld [vmem:[#allocation26_spill] sm:$0xff] }
 0x21d   : > { %v5619_v36 = vpop.eup %5618  ;;  %v1703_v24 = vmul.f32 0.03125, %v1529_v57 }
 0x21e   : > { %v5621_v40 = vpop.eup %5620  ;;  %v1768_v49 = vadd.f32 1e-05, %v1704_v10  ;;  %v1892_v0 = vmul.f32 %v5619_v36, %v8238_v3 }
 0x21f   : > { %v1767_v28 = vadd.f32 1e-05, %v1703_v24  ;;  %v1891_v47 = vmul.f32 %v5621_v40, %v8239_v58 }
 0x220   : > { %5626 = vrsqrt.f32 %v1768_v49  ;;  %v1960_v15 = vmul.f32 %v7044_v43, %v1892_v0  ;;  %v2090_v49 = vpack.c.bf16 %v2030_v13, %v2029_v7 }
 0x221   : > { %5628 = vrsqrt.f32 %v1767_v28  ;;  %v1959_v20 = vmul.f32 %v7044_v43, %v1891_v47  ;;  %v8241_v28 = vld [vmem:[#allocation25_spill] sm:$0xff] }
 0x222   : > { %v2028_v32 = vadd.f32 %v7058_v29, %v1960_v15 }
 0x223   : > { %v1550_v51 = vpop.xlane.xlu1 %1549  ;;  %v2027_v18 = vadd.f32 %v7058_v29, %v1959_v20 }
 0x224   : > { %v1710_v10 = vmul.f32 0.03125, %v1550_v51  ;;  %v1547_v63 = vpop.xlane.xlu0 %1546 }
 0x225   : > { %v1709_v57 = vmul.f32 0.03125, %v1547_v63  ;;  %v2089_v36 = vpack.c.bf16 %v2028_v32, %v2027_v18  ;;  %v5623_v24 = vpop.eup %5622  ;;  %v8242_v18 = vld [vmem:[#allocation27_spill] sm:$0xff] }
 0x226   : > { %v1774_v40 = vadd.f32 1e-05, %v1710_v10  ;;  %v5625_v3 = vpop.eup %5624  ;;  %v1898_v58 = vmul.f32 %v5623_v24, %v8241_v28 }
 0x227   : > { %v1773_v0 = vadd.f32 1e-05, %v1709_v57  ;;  %5290 = vmatprep.mubr.msk.bf16.mxu1 %vm1117_vm2, %v2089_v36  ;;  %5358 = vmatprep.mubr.msk.bf16.mxu0 %vm1117_vm2, %v2089_v36  ;;  %v1897_v55 = vmul.f32 %v5625_v3, %v8240_v30 }
 0x228   : > { %5291 = vmatmul.mubr.msk.bf16.gmra.mxu1 %vm1117_vm2, %v2090_v49  ;;  %5359 = vmatmul.mubr.msk.bf16.gmra.mxu0 %vm1117_vm2, %v2090_v49  ;;  %5630 = vrsqrt.f32 %v1774_v40  ;;  %v1966_v57 = vmul.f32 %v7044_v43, %v1898_v58  ;;  %v8243_v40 = vld [vmem:[#allocation28_spill] sm:$0xff] }
 0x229   : > { %5632 = vrsqrt.f32 %v1773_v0  ;;  %v1965_v63 = vmul.f32 %v7044_v43, %v1897_v55 }
 0x22a   : > { %v2034_v28 = vadd.f32 %v7058_v29, %v1966_v57 }
 0x22b   : > { %v1544_v47 = vpop.xlane.xlu1 %1543  ;;  %v2033_v30 = vadd.f32 %v7058_v29, %v1965_v63  ;;  %v8244_v63 = vld [vmem:[#allocation30_spill] sm:$0xff] }
 0x22c   : > { %v1708_v15 = vmul.f32 0.03125, %v1544_v47  ;;  %v1541_v20 = vpop.xlane.xlu0 %1540 }
 0x22d   : > { %v5627_v32 = vpop.eup %5626  ;;  %v1707_v7 = vmul.f32 0.03125, %v1541_v20 }
 0x22e   : > { %v5629_v13 = vpop.eup %5628  ;;  %v1772_v51 = vadd.f32 1e-05, %v1708_v15  ;;  %v1896_v10 = vmul.f32 %v5627_v32, %v8242_v18 }
 0x22f   : > { %v1771_v36 = vadd.f32 1e-05, %v1707_v7  ;;  %v1895_v49 = vmul.f32 %v5629_v13, %v8243_v40 }
 0x230   : > { %5634 = vrsqrt.f32 %v1772_v51  ;;  %v1964_v3 = vmul.f32 %v7044_v43, %v1896_v10  ;;  %v2092_v51 = vpack.c.bf16 %v2034_v28, %v2033_v30 }
 0x231   : > { %5636 = vrsqrt.f32 %v1771_v36  ;;  %v1963_v24 = vmul.f32 %v7044_v43, %v1895_v49  ;;  %v8245_v36 = vld [vmem:[#allocation29_spill] sm:$0xff] }
 0x232   : > { %v2032_v0 = vadd.f32 %v7058_v29, %v1964_v3  ;;  %v5602_v3 = vld [vmem:[%s8129_s4 + $0x18] sm:$0xff]  }
 0x233   : > { %v1562_v47 = vpop.xlane.xlu1 %1561  ;;  %v2031_v55 = vadd.f32 %v7058_v29, %v1963_v24  ;;  %5418 = vmatprep.subr.bf16.mxu1 %v5602_v3 }
 0x234   : > { %v1714_v15 = vmul.f32 0.03125, %v1562_v47  ;;  %v1559_v58 = vpop.xlane.xlu0 %1558  ;;  %5419 = vmatpush3.bf16.msra.mxu1 %v5602_v3 }
 0x235   : > { %v1713_v20 = vmul.f32 0.03125, %v1559_v58  ;;  %v2091_v32 = vpack.c.bf16 %v2032_v0, %v2031_v55  ;;  %v5631_v7 = vpop.eup %5630 }
 0x236   : > { %v1778_v13 = vadd.f32 1e-05, %v1714_v15  ;;  %v5633_v18 = vpop.eup %5632  ;;  %v1902_v40 = vmul.f32 %v5631_v7, %v8245_v36  ;;  %v8246_v15 = vld [vmem:[#allocation31_spill] sm:$0xff] }
 0x237   : > { %v1777_v10 = vadd.f32 1e-05, %v1713_v20  ;;  %5294 = vmatprep.mubr.msk.bf16.mxu1 %vm1117_vm2, %v2091_v32  ;;  %5362 = vmatprep.mubr.msk.bf16.mxu0 %vm1117_vm2, %v2091_v32  ;;  %v1901_v57 = vmul.f32 %v5633_v18, %v8244_v63 }
 0x238   : > { %5295 = vmatmul.mubr.msk.bf16.gmra.mxu1 %vm1117_vm2, %v2092_v51  ;;  %5363 = vmatmul.mubr.msk.bf16.gmra.mxu0 %vm1117_vm2, %v2092_v51  ;;  %5638 = vrsqrt.f32 %v1778_v13  ;;  %v1970_v32 = vmul.f32 %v7044_v43, %v1902_v40  ;;  %v8247_v13 = vld [vmem:[#allocation32_spill] sm:$0xff] }
 0x239   : > { %5640 = vrsqrt.f32 %v1777_v10  ;;  %v1969_v20 = vmul.f32 %v7044_v43, %v1901_v57 }
 0x23b   : > { %v1556_v49 = vpop.xlane.xlu1 %1555  ;;  %v2037_v36 = vadd.f32 %v7058_v29, %v1969_v20  ;;  %v8248_v20 = vld [vmem:[#allocation34_spill] sm:$0xff] }
 0x23c   : > { %v1712_v24 = vmul.f32 0.03125, %v1556_v49  ;;  %v1553_v0 = vpop.xlane.xlu0 %1552  ;;  %v2038_v49 = vadd.f32 %v7058_v29, %v1970_v32 }
 0x23d   : > { %v5635_v30 = vpop.eup %5634  ;;  %v1711_v28 = vmul.f32 0.03125, %v1553_v0 }
 0x23e   : > { %v5637_v47 = vpop.eup %5636  ;;  %v1776_v55 = vadd.f32 1e-05, %v1712_v24  ;;  %v1900_v58 = vmul.f32 %v5635_v30, %v8246_v15 }
 0x23f   : > { %v1775_v7 = vadd.f32 1e-05, %v1711_v28  ;;  %v1899_v51 = vmul.f32 %v5637_v47, %v8247_v13 }
 0x240   : > { %5642 = vrsqrt.f32 %v1776_v55  ;;  %v1968_v18 = vmul.f32 %v7044_v43, %v1900_v58  ;;  %v2094_v55 = vpack.c.bf16 %v2038_v49, %v2037_v36 }
 0x241   : > { %5644 = vrsqrt.f32 %v1775_v7  ;;  %v1967_v10 = vmul.f32 %v7044_v43, %v1899_v51  ;;  %v8249_v7 = vld [vmem:[#allocation33_spill] sm:$0xff] }
 0x242   : > { %v2036_v63 = vadd.f32 %v7058_v29, %v1968_v18 }
 0x243   : > { %v1574_v24 = vpop.xlane.xlu1 %1573  ;;  %v2035_v57 = vadd.f32 %v7058_v29, %v1967_v10 }
 0x244   : > { %v1718_v40 = vmul.f32 0.03125, %v1574_v24  ;;  %v1571_v3 = vpop.xlane.xlu0 %1570 }
 0x245   : > { %v1717_v0 = vmul.f32 0.03125, %v1571_v3  ;;  %v2093_v30 = vpack.c.bf16 %v2036_v63, %v2035_v57  ;;  %v5639_v28 = vpop.eup %5638  ;;  %v8250_v57 = vld [vmem:[#allocation35_spill] sm:$0xff] }
 0x246   : > { %v1782_v47 = vadd.f32 1e-05, %v1718_v40  ;;  %v5641_v15 = vpop.eup %5640  ;;  %v1906_v13 = vmul.f32 %v5639_v28, %v8249_v7 }
 0x247   : > { %v1781_v58 = vadd.f32 1e-05, %v1717_v0  ;;  %5298 = vmatprep.mubr.msk.bf16.mxu1 %vm1117_vm2, %v2093_v30  ;;  %5366 = vmatprep.mubr.msk.bf16.mxu0 %vm1117_vm2, %v2093_v30  ;;  %v1905_v32 = vmul.f32 %v5641_v15, %v8248_v20 }
 0x248   : > { %5299 = vmatmul.mubr.msk.bf16.gmra.mxu1 %vm1117_vm2, %v2094_v55  ;;  %5367 = vmatmul.mubr.msk.bf16.gmra.mxu0 %vm1117_vm2, %v2094_v55  ;;  %5646 = vrsqrt.f32 %v1782_v47  ;;  %v1974_v0 = vmul.f32 %v7044_v43, %v1906_v13  ;;  %v8251_v55 = vld [vmem:[#allocation36_spill] sm:$0xff] }
 0x249   : > { %5648 = vrsqrt.f32 %v1781_v58  ;;  %v1973_v3 = vmul.f32 %v7044_v43, %v1905_v32 }
 0x24b   : > { %v1568_v51 = vpop.xlane.xlu1 %1567  ;;  %v2041_v13 = vadd.f32 %v7058_v29, %v1973_v3 }
 0x24c   : > { %v1716_v18 = vmul.f32 0.03125, %v1568_v51  ;;  %v1565_v10 = vpop.xlane.xlu0 %1564 }
 0x24d   : > { %v5643_v63 = vpop.eup %5642  ;;  %v1715_v36 = vmul.f32 0.03125, %v1565_v10  ;;  %v2042_v10 = vadd.f32 %v7058_v29, %v1974_v0 }
 0x24e   : > { %v5645_v49 = vpop.eup %5644  ;;  %v1780_v24 = vadd.f32 1e-05, %v1716_v18  ;;  %v1904_v40 = vmul.f32 %v5643_v63, %v8250_v57 }
 0x24f   : > { %v1779_v30 = vadd.f32 1e-05, %v1715_v36  ;;  %v1309_v47 = vpop.xlane.xlu1 %1308  ;;  %v1903_v58 = vmul.f32 %v5645_v49, %v8251_v55 }
 0x250   : > { %5650 = vrsqrt.f32 %v1780_v24  ;;  %v1374_v15 = vmul.f32 0.03125, %v1309_v47  ;;  %v1306_v28 = vpop.xlane.xlu0 %1305  ;;  %v1972_v20 = vmul.f32 %v7044_v43, %v1904_v40 }
 0x251   : > { %5652 = vrsqrt.f32 %v1779_v30  ;;  %v1373_v7 = vmul.f32 0.03125, %v1306_v28  ;;  %v1971_v51 = vmul.f32 %v7044_v43, %v1903_v58  ;;  %v2096_v30 = vpack.c.bf16 %v2042_v10, %v2041_v13  ;;  %v8252_v28 = vld [vmem:[#allocation38_spill] sm:$0xff] }
 0x252   : > { %v7131_v18 = vsub.f32 %v6764_v38, %v1374_v15  ;;  %v2040_v32 = vadd.f32 %v7058_v29, %v1972_v20 }
 0x253   : > { %v7137_v63 = vsub.f32 %v6768_v59, %v1373_v7  ;;  %v2039_v36 = vadd.f32 %v7058_v29, %v1971_v51  ;;  %v8253_v7 = vld [vmem:[#allocation37_spill] sm:$0xff] }
 0x254   : > { %v1502_v49 = vmul.f32 %v7131_v18, %v7131_v18 }
 0x255   : > { %v2095_v24 = vpack.c.bf16 %v2040_v32, %v2039_v36  ;;  %v1501_v57 = vmul.f32 %v7137_v63, %v7137_v63  ;;  %v5647_v38 = vpop.eup %5646 }
 0x256   : > { %v1692_v40 = vsel %vm1117_vm2, %v1502_v49, 0.0  ;;  %v5649_v47 = vpop.eup %5648  ;;  %v1910_v51 = vmul.f32 %v5647_v38, %v8253_v7 }
 0x257   : > { %5302 = vmatprep.mubr.msk.bf16.mxu1 %vm1117_vm2, %v2095_v24  ;;  %5370 = vmatprep.mubr.msk.bf16.mxu0 %vm1117_vm2, %v2095_v24  ;;  %v1580_v59 = vpop.xlane.xlu1 %1579  ;;  %v1689_v3 = vsel %vm1117_vm2, %v1501_v57, 0.0  ;;  %v1909_v20 = vmul.f32 %v5649_v47, %v8252_v28 }
 0x258   : > { %1693 = vadd.xlane.f32.xlu1 %v1692_v40  ;;  %v1720_v0 = vmul.f32 0.03125, %v1580_v59  ;;  %5303 = vmatmul.mubr.msk.bf16.gmra.mxu1 %vm1117_vm2, %v2096_v30  ;;  %v1577_v55 = vpop.xlane.xlu0 %1576  ;;  %v8254_v59 = vld [vmem:[#allocation39_spill] sm:$0xff] }
 0x259   : > { %5371 = vmatmul.mubr.msk.bf16.gmra.mxu0 %vm1117_vm2, %v2096_v30  ;;  %1690 = vadd.xlane.f32.xlu0 %v1689_v3  ;;  %v1719_v58 = vmul.f32 0.03125, %v1577_v55  ;;  %v1977_v30 = vmul.f32 %v7044_v43, %v1909_v20  ;;  %v1978_v3 = vmul.f32 %v7044_v43, %v1910_v51  ;;  %v8255_v55 = vld [vmem:[#allocation40_spill] sm:$0xff] }
 0x25a   : > { %v1784_v15 = vadd.f32 1e-05, %v1720_v0 }
 0x25b   : > { %v1783_v32 = vadd.f32 1e-05, %v1719_v58  ;;  %v1586_v13 = vpop.xlane.xlu1 %1585  ;;  %v2045_v20 = vadd.f32 %v7058_v29, %v1977_v30  ;;  %v2046_v51 = vadd.f32 %v7058_v29, %v1978_v3 }
 0x25c   : > { %5654 = vrsqrt.f32 %v1784_v15  ;;  %v1722_v10 = vmul.f32 0.03125, %v1586_v13  ;;  %v1583_v36 = vpop.xlane.xlu0 %1582 }
 0x25d   : > { %v5651_v49 = vpop.eup %5650  ;;  %5656 = vrsqrt.f32 %v1783_v32  ;;  %v1721_v24 = vmul.f32 0.03125, %v1583_v36 }
 0x25e   : > { %v5653_v57 = vpop.eup %5652  ;;  %v1786_v40 = vadd.f32 1e-05, %v1722_v10  ;;  %v1908_v33 = vmul.f32 %v5651_v49, %v8254_v59 }
 0x25f   : > { %v1785_v0 = vadd.f32 1e-05, %v1721_v24  ;;  %v1592_v47 = vpop.xlane.xlu1 %1591  ;;  %v1907_v38 = vmul.f32 %v5653_v57, %v8255_v55 }
 0x260   : > { %5658 = vrsqrt.f32 %v1786_v40  ;;  %v1724_v58 = vmul.f32 0.03125, %v1592_v47  ;;  %v1589_v15 = vpop.xlane.xlu0 %1588  ;;  %v1976_v28 = vmul.f32 %v7044_v43, %v1908_v33  ;;  %v2098_v47 = vpack.c.bf16 %v2046_v51, %v2045_v20  ;;  %v8256_v20 = vld [vmem:[#allocation41_spill] sm:$0xff] }
 0x261   : > { %5660 = vrsqrt.f32 %v1785_v0  ;;  %v1723_v7 = vmul.f32 0.03125, %v1589_v15  ;;  %v1975_v32 = vmul.f32 %v7044_v43, %v1907_v38 }
 0x262   : > { %v1788_v13 = vadd.f32 1e-05, %v1724_v58  ;;  %v2044_v10 = vadd.f32 %v7058_v29, %v1976_v28 }
 0x263   : > { %v1787_v36 = vadd.f32 1e-05, %v1723_v7  ;;  %v1598_v49 = vpop.xlane.xlu1 %1597  ;;  %v2043_v24 = vadd.f32 %v7058_v29, %v1975_v32 }
 0x264   : > { %5662 = vrsqrt.f32 %v1788_v13  ;;  %v1726_v57 = vmul.f32 0.03125, %v1598_v49  ;;  %v1595_v40 = vpop.xlane.xlu0 %1594 }
 0x265   : > { %5664 = vrsqrt.f32 %v1787_v36  ;;  %v1725_v33 = vmul.f32 0.03125, %v1595_v40  ;;  %v2097_v59 = vpack.c.bf16 %v2044_v10, %v2043_v24 }
 0x266   : > { %v1790_v0 = vadd.f32 1e-05, %v1726_v57 }
 0x267   : > { %v1789_v55 = vadd.f32 1e-05, %v1725_v33  ;;  %5306 = vmatprep.mubr.msk.bf16.mxu1 %vm1117_vm2, %v2097_v59  ;;  %5374 = vmatprep.mubr.msk.bf16.mxu0 %vm1117_vm2, %v2097_v59  ;;  %v1604_v30 = vpop.xlane.xlu1 %1603 }
 0x268   : > { %5666 = vrsqrt.f32 %v1790_v0  ;;  %v1728_v3 = vmul.f32 0.03125, %v1604_v30  ;;  %5307 = vmatmul.mubr.msk.bf16.gmra.mxu1 %vm1117_vm2, %v2098_v47  ;;  %5375 = vmatmul.mubr.msk.bf16.gmra.mxu0 %vm1117_vm2, %v2098_v47  ;;  %v1601_v38 = vpop.xlane.xlu0 %1600 }
 0x269   : > { %v5655_v58 = vpop.eup %5654  ;;  %5668 = vrsqrt.f32 %v1789_v55  ;;  %v1727_v15 = vmul.f32 0.03125, %v1601_v38 }
 0x26a   : > { %v5657_v28 = vpop.eup %5656  ;;  %v1792_v7 = vadd.f32 1e-05, %v1728_v3  ;;  %v1912_v32 = vmul.f32 %v5655_v58, %v6778_v26 }
 0x26b   : > { %v1791_v13 = vadd.f32 1e-05, %v1727_v15  ;;  %v1610_v10 = vpop.xlane.xlu1 %1609  ;;  %v1911_v51 = vmul.f32 %v5657_v28, %v8256_v20 }
 0x26c   : > { %5670 = vrsqrt.f32 %v1792_v7  ;;  %v1730_v36 = vmul.f32 0.03125, %v1610_v10  ;;  %v1607_v49 = vpop.xlane.xlu0 %1606  ;;  %v1980_v24 = vmul.f32 %v7044_v43, %v1912_v32 }
 0x26d   : > { %v5659_v57 = vpop.eup %5658  ;;  %5672 = vrsqrt.f32 %v1791_v13  ;;  %v1729_v40 = vmul.f32 0.03125, %v1607_v49  ;;  %v1979_v33 = vmul.f32 %v7044_v43, %v1911_v51 }
 0x26e   : > { %v5661_v59 = vpop.eup %5660  ;;  %v1794_v0 = vadd.f32 1e-05, %v1730_v36  ;;  %v2048_v47 = vadd.f32 %v7058_v29, %v1980_v24  ;;  %v1914_v26 = vmul.f32 %v5659_v57, %v6775_v6 }
 0x26f   : > { %v1793_v55 = vadd.f32 1e-05, %v1729_v40  ;;  %v1616_v30 = vpop.xlane.xlu1 %1615  ;;  %v2047_v3 = vadd.f32 %v7058_v29, %v1979_v33  ;;  %v1913_v38 = vmul.f32 %v5661_v59, %v6781_v17 }
 0x270   : > { %5674 = vrsqrt.f32 %v1794_v0  ;;  %v1732_v58 = vmul.f32 0.03125, %v1616_v30  ;;  %v1613_v15 = vpop.xlane.xlu0 %1612  ;;  %v1982_v28 = vmul.f32 %v7044_v43, %v1914_v26 }
 0x271   : > { %v5663_v7 = vpop.eup %5662  ;;  %5676 = vrsqrt.f32 %v1793_v55  ;;  %v1731_v32 = vmul.f32 0.03125, %v1613_v15  ;;  %v2099_v13 = vpack.c.bf16 %v2048_v47, %v2047_v3  ;;  %v1981_v10 = vmul.f32 %v7044_v43, %v1913_v38 }
 0x272   : > { %v5665_v20 = vpop.eup %5664  ;;  %v1796_v51 = vadd.f32 1e-05, %v1732_v58  ;;  %v2050_v6 = vadd.f32 %v7058_v29, %v1982_v28  ;;  %v1916_v36 = vmul.f32 %v5663_v7, %v6801_v46 }
 0x273   : > { %v1795_v49 = vadd.f32 1e-05, %v1731_v32  ;;  %5310 = vmatprep.mubr.msk.bf16.mxu1 %vm1117_vm2, %v2099_v13  ;;  %5378 = vmatprep.mubr.msk.bf16.mxu0 %vm1117_vm2, %v2099_v13  ;;  %v1622_v17 = vpop.xlane.xlu1 %1621  ;;  %v2049_v24 = vadd.f32 %v7058_v29, %v1981_v10  ;;  %v1915_v57 = vmul.f32 %v5665_v20, %v6809_v5 }
 0x274   : > { %5678 = vrsqrt.f32 %v1796_v51  ;;  %v1734_v40 = vmul.f32 0.03125, %v1622_v17  ;;  %v1619_v33 = vpop.xlane.xlu0 %1618  ;;  %v1984_v59 = vmul.f32 %v7044_v43, %v1916_v36 }
 0x275   : > { %v5667_v0 = vpop.eup %5666  ;;  %5680 = vrsqrt.f32 %v1795_v49  ;;  %v1733_v47 = vmul.f32 0.03125, %v1619_v33  ;;  %v2100_v26 = vpack.c.bf16 %v2050_v6, %v2049_v24  ;;  %v1983_v46 = vmul.f32 %v7044_v43, %v1915_v57 }
 0x276   : > { %v5669_v55 = vpop.eup %5668  ;;  %v1798_v30 = vadd.f32 1e-05, %v1734_v40  ;;  %v2052_v3 = vadd.f32 %v7058_v29, %v1984_v59  ;;  %v1918_v38 = vmul.f32 %v5667_v0, %v6798_v35 }
 0x277   : > { %v1797_v58 = vadd.f32 1e-05, %v1733_v47  ;;  %5311 = vmatmul.mubr.msk.bf16.gmra.mxu1 %vm1117_vm2, %v2100_v26  ;;  %5379 = vmatmul.mubr.msk.bf16.gmra.mxu0 %vm1117_vm2, %v2100_v26  ;;  %v1628_v5 = vpop.xlane.xlu1 %1627  ;;  %v2051_v15 = vadd.f32 %v7058_v29, %v1983_v46  ;;  %v1917_v28 = vmul.f32 %v5669_v55, %v6806_v42 }
 0x278   : > { %5682 = vrsqrt.f32 %v1798_v30  ;;  %v1736_v7 = vmul.f32 0.03125, %v1628_v5  ;;  %v1625_v32 = vpop.xlane.xlu0 %1624  ;;  %v1986_v13 = vmul.f32 %v7044_v43, %v1918_v38 }
 0x279   : > { %v5671_v10 = vpop.eup %5670  ;;  %5684 = vrsqrt.f32 %v1797_v58  ;;  %v1735_v20 = vmul.f32 0.03125, %v1625_v32  ;;  %v2101_v51 = vpack.c.bf16 %v2052_v3, %v2051_v15  ;;  %v1985_v35 = vmul.f32 %v7044_v43, %v1917_v28  ;;  %v5603_v28 = vld [vmem:[%s8129_s4 + $0x10] sm:$0xff]  }
 0x27a   : > { %v5673_v6 = vpop.eup %5672  ;;  %v1800_v36 = vadd.f32 1e-05, %v1736_v7  ;;  %v2054_v49 = vadd.f32 %v7058_v29, %v1986_v13  ;;  %v1920_v17 = vmul.f32 %v5671_v10, %v6818_v53  ;;  %5420 = vmatprep.subr.bf16.mxu1 %v5603_v28 }
 0x27b   : > { %v1799_v24 = vadd.f32 1e-05, %v1735_v20  ;;  %5314 = vmatprep.mubr.msk.bf16.mxu1 %vm1117_vm2, %v2101_v51  ;;  %5382 = vmatprep.mubr.msk.bf16.mxu0 %vm1117_vm2, %v2101_v51  ;;  %v1634_v42 = vpop.xlane.xlu1 %1633  ;;  %v2053_v57 = vadd.f32 %v7058_v29, %v1985_v35  ;;  %v1919_v40 = vmul.f32 %v5673_v6, %v6825_v1 }
 0x27c   : > { %5686 = vrsqrt.f32 %v1800_v36  ;;  %v1738_v33 = vmul.f32 0.03125, %v1634_v42  ;;  %v1631_v59 = vpop.xlane.xlu0 %1630  ;;  %v1988_v0 = vmul.f32 %v7044_v43, %v1920_v17  ;;  %5421 = vmatpush3.bf16.msra.mxu1 %v5603_v28 }
 0x27d   : > { %v5675_v47 = vpop.eup %5674  ;;  %5688 = vrsqrt.f32 %v1799_v24  ;;  %v1737_v26 = vmul.f32 0.03125, %v1631_v59  ;;  %v2102_v46 = vpack.c.bf16 %v2054_v49, %v2053_v57  ;;  %v1987_v53 = vmul.f32 %v7044_v43, %v1919_v40 }
 0x27e   : > { %v5677_v55 = vpop.eup %5676  ;;  %v1802_v30 = vadd.f32 1e-05, %v1738_v33  ;;  %v2056_v3 = vadd.f32 %v7058_v29, %v1988_v0  ;;  %v1922_v38 = vmul.f32 %v5675_v47, %v6831_v22 }
 0x27f   : > { %v1801_v58 = vadd.f32 1e-05, %v1737_v26  ;;  %5315 = vmatmul.mubr.msk.bf16.gmra.mxu1 %vm1117_vm2, %v2102_v46  ;;  %5383 = vmatmul.mubr.msk.bf16.gmra.mxu0 %vm1117_vm2, %v2102_v46  ;;  %v1640_v1 = vpop.xlane.xlu1 %1639  ;;  %v2055_v5 = vadd.f32 %v7058_v29, %v1987_v53  ;;  %v1921_v15 = vmul.f32 %v5677_v55, %v6838_v14 }
 0x280   : > { %5690 = vrsqrt.f32 %v1802_v30  ;;  %v1740_v7 = vmul.f32 0.03125, %v1640_v1  ;;  %v1637_v32 = vpop.xlane.xlu0 %1636  ;;  %v1990_v13 = vmul.f32 %v7044_v43, %v1922_v38 }
 0x281   : > { %v5679_v22 = vpop.eup %5678  ;;  %5692 = vrsqrt.f32 %v1801_v58  ;;  %v1739_v10 = vmul.f32 0.03125, %v1637_v32  ;;  %v2103_v20 = vpack.c.bf16 %v2056_v3, %v2055_v5  ;;  %v1989_v51 = vmul.f32 %v7044_v43, %v1921_v15 }
 0x282   : > { %v5681_v35 = vpop.eup %5680  ;;  %v1804_v6 = vadd.f32 1e-05, %v1740_v7  ;;  %v2058_v14 = vadd.f32 %v7058_v29, %v1990_v13  ;;  %v1924_v36 = vmul.f32 %v5679_v22, %v6846_v60 }
 0x283   : > { %v1803_v49 = vadd.f32 1e-05, %v1739_v10  ;;  %5318 = vmatprep.mubr.msk.bf16.mxu1 %vm1117_vm2, %v2103_v20  ;;  %5386 = vmatprep.mubr.msk.bf16.mxu0 %vm1117_vm2, %v2103_v20  ;;  %v1646_v17 = vpop.xlane.xlu1 %1645  ;;  %v2057_v24 = vadd.f32 %v7058_v29, %v1989_v51  ;;  %v1923_v42 = vmul.f32 %v5681_v35, %v6853_v19 }
 0x284   : > { %5694 = vrsqrt.f32 %v1804_v6  ;;  %v1742_v57 = vmul.f32 0.03125, %v1646_v17  ;;  %v1643_v40 = vpop.xlane.xlu0 %1642  ;;  %v1992_v33 = vmul.f32 %v7044_v43, %v1924_v36 }
 0x285   : > { %v5683_v59 = vpop.eup %5682  ;;  %5696 = vrsqrt.f32 %v1803_v49  ;;  %v1741_v0 = vmul.f32 0.03125, %v1643_v40  ;;  %v2104_v60 = vpack.c.bf16 %v2058_v14, %v2057_v24  ;;  %v1991_v47 = vmul.f32 %v7044_v43, %v1923_v42 }
 0x286   : > { %v5685_v26 = vpop.eup %5684  ;;  %v1806_v46 = vadd.f32 1e-05, %v1742_v57  ;;  %v2060_v53 = vadd.f32 %v7058_v29, %v1992_v33  ;;  %v1926_v55 = vmul.f32 %v5683_v59, %v6859_v16 }
 0x287   : > { %v1805_v30 = vadd.f32 1e-05, %v1741_v0  ;;  %5319 = vmatmul.mubr.msk.bf16.gmra.mxu1 %vm1117_vm2, %v2104_v60  ;;  %5387 = vmatmul.mubr.msk.bf16.gmra.mxu0 %vm1117_vm2, %v2104_v60  ;;  %v1652_v19 = vpop.xlane.xlu1 %1651  ;;  %v2059_v3 = vadd.f32 %v7058_v29, %v1991_v47  ;;  %v1925_v38 = vmul.f32 %v5685_v26, %v6866_v21 }
 0x288   : > { %5698 = vrsqrt.f32 %v1806_v46  ;;  %v1744_v58 = vmul.f32 0.03125, %v1652_v19  ;;  %v1649_v1 = vpop.xlane.xlu0 %1648  ;;  %v1994_v5 = vmul.f32 %v7044_v43, %v1926_v55 }
 0x289   : > { %v5687_v15 = vpop.eup %5686  ;;  %5700 = vrsqrt.f32 %v1805_v30  ;;  %v1743_v28 = vmul.f32 0.03125, %v1649_v1  ;;  %v2105_v7 = vpack.c.bf16 %v2060_v53, %v2059_v3  ;;  %v1993_v16 = vmul.f32 %v7044_v43, %v1925_v38 }
 0x28a   : > { %v5689_v32 = vpop.eup %5688  ;;  %v1808_v13 = vadd.f32 1e-05, %v1744_v58  ;;  %v2062_v22 = vadd.f32 %v7058_v29, %v1994_v5  ;;  %v1928_v10 = vmul.f32 %v5687_v15, %v6876_v25 }
 0x28b   : > { %v1807_v20 = vadd.f32 1e-05, %v1743_v28  ;;  %5322 = vmatprep.mubr.msk.bf16.mxu1 %vm1117_vm2, %v2105_v7  ;;  %5390 = vmatprep.mubr.msk.bf16.mxu0 %vm1117_vm2, %v2105_v7  ;;  %v1658_v21 = vpop.xlane.xlu1 %1657  ;;  %v2061_v51 = vadd.f32 %v7058_v29, %v1993_v16  ;;  %v1927_v35 = vmul.f32 %v5689_v32, %v6883_v39 }
 0x28c   : > { %5702 = vrsqrt.f32 %v1808_v13  ;;  %v1746_v6 = vmul.f32 0.03125, %v1658_v21  ;;  %v1655_v14 = vpop.xlane.xlu0 %1654  ;;  %v1996_v36 = vmul.f32 %v7044_v43, %v1928_v10 }
 0x28d   : > { %v5691_v49 = vpop.eup %5690  ;;  %5704 = vrsqrt.f32 %v1807_v20  ;;  %v1745_v17 = vmul.f32 0.03125, %v1655_v14  ;;  %v2106_v24 = vpack.c.bf16 %v2062_v22, %v2061_v51  ;;  %v1995_v25 = vmul.f32 %v7044_v43, %v1927_v35 }
 0x28e   : > { %v5693_v42 = vpop.eup %5692  ;;  %v1810_v57 = vadd.f32 1e-05, %v1746_v6  ;;  %v2064_v40 = vadd.f32 %v7058_v29, %v1996_v36  ;;  %v1930_v33 = vmul.f32 %v5691_v49, %v6891_v41 }
 0x28f   : > { %v1809_v59 = vadd.f32 1e-05, %v1745_v17  ;;  %5323 = vmatmul.mubr.msk.bf16.gmra.mxu1 %vm1117_vm2, %v2106_v24  ;;  %5391 = vmatmul.mubr.msk.bf16.gmra.mxu0 %vm1117_vm2, %v2106_v24  ;;  %v1664_v39 = vpop.xlane.xlu1 %1663  ;;  %v2063_v0 = vadd.f32 %v7058_v29, %v1995_v25  ;;  %v1929_v60 = vmul.f32 %v5693_v42, %v6900_v56 }
 0x290   : > { %5706 = vrsqrt.f32 %v1810_v57  ;;  %v1748_v47 = vmul.f32 0.03125, %v1664_v39  ;;  %v1661_v26 = vpop.xlane.xlu0 %1660  ;;  %v1998_v46 = vmul.f32 %v7044_v43, %v1930_v33 }
 0x291   : > { %v5695_v53 = vpop.eup %5694  ;;  %5708 = vrsqrt.f32 %v1809_v59  ;;  %v1747_v55 = vmul.f32 0.03125, %v1661_v26  ;;  %v2107_v30 = vpack.c.bf16 %v2064_v40, %v2063_v0  ;;  %v1997_v41 = vmul.f32 %v7044_v43, %v1929_v60 }
 0x292   : > { %v5697_v19 = vpop.eup %5696  ;;  %v1812_v3 = vadd.f32 1e-05, %v1748_v47  ;;  %v2066_v38 = vadd.f32 %v7058_v29, %v1998_v46  ;;  %v1932_v58 = vmul.f32 %v5695_v53, %v6908_v44 }
 0x293   : > { %v1811_v1 = vadd.f32 1e-05, %v1747_v55  ;;  %5326 = vmatprep.mubr.msk.bf16.mxu1 %vm1117_vm2, %v2107_v30  ;;  %5394 = vmatprep.mubr.msk.bf16.mxu0 %vm1117_vm2, %v2107_v30  ;;  %v1670_v56 = vpop.xlane.xlu1 %1669  ;;  %v2065_v5 = vadd.f32 %v7058_v29, %v1997_v41  ;;  %v1931_v15 = vmul.f32 %v5697_v19, %v6917_v31 }
 0x294   : > { %5710 = vrsqrt.f32 %v1812_v3  ;;  %v1750_v28 = vmul.f32 0.03125, %v1670_v56  ;;  %v1667_v7 = vpop.xlane.xlu0 %1666  ;;  %v2000_v16 = vmul.f32 %v7044_v43, %v1932_v58 }
 0x295   : > { %v5699_v32 = vpop.eup %5698  ;;  %5712 = vrsqrt.f32 %v1811_v1  ;;  %v1749_v13 = vmul.f32 0.03125, %v1667_v7  ;;  %v2108_v22 = vpack.c.bf16 %v2066_v38, %v2065_v5  ;;  %v1999_v44 = vmul.f32 %v7044_v43, %v1931_v15 }
 0x296   : > { %v5701_v10 = vpop.eup %5700  ;;  %v1814_v20 = vadd.f32 1e-05, %v1750_v28  ;;  %v2068_v21 = vadd.f32 %v7058_v29, %v2000_v16  ;;  %v1934_v51 = vmul.f32 %v5699_v32, %v6925_v34 }
 0x297   : > { %v1813_v35 = vadd.f32 1e-05, %v1749_v13  ;;  %5327 = vmatmul.mubr.msk.bf16.gmra.mxu1 %vm1117_vm2, %v2108_v22  ;;  %5395 = vmatmul.mubr.msk.bf16.gmra.mxu0 %vm1117_vm2, %v2108_v22  ;;  %v1676_v31 = vpop.xlane.xlu1 %1675  ;;  %v2067_v6 = vadd.f32 %v7058_v29, %v1999_v44  ;;  %v1933_v14 = vmul.f32 %v5701_v10, %v6932_v8 }
 0x298   : > { %5714 = vrsqrt.f32 %v1814_v20  ;;  %v1752_v36 = vmul.f32 0.03125, %v1676_v31  ;;  %v1673_v49 = vpop.xlane.xlu0 %1672  ;;  %v2002_v17 = vmul.f32 %v7044_v43, %v1934_v51 }
 0x299   : > { %v5703_v24 = vpop.eup %5702  ;;  %5716 = vrsqrt.f32 %v1813_v35  ;;  %v1751_v25 = vmul.f32 0.03125, %v1673_v49  ;;  %v2109_v42 = vpack.c.bf16 %v2068_v21, %v2067_v6  ;;  %v2001_v34 = vmul.f32 %v7044_v43, %v1933_v14 }
 0x29a   : > { %v5705_v57 = vpop.eup %5704  ;;  %v1816_v40 = vadd.f32 1e-05, %v1752_v36  ;;  %v2070_v33 = vadd.f32 %v7058_v29, %v2002_v17  ;;  %v1936_v59 = vmul.f32 %v5703_v24, %v6945_v4 }
 0x29b   : > { %v1815_v39 = vadd.f32 1e-05, %v1751_v25  ;;  %5330 = vmatprep.mubr.msk.bf16.mxu1 %vm1117_vm2, %v2109_v42  ;;  %5398 = vmatprep.mubr.msk.bf16.mxu0 %vm1117_vm2, %v2109_v42  ;;  %v1682_v8 = vpop.xlane.xlu1 %1681  ;;  %v2069_v0 = vadd.f32 %v7058_v29, %v2001_v34  ;;  %v1935_v60 = vmul.f32 %v5705_v57, %v6949_v37 }
 0x29c   : > { %5718 = vrsqrt.f32 %v1816_v40  ;;  %v1754_v47 = vmul.f32 0.03125, %v1682_v8  ;;  %v1679_v26 = vpop.xlane.xlu0 %1678  ;;  %v2004_v46 = vmul.f32 %v7044_v43, %v1936_v59 }
 0x29d   : > { %v5707_v53 = vpop.eup %5706  ;;  %5720 = vrsqrt.f32 %v1815_v39  ;;  %v1753_v55 = vmul.f32 0.03125, %v1679_v26  ;;  %v2110_v30 = vpack.c.bf16 %v2070_v33, %v2069_v0  ;;  %v2003_v4 = vmul.f32 %v7044_v43, %v1935_v60 }
 0x29e   : > { %v5709_v41 = vpop.eup %5708  ;;  %v1818_v19 = vadd.f32 1e-05, %v1754_v47  ;;  %v2072_v3 = vadd.f32 %v7058_v29, %v2004_v46  ;;  %v1938_v38 = vmul.f32 %v5707_v53, %v6957_v62 }
 0x29f   : > { %v1817_v58 = vadd.f32 1e-05, %v1753_v55  ;;  %5331 = vmatmul.mubr.msk.bf16.gmra.mxu1 %vm1117_vm2, %v2110_v30  ;;  %5399 = vmatmul.mubr.msk.bf16.gmra.mxu0 %vm1117_vm2, %v2110_v30  ;;  %v1688_v37 = vpop.xlane.xlu1 %1687  ;;  %v2071_v1 = vadd.f32 %v7058_v29, %v2003_v4  ;;  %v1937_v56 = vmul.f32 %v5709_v41, %v6960_v9 }
 0x2a0   : > { %5722 = vrsqrt.f32 %v1818_v19  ;;  %v1756_v5 = vmul.f32 0.03125, %v1688_v37  ;;  %v1685_v15 = vpop.xlane.xlu0 %1684  ;;  %v2006_v28 = vmul.f32 %v7044_v43, %v1938_v38 }
 0x2a1   : > { %v5711_v7 = vpop.eup %5710  ;;  %5724 = vrsqrt.f32 %v1817_v58  ;;  %v1755_v16 = vmul.f32 0.03125, %v1685_v15  ;;  %v2111_v32 = vpack.c.bf16 %v2072_v3, %v2071_v1  ;;  %v2005_v62 = vmul.f32 %v7044_v43, %v1937_v56 }
 0x2a2   : > { %v5713_v13 = vpop.eup %5712  ;;  %v1820_v22 = vadd.f32 1e-05, %v1756_v5  ;;  %v2074_v44 = vadd.f32 %v7058_v29, %v2006_v28  ;;  %v1940_v10 = vmul.f32 %v5711_v7, %v6970_v2 }
 0x2a3   : > { %v1819_v20 = vadd.f32 1e-05, %v1755_v16  ;;  %5334 = vmatprep.mubr.msk.bf16.mxu1 %vm1117_vm2, %v2111_v32  ;;  %5402 = vmatprep.mubr.msk.bf16.mxu0 %vm1117_vm2, %v2111_v32  ;;  %v2073_v9 = vadd.f32 %v7058_v29, %v2005_v62  ;;  %v1939_v21 = vmul.f32 %v5713_v13, %v6979_v52 }
 0x2a4   : > { %5726 = vrsqrt.f32 %v1820_v22  ;;  %v2008_v51 = vmul.f32 %v7044_v43, %v1940_v10 }
 0x2a5   : > { %v5715_v35 = vpop.eup %5714  ;;  %5728 = vrsqrt.f32 %v1819_v20  ;;  %v2112_v31 = vpack.c.bf16 %v2074_v44, %v2073_v9  ;;  %v2007_v6 = vmul.f32 %v7044_v43, %v1939_v21  ;;  %v2539_v20 = vsub.s32 3, %v8231_v45 }
 0x2a6   : > { %v5717_v14 = vpop.eup %5716  ;;  %v2076_v2 = vadd.f32 %v7058_v29, %v2008_v51  ;;  %v1942_v36 = vmul.f32 %v5715_v35, %v6983_v48  ;;  %v7335_v35 = vld [vmem:[%s8128_s3] sm:$0xff] }
 0x2a7   : > { %5335 = vmatmul.mubr.msk.bf16.gmra.mxu1 %vm1117_vm2, %v2112_v31  ;;  %5403 = vmatmul.mubr.msk.bf16.gmra.mxu0 %vm1117_vm2, %v2112_v31  ;;  %v2075_v49 = vadd.f32 %v7058_v29, %v2007_v6  ;;  %v1941_v52 = vmul.f32 %v5717_v14, %v6991_v11  ;;  %v7338_v31 = vrot.slane %v7335_v35, %v2539_v20 }
 0x2a8   : > { %v2010_v17 = vmul.f32 %v7044_v43, %v1942_v36 }
 0x2a9   : > { %v5719_v24 = vpop.eup %5718  ;;  %v2113_v25 = vpack.c.bf16 %v2076_v2, %v2075_v49  ;;  %v2009_v42 = vmul.f32 %v7044_v43, %v1941_v52 }
 0x2aa   : > { %v5721_v34 = vpop.eup %5720  ;;  %v2078_v57 = vadd.f32 %v7058_v29, %v2010_v17  ;;  %v1944_v40 = vmul.f32 %v5719_v24, %v6997_v50 }
 0x2ab   : > { %5338 = vmatprep.mubr.msk.bf16.mxu1 %vm1117_vm2, %v2113_v25  ;;  %5406 = vmatprep.mubr.msk.bf16.mxu0 %vm1117_vm2, %v2113_v25  ;;  %v2077_v48 = vadd.f32 %v7058_v29, %v2009_v42  ;;  %v1943_v33 = vmul.f32 %v5721_v34, %v7000_v54 }
 0x2ac   : > { %v2012_v11 = vmul.f32 %v7044_v43, %v1944_v40 }
 0x2ad   : > { %v5723_v59 = vpop.eup %5722  ;;  %v2114_v39 = vpack.c.bf16 %v2078_v57, %v2077_v48  ;;  %v2011_v8 = vmul.f32 %v7044_v43, %v1943_v33 }
 0x2ae   : > { %v5725_v0 = vpop.eup %5724  ;;  %v2080_v60 = vadd.f32 %v7058_v29, %v2012_v11  ;;  %v1946_v47 = vmul.f32 %v5723_v59, %v7014_v27 }
 0x2af   : > { %5339 = vmatmul.mubr.msk.bf16.gmra.mxu1 %vm1117_vm2, %v2114_v39  ;;  %5407 = vmatmul.mubr.msk.bf16.gmra.mxu0 %vm1117_vm2, %v2114_v39  ;;  %v2079_v50 = vadd.f32 %v7058_v29, %v2011_v8  ;;  %v1945_v26 = vmul.f32 %v5725_v0, %v7020_v12 }
 0x2b0   : > { %v2014_v54 = vmul.f32 %v7044_v43, %v1946_v47 }
 0x2b1   : > { %v5727_v46 = vpop.eup %5726  ;;  %v2115_v53 = vpack.c.bf16 %v2080_v60, %v2079_v50  ;;  %v2013_v55 = vmul.f32 %v7044_v43, %v1945_v26 }
 0x2b2   : > { %v5729_v30 = vpop.eup %5728  ;;  %v2082_v4 = vadd.f32 %v7058_v29, %v2014_v54  ;;  %v1948_v41 = vmul.f32 %v5727_v46, %v7027_v23 }
 0x2b3   : > { %5342 = vmatprep.mubr.msk.bf16.mxu1 %vm1117_vm2, %v2115_v53  ;;  %5410 = vmatprep.mubr.msk.bf16.mxu0 %vm1117_vm2, %v2115_v53  ;;  %v2081_v27 = vadd.f32 %v7058_v29, %v2013_v55  ;;  %v1947_v19 = vmul.f32 %v5729_v30, %v7033_v61 }
 0x2b4   : > { %v2016_v12 = vmul.f32 %v7044_v43, %v1948_v41 }
 0x2b5   : > { %v2116_v3 = vpack.c.bf16 %v2082_v4, %v2081_v27  ;;  %v2015_v38 = vmul.f32 %v7044_v43, %v1947_v19 }
 0x2b6   : > { %v2084_v58 = vadd.f32 %v7058_v29, %v2016_v12 }
 0x2b7   : > { %5343 = vmatmul.mubr.msk.bf16.gmra.mxu1 %vm1117_vm2, %v2116_v3  ;;  %5411 = vmatmul.mubr.msk.bf16.gmra.mxu0 %vm1117_vm2, %v2116_v3  ;;  %v2083_v23 = vadd.f32 %v7058_v29, %v2015_v38  ;;  %v5604_v3 = vld [vmem:[%s8130_s5 + $0x18] sm:$0xff]  }
 0x2b8   : > { %5486 = vmatprep.subr.bf16.mxu0 %v5604_v3 }
 0x2b9   : > { %v2117_v37 = vpack.c.bf16 %v2084_v58, %v2083_v23  ;;  %5487 = vmatpush3.bf16.msra.mxu0 %v5604_v3 }
 0x2bb   : > { %5346 = vmatprep.mubr.msk.bf16.mxu1 %vm1117_vm2, %v2117_v37  ;;  %5414 = vmatprep.mubr.msk.bf16.mxu0 %vm1117_vm2, %v2117_v37 }
 0x2dc   : > { %v5356_v1 = vpop.f32.mrf.mxu0  ;;  %v7321_v28 = vpop.f32.mrf.mxu1 }
 0x2dd   : > { %v2596_v60 = vadd.f32 %v5356_v1, %v7338_v31 }
 0x2de   : > { %v2587_v61 = vpop.f32.mrf.mxu0  ;;  %v7323_v13 = vpop.f32.mrf.mxu1 }
 0x2df   : > { %v2588_v24 = vadd.f32 %v2587_v61, %v7338_v31  ;;  %v2844_v46 = vmax.f32 %v2596_v60, 0.0 }
 0x2e0   : > { %v5357_v16 = vpop.f32.mrf.mxu0  ;;  %v7325_v10 = vpop.f32.mrf.mxu1 }
 0x2e1   : > { %v1694_v56 = vpop.xlane.xlu1 %1693  ;;  %v2599_v39 = vadd.f32 %v5357_v16, %v7338_v31 }
 0x2e2   : > { %v1758_v5 = vmul.f32 0.03125, %v1694_v56  ;;  %v1691_v15 = vpop.xlane.xlu0 %1690  ;;  %v2590_v22 = vpop.f32.mrf.mxu0 }
 0x2e3   : > { %v1757_v7 = vmul.f32 0.03125, %v1691_v15  ;;  %v7328_v21 = vpop.f32.mrf.mxu1  ;;  %v2591_v36 = vadd.f32 %v2590_v22, %v7338_v31 }
 0x2e4   : > { %v1822_v32 = vadd.f32 1e-05, %v1758_v5 }
 0x2e5   : > { %v1821_v62 = vadd.f32 1e-05, %v1757_v7  ;;  %v2843_v57 = vmax.f32 %v2591_v36, 0.0 }
 0x2e6   : > { %5730 = vrsqrt.f32 %v1822_v32 }
 0x2e7   : > { %5732 = vrsqrt.f32 %v1821_v62 }
 0x2e8   : > { %v5360_v44 = vpop.f32.mrf.mxu0  ;;  %v7330_v51 = vpop.f32.mrf.mxu1 }
 0x2e9   : > { %v2612_v12 = vadd.f32 %v5360_v44, %v7338_v31 }
 0x2ea   : > { %v2603_v9 = vpop.f32.mrf.mxu0  ;;  %v7342_v52 = vpop.f32.mrf.mxu1 }
 0x2eb   : > { %v2604_v50 = vadd.f32 %v2603_v9, %v7338_v31  ;;  %v2848_v61 = vmax.f32 %v2612_v12, 0.0 }
 0x2ec   : > { %v5361_v6 = vpop.f32.mrf.mxu0  ;;  %v7349_v33 = vpop.f32.mrf.mxu1 }
 0x2ed   : > { %v2846_v55 = vmax.f32 %v2604_v50, 0.0  ;;  %v2615_v4 = vadd.f32 %v5361_v6, %v7338_v31 }
 0x2ee   : > { %v2606_v25 = vpop.f32.mrf.mxu0  ;;  %v7355_v47 = vpop.f32.mrf.mxu1 }
 0x2ef   : > { %v2607_v0 = vadd.f32 %v2606_v25, %v7338_v31  ;;  %v2849_v58 = vmax.f32 %v2615_v4, 0.0 }
 0x2f1   : > { %v2847_v54 = vmax.f32 %v2607_v0, 0.0  ;;  %v2909_v15 = vpack.c.bf16 %v2849_v58, %v2848_v61 }
 0x2f3   : > { %v5731_v14 = vpop.eup %5730  ;;  %v2908_v27 = vpack.c.bf16 %v2847_v54, %v2846_v55 }
 0x2f4   : > { %v5733_v2 = vpop.eup %5732  ;;  %v1950_v49 = vmul.f32 %v5731_v14, %v7131_v18  ;;  %v2842_v18 = vmax.f32 %v2588_v24, 0.0 }
 0x2f5   : > { %v1949_v17 = vmul.f32 %v5733_v2, %v7137_v63 }
 0x2f6   : > { %v2018_v42 = vmul.f32 %v7044_v43, %v1950_v49  ;;  %v2906_v8 = vpack.c.bf16 %v2843_v57, %v2842_v18 }
 0x2f7   : > { %v2017_v34 = vmul.f32 %v7044_v43, %v1949_v17 }
 0x2f8   : > { %v5364_v40 = vpop.f32.mrf.mxu0  ;;  %v2086_v48 = vadd.f32 %v7058_v29, %v2018_v42  ;;  %v7361_v26 = vpop.f32.mrf.mxu1 }
 0x2f9   : > { %v2085_v11 = vadd.f32 %v7058_v29, %v2017_v34  ;;  %v2845_v29 = vmax.f32 %v2599_v39, 0.0  ;;  %v2628_v22 = vadd.f32 %v5364_v40, %v7338_v31 }
 0x2fa   : > { %v2619_v59 = vpop.f32.mrf.mxu0  ;;  %v7364_v41 = vpop.f32.mrf.mxu1 }
 0x2fb   : > { %v2118_v63 = vpack.c.bf16 %v2086_v48, %v2085_v11  ;;  %v2907_v30 = vpack.c.bf16 %v2845_v29, %v2844_v46  ;;  %v2620_v38 = vadd.f32 %v2619_v59, %v7338_v31  ;;  %v2852_v2 = vmax.f32 %v2628_v22, 0.0 }
 0x2fc   : > { %v5365_v43 = vpop.f32.mrf.mxu0  ;;  %v7374_v23 = vpop.f32.mrf.mxu1 }
 0x2fd   : > { %5347 = vmatmul.mubr.msk.bf16.gmra.mxu1 %vm1117_vm2, %v2118_v63  ;;  %5415 = vmatmul.mubr.msk.bf16.gmra.mxu0 %vm1117_vm2, %v2118_v63  ;;  %v2850_v56 = vmax.f32 %v2620_v38, 0.0  ;;  %v2631_v7 = vadd.f32 %v5365_v43, %v7338_v31 }
 0x2fe   : > { %5422 = vmatprep.mubr.msk.bf16.mxu1 %vm1117_vm2, %v2906_v8  ;;  %v2622_v53 = vpop.f32.mrf.mxu0  ;;  %v7377_v16 = vpop.f32.mrf.mxu1 }
 0x2ff   : > { %v2623_v19 = vadd.f32 %v2622_v53, %v7338_v31  ;;  %v2853_v6 = vmax.f32 %v2631_v7, 0.0 }
 0x301   : > { %v2851_v37 = vmax.f32 %v2623_v19, 0.0  ;;  %v2911_v24 = vpack.c.bf16 %v2853_v6, %v2852_v2 }
 0x303   : > { %v2910_v32 = vpack.c.bf16 %v2851_v37, %v2850_v56 }
 0x305   : > { %5423 = vmatmul.mubr.msk.bf16.vlgmr.msra.gmra.mxu1 %vm1117_vm2, %v2907_v30 }
 0x306   : > { %5426 = vmatprep.mubr.msk.bf16.mxu1 %vm1117_vm2, %v2908_v27 }
 0x308   : > { %v5368_v1 = vpop.f32.mrf.mxu0  ;;  %v7380_v44 = vpop.f32.mrf.mxu1 }
 0x309   : > { %v2644_v34 = vadd.f32 %v5368_v1, %v7338_v31 }
 0x30a   : > { %v2635_v5 = vpop.f32.mrf.mxu0  ;;  %v7386_v36 = vpop.f32.mrf.mxu1 }
 0x30b   : > { %v2636_v20 = vadd.f32 %v2635_v5, %v7338_v31  ;;  %v2856_v48 = vmax.f32 %v2644_v34, 0.0 }
 0x30c   : > { %v5369_v62 = vpop.f32.mrf.mxu0  ;;  %v7390_v57 = vpop.f32.mrf.mxu1 }
 0x30d   : > { %5427 = vmatmul.mubr.msk.bf16.gmra.mxu1 %vm1117_vm2, %v2909_v15  ;;  %v2854_v49 = vmax.f32 %v2636_v20, 0.0  ;;  %v2647_v25 = vadd.f32 %v5369_v62, %v7338_v31 }
 0x30e   : > { %5430 = vmatprep.mubr.msk.bf16.mxu1 %vm1117_vm2, %v2910_v32  ;;  %v2638_v9 = vpop.f32.mrf.mxu0  ;;  %v7394_v11 = vpop.f32.mrf.mxu1 }
 0x30f   : > { %v2639_v14 = vadd.f32 %v2638_v9, %v7338_v31  ;;  %v2857_v40 = vmax.f32 %v2647_v25, 0.0 }
 0x311   : > { %v2855_v17 = vmax.f32 %v2639_v14, 0.0  ;;  %v2913_v59 = vpack.c.bf16 %v2857_v40, %v2856_v48 }
 0x313   : > { %v2912_v42 = vpack.c.bf16 %v2855_v17, %v2854_v49 }
 0x315   : > { %5431 = vmatmul.mubr.msk.bf16.gmra.mxu1 %vm1117_vm2, %v2911_v24 }
 0x316   : > { %5434 = vmatprep.mubr.msk.bf16.mxu1 %vm1117_vm2, %v2912_v42 }
 0x318   : > { %v7396_v39 = vpop.f32.mrf.mxu1 }
 0x319   : > { %v5372_v18 = vpop.f32.mrf.mxu0 }
 0x31a   : > { %v2660_v43 = vadd.f32 %v5372_v18, %v7338_v31  ;;  %v7402_v50 = vpop.f32.mrf.mxu1 }
 0x31b   : > { %v2651_v63 = vpop.f32.mrf.mxu0 }
 0x31c   : > { %v2652_v0 = vadd.f32 %v2651_v63, %v7338_v31  ;;  %v2860_v30 = vmax.f32 %v2660_v43, 0.0  ;;  %v7405_v4 = vpop.f32.mrf.mxu1 }
 0x31d   : > { %v5373_v8 = vpop.f32.mrf.mxu0  ;;  %5435 = vmatmul.mubr.msk.bf16.gmra.mxu1 %vm1117_vm2, %v2913_v59 }
 0x31e   : > { %v2663_v60 = vadd.f32 %v5373_v8, %v7338_v31  ;;  %v2858_v53 = vmax.f32 %v2652_v0, 0.0  ;;  %v7408_v12 = vpop.f32.mrf.mxu1 }
 0x31f   : > { %v2654_v29 = vpop.f32.mrf.mxu0 }
 0x320   : > { %v2655_v54 = vadd.f32 %v2654_v29, %v7338_v31  ;;  %v2861_v46 = vmax.f32 %v2663_v60, 0.0 }
 0x322   : > { %v2859_v55 = vmax.f32 %v2655_v54, 0.0  ;;  %v2915_v19 = vpack.c.bf16 %v2861_v46, %v2860_v30 }
 0x324   : > { %v2914_v27 = vpack.c.bf16 %v2859_v55, %v2858_v53 }
 0x326   : > { %5438 = vmatprep.mubr.msk.bf16.mxu1 %vm1117_vm2, %v2914_v27 }
 0x327   : > { %5439 = vmatmul.mubr.msk.bf16.gmra.mxu1 %vm1117_vm2, %v2915_v19 }
 0x328   : > { %v5376_v3 = vpop.f32.mrf.mxu0  ;;  %v7411_v38 = vpop.f32.mrf.mxu1 }
 0x329   : > { %v2676_v5 = vadd.f32 %v5376_v3, %v7338_v31 }
 0x32a   : > { %v2667_v58 = vpop.f32.mrf.mxu0  ;;  %v7413_v1 = vpop.f32.mrf.mxu1 }
 0x32b   : > { %v2668_v61 = vadd.f32 %v2667_v58, %v7338_v31  ;;  %v2864_v9 = vmax.f32 %v2676_v5, 0.0 }
 0x32c   : > { %v5377_v37 = vpop.f32.mrf.mxu0  ;;  %v7419_v22 = vpop.f32.mrf.mxu1 }
 0x32d   : > { %v2679_v56 = vadd.f32 %v5377_v37, %v7338_v31  ;;  %v2862_v62 = vmax.f32 %v2668_v61, 0.0 }
 0x32e   : > { %v2670_v15 = vpop.f32.mrf.mxu0  ;;  %v7421_v2 = vpop.f32.mrf.mxu1 }
 0x32f   : > { %v2671_v7 = vadd.f32 %v2670_v15, %v7338_v31  ;;  %v2865_v32 = vmax.f32 %v2679_v56, 0.0 }
 0x331   : > { %v2863_v20 = vmax.f32 %v2671_v7, 0.0  ;;  %v2917_v14 = vpack.c.bf16 %v2865_v32, %v2864_v9 }
 0x333   : > { %v2916_v6 = vpack.c.bf16 %v2863_v20, %v2862_v62 }
 0x335   : > { %5442 = vmatprep.mubr.msk.bf16.mxu1 %vm1117_vm2, %v2916_v6 }
 0x336   : > { %5443 = vmatmul.mubr.msk.bf16.gmra.mxu1 %vm1117_vm2, %v2917_v14 }
 0x337   : > { %v7425_v49 = vpop.f32.mrf.mxu1  ;;  %v5380_v17 = vpop.f32.mrf.mxu0 }
 0x338   : > { %v2692_v18 = vadd.f32 %v5380_v17, %v7338_v31 }
 0x339   : > { %v7427_v24 = vpop.f32.mrf.mxu1  ;;  %v2683_v25 = vpop.f32.mrf.mxu0 }
 0x33a   : > { %v2684_v40 = vadd.f32 %v2683_v25, %v7338_v31  ;;  %v2868_v46 = vmax.f32 %v2692_v18, 0.0 }
 0x33b   : > { %v7429_v42 = vpop.f32.mrf.mxu1  ;;  %v5381_v34 = vpop.f32.mrf.mxu0 }
 0x33c   : > { %v2695_v48 = vadd.f32 %v5381_v34, %v7338_v31  ;;  %v2866_v29 = vmax.f32 %v2684_v40, 0.0 }
 0x33d   : > { %v7434_v59 = vpop.f32.mrf.mxu1  ;;  %v2686_v63 = vpop.f32.mrf.mxu0 }
 0x33e   : > { %v2687_v8 = vadd.f32 %v2686_v63, %v7338_v31  ;;  %v2869_v0 = vmax.f32 %v2695_v48, 0.0  ;;  %v5605_v63 = vld [vmem:[%s8130_s5 + $0x10] sm:$0xff]  }
 0x33f   : > { %v7437_v60 = vpop.f32.mrf.mxu1  ;;  %v5384_v43 = vpop.f32.mrf.mxu0  ;;  %5488 = vmatprep.subr.bf16.mxu0 %v5605_v63 }
 0x340   : > { %v2867_v54 = vmax.f32 %v2687_v8, 0.0  ;;  %v2919_v30 = vpack.c.bf16 %v2869_v0, %v2868_v46  ;;  %v2708_v37 = vadd.f32 %v5384_v43, %v7338_v31  ;;  %5489 = vmatpush3.bf16.msra.mxu0 %v5605_v63 }
 0x341   : > { %v2699_v53 = vpop.f32.mrf.mxu0  ;;  %v7439_v27 = vpop.f32.mrf.mxu1 }
 0x342   : > { %v2918_v55 = vpack.c.bf16 %v2867_v54, %v2866_v29  ;;  %v2700_v3 = vadd.f32 %v2699_v53, %v7338_v31  ;;  %v2872_v20 = vmax.f32 %v2708_v37, 0.0 }
 0x343   : > { %v5385_v19 = vpop.f32.mrf.mxu0  ;;  %v7447_v5 = vpop.f32.mrf.mxu1 }
 0x344   : > { %v2711_v58 = vadd.f32 %v5385_v19, %v7338_v31  ;;  %5446 = vmatprep.mubr.msk.bf16.mxu1 %vm1117_vm2, %v2918_v55  ;;  %v2870_v32 = vmax.f32 %v2700_v3, 0.0 }
 0x345   : > { %v2702_v61 = vpop.f32.mrf.mxu0  ;;  %5447 = vmatmul.mubr.msk.bf16.gmra.mxu1 %vm1117_vm2, %v2919_v30  ;;  %v7449_v17 = vpop.f32.mrf.mxu1 }
 0x346   : > { %v2703_v56 = vadd.f32 %v2702_v61, %v7338_v31  ;;  %v2873_v15 = vmax.f32 %v2711_v58, 0.0 }
 0x347   : > { %v5388_v7 = vpop.f32.mrf.mxu0  ;;  %v7460_v0 = vpop.f32.mrf.mxu1 }
 0x348   : > { %v2871_v62 = vmax.f32 %v2703_v56, 0.0  ;;  %v2921_v14 = vpack.c.bf16 %v2873_v15, %v2872_v20  ;;  %v2724_v48 = vadd.f32 %v5388_v7, %v7338_v31 }
 0x349   : > { %v2715_v9 = vpop.f32.mrf.mxu0  ;;  %v7462_v19 = vpop.f32.mrf.mxu1 }
 0x34a   : > { %v2920_v6 = vpack.c.bf16 %v2871_v62, %v2870_v32  ;;  %v2716_v34 = vadd.f32 %v2715_v9, %v7338_v31  ;;  %v2876_v53 = vmax.f32 %v2724_v48, 0.0 }
 0x34b   : > { %v5389_v25 = vpop.f32.mrf.mxu0  ;;  %v7470_v32 = vpop.f32.mrf.mxu1 }
 0x34c   : > { %v2727_v40 = vadd.f32 %v5389_v25, %v7338_v31  ;;  %5450 = vmatprep.mubr.msk.bf16.mxu1 %vm1117_vm2, %v2920_v6  ;;  %v2874_v54 = vmax.f32 %v2716_v34, 0.0 }
 0x34d   : > { %v2718_v18 = vpop.f32.mrf.mxu0  ;;  %5451 = vmatmul.mubr.msk.bf16.gmra.mxu1 %vm1117_vm2, %v2921_v14 }
 0x34e   : > { %v2719_v8 = vadd.f32 %v2718_v18, %v7338_v31  ;;  %v2877_v43 = vmax.f32 %v2727_v40, 0.0  ;;  %v7472_v40 = vpop.f32.mrf.mxu1 }
 0x34f   : > { %v5392_v29 = vpop.f32.mrf.mxu0 }
 0x350   : > { %v2875_v46 = vmax.f32 %v2719_v8, 0.0  ;;  %v2923_v3 = vpack.c.bf16 %v2877_v43, %v2876_v53  ;;  %v2740_v56 = vadd.f32 %v5392_v29, %v7338_v31 }
 0x351   : > { %v2731_v55 = vpop.f32.mrf.mxu0 }
 0x352   : > { %v2922_v30 = vpack.c.bf16 %v2875_v46, %v2874_v54  ;;  %v2732_v37 = vadd.f32 %v2731_v55, %v7338_v31  ;;  %v2880_v14 = vmax.f32 %v2740_v56, 0.0  ;;  %v7480_v46 = vpop.f32.mrf.mxu1 }
 0x353   : > { %v5393_v58 = vpop.f32.mrf.mxu0 }
 0x354   : > { %v2743_v61 = vadd.f32 %v5393_v58, %v7338_v31  ;;  %5454 = vmatprep.mubr.msk.bf16.mxu1 %vm1117_vm2, %v2922_v30  ;;  %v2878_v9 = vmax.f32 %v2732_v37, 0.0  ;;  %v7482_v56 = vpop.f32.mrf.mxu1 }
 0x355   : > { %v2734_v15 = vpop.f32.mrf.mxu0  ;;  %5455 = vmatmul.mubr.msk.bf16.gmra.mxu1 %vm1117_vm2, %v2923_v3 }
 0x356   : > { %v2735_v7 = vadd.f32 %v2734_v15, %v7338_v31  ;;  %v2881_v62 = vmax.f32 %v2743_v61, 0.0 }
 0x357   : > { %v5396_v20 = vpop.f32.mrf.mxu0 }
 0x358   : > { %v2879_v6 = vmax.f32 %v2735_v7, 0.0  ;;  %v2925_v48 = vpack.c.bf16 %v2881_v62, %v2880_v14  ;;  %v2756_v43 = vadd.f32 %v5396_v20, %v7338_v31 }
 0x359   : > { %v2747_v25 = vpop.f32.mrf.mxu0 }
 0x35a   : > { %v2924_v34 = vpack.c.bf16 %v2879_v6, %v2878_v9  ;;  %v2748_v63 = vadd.f32 %v2747_v25, %v7338_v31  ;;  %v2884_v58 = vmax.f32 %v2756_v43, 0.0  ;;  %v7490_v25 = vpop.f32.mrf.mxu1 }
 0x35b   : > { %v5397_v18 = vpop.f32.mrf.mxu0 }
 0x35c   : > { %v2759_v8 = vadd.f32 %v5397_v18, %v7338_v31  ;;  %5458 = vmatprep.mubr.msk.bf16.mxu1 %vm1117_vm2, %v2924_v34  ;;  %v2882_v30 = vmax.f32 %v2748_v63, 0.0 }
 0x35d   : > { %v2750_v29 = vpop.f32.mrf.mxu0  ;;  %5459 = vmatmul.mubr.msk.bf16.gmra.mxu1 %vm1117_vm2, %v2925_v48 }
 0x35e   : > { %v2751_v54 = vadd.f32 %v2750_v29, %v7338_v31  ;;  %v2885_v53 = vmax.f32 %v2759_v8, 0.0 }
 0x35f   : > { %v5400_v55 = vpop.f32.mrf.mxu0 }
 0x360   : > { %v2883_v3 = vmax.f32 %v2751_v54, 0.0  ;;  %v2927_v15 = vpack.c.bf16 %v2885_v53, %v2884_v58  ;;  %v2772_v9 = vadd.f32 %v5400_v55, %v7338_v31  ;;  %v7492_v54 = vpop.f32.mrf.mxu1 }
 0x361   : > { %v2763_v37 = vpop.f32.mrf.mxu0 }
 0x362   : > { %v2926_v61 = vpack.c.bf16 %v2883_v3, %v2882_v30  ;;  %v2764_v62 = vadd.f32 %v2763_v37, %v7338_v31  ;;  %v2888_v8 = vmax.f32 %v2772_v9, 0.0 }
 0x363   : > { %v5401_v7 = vpop.f32.mrf.mxu0 }
 0x364   : > { %v2775_v20 = vadd.f32 %v5401_v7, %v7338_v31  ;;  %5462 = vmatprep.mubr.msk.bf16.mxu1 %vm1117_vm2, %v2926_v61  ;;  %v2886_v18 = vmax.f32 %v2764_v62, 0.0 }
 0x365   : > { %v2766_v6 = vpop.f32.mrf.mxu0  ;;  %5463 = vmatmul.mubr.msk.bf16.gmra.mxu1 %vm1117_vm2, %v2927_v15  ;;  %v7500_v15 = vpop.f32.mrf.mxu1 }
 0x366   : > { %v2767_v14 = vadd.f32 %v2766_v6, %v7338_v31  ;;  %v2889_v34 = vmax.f32 %v2775_v20, 0.0 }
 0x367   : > { %v5404_v48 = vpop.f32.mrf.mxu0 }
 0x368   : > { %v2887_v63 = vmax.f32 %v2767_v14, 0.0  ;;  %v2929_v53 = vpack.c.bf16 %v2889_v34, %v2888_v8  ;;  %v2788_v58 = vadd.f32 %v5404_v48, %v7338_v31 }
 0x369   : > { %v2779_v43 = vpop.f32.mrf.mxu0 }
 0x36a   : > { %v2928_v29 = vpack.c.bf16 %v2887_v63, %v2886_v18  ;;  %v2780_v55 = vadd.f32 %v2779_v43, %v7338_v31  ;;  %v2892_v6 = vmax.f32 %v2788_v58, 0.0  ;;  %v7502_v18 = vpop.f32.mrf.mxu1 }
 0x36b   : > { %v5405_v30 = vpop.f32.mrf.mxu0  ;;  %8257 = vst [vmem:[#allocation5_spill] sm:$0xff] %v7502_v18 }
 0x36c   : > { %v2791_v3 = vadd.f32 %v5405_v30, %v7338_v31  ;;  %5466 = vmatprep.mubr.msk.bf16.mxu1 %vm1117_vm2, %v2928_v29  ;;  %v2890_v20 = vmax.f32 %v2780_v55, 0.0  ;;  %v7510_v55 = vpop.f32.mrf.mxu1 }
 0x36d   : > { %v2782_v37 = vpop.f32.mrf.mxu0  ;;  %5467 = vmatmul.mubr.msk.bf16.gmra.mxu1 %vm1117_vm2, %v2929_v53  ;;  %8258 = vst [vmem:[#allocation3_spill] sm:$0xff] %v7510_v55 }
 0x36e   : > { %v2783_v61 = vadd.f32 %v2782_v37, %v7338_v31  ;;  %v2893_v7 = vmax.f32 %v2791_v3, 0.0 }
 0x36f   : > { %v5408_v62 = vpop.f32.mrf.mxu0 }
 0x370   : > { %v2891_v9 = vmax.f32 %v2783_v61, 0.0  ;;  %v2931_v63 = vpack.c.bf16 %v2893_v7, %v2892_v6  ;;  %v2804_v29 = vadd.f32 %v5408_v62, %v7338_v31  ;;  %v7512_v6 = vpop.f32.mrf.mxu1 }
 0x371   : > { %v2795_v14 = vpop.f32.mrf.mxu0  ;;  %8259 = vst [vmem:[#allocation4_spill] sm:$0xff] %v7512_v6 }
 0x372   : > { %v2930_v34 = vpack.c.bf16 %v2891_v9, %v2890_v20  ;;  %v2796_v48 = vadd.f32 %v2795_v14, %v7338_v31  ;;  %v2896_v7 = vmax.f32 %v2804_v29, 0.0 }
 0x373   : > { %v5409_v8 = vpop.f32.mrf.mxu0 }
 0x374   : > { %v2807_v43 = vadd.f32 %v5409_v8, %v7338_v31  ;;  %5470 = vmatprep.mubr.msk.bf16.mxu1 %vm1117_vm2, %v2930_v34  ;;  %v2894_v37 = vmax.f32 %v2796_v48, 0.0 }
 0x375   : > { %v2798_v53 = vpop.f32.mrf.mxu0  ;;  %5471 = vmatmul.mubr.msk.bf16.gmra.mxu1 %vm1117_vm2, %v2931_v63 }
 0x376   : > { %v2799_v30 = vadd.f32 %v2798_v53, %v7338_v31  ;;  %v2897_v3 = vmax.f32 %v2807_v43, 0.0  ;;  %v7520_v43 = vpop.f32.mrf.mxu1 }
 0x377   : > { %v5412_v58 = vpop.f32.mrf.mxu0  ;;  %8260 = vst [vmem:[#allocation8_spill] sm:$0xff] %v7520_v43 }
 0x378   : > { %v2895_v61 = vmax.f32 %v2799_v30, 0.0  ;;  %v2933_v14 = vpack.c.bf16 %v2897_v3, %v2896_v7  ;;  %v2820_v63 = vadd.f32 %v5412_v58, %v7338_v31  ;;  %v7522_v7 = vpop.f32.mrf.mxu1 }
 0x379   : > { %v2811_v20 = vpop.f32.mrf.mxu0  ;;  %8261 = vst [vmem:[#allocation9_spill] sm:$0xff] %v7522_v7 }
 0x37a   : > { %v2932_v9 = vpack.c.bf16 %v2895_v61, %v2894_v37  ;;  %v2812_v62 = vadd.f32 %v2811_v20, %v7338_v31  ;;  %v2900_v3 = vmax.f32 %v2820_v63, 0.0  ;;  %v7526_v58 = vpop.f32.mrf.mxu1 }
 0x37b   : > { %v5413_v34 = vpop.f32.mrf.mxu0  ;;  %8262 = vst [vmem:[#allocation6_spill] sm:$0xff] %v7526_v58 }
 0x37c   : > { %v2823_v8 = vadd.f32 %v5413_v34, %v7338_v31  ;;  %5474 = vmatprep.mubr.msk.bf16.mxu1 %vm1117_vm2, %v2932_v9  ;;  %v2898_v30 = vmax.f32 %v2812_v62, 0.0  ;;  %v7528_v9 = vpop.f32.mrf.mxu1 }
 0x37d   : > { %v2814_v53 = vpop.f32.mrf.mxu0  ;;  %5475 = vmatmul.mubr.msk.bf16.gmra.mxu1 %vm1117_vm2, %v2933_v14  ;;  %8263 = vst [vmem:[#allocation7_spill] sm:$0xff] %v7528_v9 }
 0x37e   : > { %v2815_v48 = vadd.f32 %v2814_v53, %v7338_v31  ;;  %v2901_v29 = vmax.f32 %v2823_v8, 0.0  ;;  %v7530_v14 = vpop.f32.mrf.mxu1 }
 0x37f   : > { %8264 = vst [vmem:[#allocation12_spill] sm:$0xff] %v7530_v14 }
 0x380   : > { %v2899_v37 = vmax.f32 %v2815_v48, 0.0  ;;  %v2935_v20 = vpack.c.bf16 %v2901_v29, %v2900_v3  ;;  %v7532_v34 = vpop.f32.mrf.mxu1 }
 0x381   : > { %8265 = vst [vmem:[#allocation13_spill] sm:$0xff] %v7532_v34 }
 0x382   : > { %v2934_v61 = vpack.c.bf16 %v2899_v37, %v2898_v30  ;;  %v7534_v8 = vpop.f32.mrf.mxu1 }
 0x383   : > { %8266 = vst [vmem:[#allocation10_spill] sm:$0xff] %v7534_v8 }
 0x384   : > { %5478 = vmatprep.mubr.msk.bf16.mxu1 %vm1117_vm2, %v2934_v61  ;;  %v7536_v62 = vpop.f32.mrf.mxu1 }
 0x385   : > { %5479 = vmatmul.mubr.msk.bf16.gmra.mxu1 %vm1117_vm2, %v2935_v20  ;;  %8267 = vst [vmem:[#allocation11_spill] sm:$0xff] %v7536_v62 }
 0x386   : > { %v7538_v63 = vpop.f32.mrf.mxu1 }
 0x387   : > { %8268 = vst [vmem:[#allocation16_spill] sm:$0xff] %v7538_v63 }
 0x388   : > { %v7540_v53 = vpop.f32.mrf.mxu1 }
 0x389   : > { %8269 = vst [vmem:[#allocation14_spill] sm:$0xff] %v7540_v53 }
 0x38a   : > { %v7542_v48 = vpop.f32.mrf.mxu1 }
 0x38b   : > { %8270 = vst [vmem:[#allocation15_spill] sm:$0xff] %v7542_v48 }
 0x38c   : > { %v7544_v29 = vpop.f32.mrf.mxu1 }
 0x38d   : > { %8271 = vst [vmem:[#allocation2_spill] sm:$0xff] %v7544_v29 }
 0x38e   : > { %v7546_v30 = vpop.f32.mrf.mxu1 }
 0x38f   : > { %8272 = vst [vmem:[#allocation18_spill] sm:$0xff] %v7546_v30 }
 0x390   : > { %v7548_v37 = vpop.f32.mrf.mxu1 }
 0x391   : > { %8273 = vst [vmem:[#allocation19_spill] sm:$0xff] %v7548_v37 }
 0x392   : > { %v7550_v3 = vpop.f32.mrf.mxu1 }
 0x393   : > { %8274 = vst [vmem:[#allocation17_spill] sm:$0xff] %v7550_v3 }
 0x394   : > { %v7552_v61 = vpop.f32.mrf.mxu1 }
 0x395   : > { %8275 = vst [vmem:[#allocation20_spill] sm:$0xff] %v7552_v61  ;;  %v2940_v61 = vsub.s32 4, %v8231_v45 }
 0x3bd   : > { %v7554_v20 = vpop.f32.mrf.mxu1  ;;  %v5416_v8 = vpop.f32.mrf.mxu0 }
 0x3be   : > { %8276 = vst [vmem:[#allocation22_spill] sm:$0xff] %v7554_v20  ;;  %v2836_v30 = vadd.f32 %v5416_v8, %v7338_v31 }
 0x3bf   : > { %v7556_v62 = vpop.f32.mrf.mxu1  ;;  %v2827_v63 = vpop.f32.mrf.mxu0 }
 0x3c0   : > { %8277 = vst [vmem:[#allocation21_spill] sm:$0xff] %v7556_v62  ;;  %v2828_v48 = vadd.f32 %v2827_v63, %v7338_v31  ;;  %v2904_v7 = vmax.f32 %v2836_v30, 0.0 }
 0x3c1   : > { %v7558_v34 = vpop.f32.mrf.mxu1  ;;  %v5417_v53 = vpop.f32.mrf.mxu0 }
 0x3c2   : > { %8278 = vst [vmem:[#allocation23_spill] sm:$0xff] %v7558_v34  ;;  %v2839_v29 = vadd.f32 %v5417_v53, %v7338_v31  ;;  %v2902_v62 = vmax.f32 %v2828_v48, 0.0  ;;  %v7568_v34 = vrot.slane %v7335_v35, %v2940_v61 }
 0x3c3   : > { %v7563_v37 = vpop.f32.mrf.mxu1  ;;  %v2830_v3 = vpop.f32.mrf.mxu0 }
 0x3c4   : > { %8279 = vst [vmem:[#allocation24_spill] sm:$0xff] %v7563_v37  ;;  %v2831_v20 = vadd.f32 %v2830_v3, %v7338_v31  ;;  %v2905_v14 = vmax.f32 %v2839_v29, 0.0 }
 0x3c5   : > { %v5424_v9 = vpop.f32.mrf.mxu1 }
 0x3c6   : > { %v2903_v58 = vmax.f32 %v2831_v20, 0.0  ;;  %v2937_v53 = vpack.c.bf16 %v2905_v14, %v2904_v7  ;;  %v3093_v31 = vadd.f32 %v5424_v9, %v7568_v34 }
 0x3c7   : > { %v3084_v63 = vpop.f32.mrf.mxu1 }
 0x3c8   : > { %v2936_v43 = vpack.c.bf16 %v2903_v58, %v2902_v62  ;;  %v3085_v8 = vadd.f32 %v3084_v63, %v7568_v34  ;;  %v3341_v58 = vmax.f32 %v3093_v31, 0.0 }
 0x3c9   : > { %v5425_v6 = vpop.f32.mrf.mxu1 }
 0x3ca   : > { %v3096_v37 = vadd.f32 %v5425_v6, %v7568_v34  ;;  %5482 = vmatprep.mubr.msk.bf16.mxu1 %vm1117_vm2, %v2936_v43  ;;  %v3339_v3 = vmax.f32 %v3085_v8, 0.0 }
 0x3cb   : > { %v3087_v29 = vpop.f32.mrf.mxu1  ;;  %5483 = vmatmul.mubr.msk.bf16.gmra.mxu1 %vm1117_vm2, %v2937_v53 }
 0x3cc   : > { %v3088_v48 = vadd.f32 %v3087_v29, %v7568_v34  ;;  %v3342_v30 = vmax.f32 %v3096_v37, 0.0 }
 0x3cd   : > { %v5428_v35 = vpop.f32.mrf.mxu1 }
 0x3ce   : > { %v3340_v61 = vmax.f32 %v3088_v48, 0.0  ;;  %v3404_v62 = vpack.c.bf16 %v3342_v30, %v3341_v58  ;;  %v3109_v9 = vadd.f32 %v5428_v35, %v7568_v34 }
 0x3cf   : > { %v3100_v7 = vpop.f32.mrf.mxu1 }
 0x3d0   : > { %v3403_v14 = vpack.c.bf16 %v3340_v61, %v3339_v3  ;;  %v3101_v6 = vadd.f32 %v3100_v7, %v7568_v34  ;;  %v3345_v48 = vmax.f32 %v3109_v9, 0.0 }
 0x3d1   : > { %v5429_v20 = vpop.f32.mrf.mxu1 }
 0x3d2   : > { %v3112_v43 = vadd.f32 %v5429_v20, %v7568_v34  ;;  %5490 = vmatprep.mubr.msk.bf16.mxu0 %vm1117_vm2, %v3403_v14  ;;  %v3343_v31 = vmax.f32 %v3101_v6, 0.0 }
 0x3d3   : > { %v3103_v63 = vpop.f32.mrf.mxu1  ;;  %5491 = vmatmul.mubr.msk.bf16.vlgmr.msra.gmra.mxu0 %vm1117_vm2, %v3404_v62 }
 0x3d4   : > { %v3104_v37 = vadd.f32 %v3103_v63, %v7568_v34  ;;  %v3346_v53 = vmax.f32 %v3112_v43, 0.0 }
 0x3d5   : > { %v5432_v8 = vpop.f32.mrf.mxu1 }
 0x3d6   : > { %v3344_v29 = vmax.f32 %v3104_v37, 0.0  ;;  %v3406_v61 = vpack.c.bf16 %v3346_v53, %v3345_v48  ;;  %v3125_v35 = vadd.f32 %v5432_v8, %v7568_v34 }
 0x3d7   : > { %v3116_v30 = vpop.f32.mrf.mxu1 }
 0x3d8   : > { %v3405_v3 = vpack.c.bf16 %v3344_v29, %v3343_v31  ;;  %v3117_v7 = vadd.f32 %v3116_v30, %v7568_v34  ;;  %v3349_v37 = vmax.f32 %v3125_v35, 0.0 }
 0x3d9   : > { %v5433_v58 = vpop.f32.mrf.mxu1 }
 0x3da   : > { %v3128_v14 = vadd.f32 %v5433_v58, %v7568_v34  ;;  %5494 = vmatprep.mubr.msk.bf16.mxu0 %vm1117_vm2, %v3405_v3  ;;  %v3347_v9 = vmax.f32 %v3117_v7, 0.0 }
 0x3db   : > { %v3119_v62 = vpop.f32.mrf.mxu1  ;;  %5495 = vmatmul.mubr.msk.bf16.gmra.mxu0 %vm1117_vm2, %v3406_v61 }
 0x3dc   : > { %v3120_v20 = vadd.f32 %v3119_v62, %v7568_v34  ;;  %v3350_v6 = vmax.f32 %v3128_v14, 0.0 }
 0x3dd   : > { %v5436_v43 = vpop.f32.mrf.mxu1 }
 0x3de   : > { %v3348_v63 = vmax.f32 %v3120_v20, 0.0  ;;  %v3408_v29 = vpack.c.bf16 %v3350_v6, %v3349_v37  ;;  %v3141_v8 = vadd.f32 %v5436_v43, %v7568_v34 }
 0x3df   : > { %v3132_v53 = vpop.f32.mrf.mxu1 }
 0x3e0   : > { %v3407_v31 = vpack.c.bf16 %v3348_v63, %v3347_v9  ;;  %v3133_v30 = vadd.f32 %v3132_v53, %v7568_v34  ;;  %v3353_v62 = vmax.f32 %v3141_v8, 0.0 }
 0x3e1   : > { %v5437_v48 = vpop.f32.mrf.mxu1 }
 0x3e2   : > { %v3144_v3 = vadd.f32 %v5437_v48, %v7568_v34  ;;  %5498 = vmatprep.mubr.msk.bf16.mxu0 %vm1117_vm2, %v3407_v31  ;;  %v3351_v14 = vmax.f32 %v3133_v30, 0.0 }
 0x3e3   : > { %v3135_v61 = vpop.f32.mrf.mxu1  ;;  %5499 = vmatmul.mubr.msk.bf16.gmra.mxu0 %vm1117_vm2, %v3408_v29 }
 0x3e4   : > { %v3136_v58 = vadd.f32 %v3135_v61, %v7568_v34  ;;  %v3354_v7 = vmax.f32 %v3144_v3, 0.0 }
 0x3e6   : > { %v3352_v35 = vmax.f32 %v3136_v58, 0.0  ;;  %v3410_v9 = vpack.c.bf16 %v3354_v7, %v3353_v62 }
 0x3e7   : > { %v5440_v20 = vpop.f32.mrf.mxu1 }
 0x3e8   : > { %v3409_v6 = vpack.c.bf16 %v3352_v35, %v3351_v14  ;;  %v3157_v31 = vadd.f32 %v5440_v20, %v7568_v34 }
 0x3e9   : > { %v3148_v63 = vpop.f32.mrf.mxu1 }
 0x3ea   : > { %5502 = vmatprep.mubr.msk.bf16.mxu0 %vm1117_vm2, %v3409_v6  ;;  %v3149_v43 = vadd.f32 %v3148_v63, %v7568_v34  ;;  %v3357_v61 = vmax.f32 %v3157_v31, 0.0 }
 0x3eb   : > { %v5441_v37 = vpop.f32.mrf.mxu1  ;;  %5503 = vmatmul.mubr.msk.bf16.gmra.mxu0 %vm1117_vm2, %v3410_v9 }
 0x3ec   : > { %v3160_v53 = vadd.f32 %v5441_v37, %v7568_v34  ;;  %v3355_v3 = vmax.f32 %v3149_v43, 0.0 }
 0x3ed   : > { %v3151_v29 = vpop.f32.mrf.mxu1 }
 0x3ee   : > { %v3152_v48 = vadd.f32 %v3151_v29, %v7568_v34  ;;  %v3358_v30 = vmax.f32 %v3160_v53, 0.0 }
 0x3f0   : > { %v3356_v8 = vmax.f32 %v3152_v48, 0.0  ;;  %v3412_v7 = vpack.c.bf16 %v3358_v30, %v3357_v61 }
 0x3f2   : > { %v3411_v58 = vpack.c.bf16 %v3356_v8, %v3355_v3 }
 0x3f4   : > { %5506 = vmatprep.mubr.msk.bf16.mxu0 %vm1117_vm2, %v3411_v58 }
 0x3f5   : > { %5507 = vmatmul.mubr.msk.bf16.gmra.mxu0 %vm1117_vm2, %v3412_v7 }
 0x3f6   : > { %v5444_v14 = vpop.f32.mrf.mxu1 }
 0x3f7   : > { %v3173_v9 = vadd.f32 %v5444_v14, %v7568_v34 }
 0x3f8   : > { %v3164_v35 = vpop.f32.mrf.mxu1 }
 0x3f9   : > { %v3165_v6 = vadd.f32 %v3164_v35, %v7568_v34  ;;  %v3361_v29 = vmax.f32 %v3173_v9, 0.0 }
 0x3fa   : > { %v5445_v62 = vpop.f32.mrf.mxu1 }
 0x3fb   : > { %v3176_v20 = vadd.f32 %v5445_v62, %v7568_v34  ;;  %v3359_v53 = vmax.f32 %v3165_v6, 0.0 }
 0x3fc   : > { %v3167_v63 = vpop.f32.mrf.mxu1 }
 0x3fd   : > { %v3168_v37 = vadd.f32 %v3167_v63, %v7568_v34  ;;  %v3362_v43 = vmax.f32 %v3176_v20, 0.0 }
 0x3ff   : > { %v3360_v31 = vmax.f32 %v3168_v37, 0.0  ;;  %v3414_v30 = vpack.c.bf16 %v3362_v43, %v3361_v29 }
 0x401   : > { %v3413_v48 = vpack.c.bf16 %v3360_v31, %v3359_v53 }
 0x403   : > { %5510 = vmatprep.mubr.msk.bf16.mxu0 %vm1117_vm2, %v3413_v48 }
 0x404   : > { %5511 = vmatmul.mubr.msk.bf16.gmra.mxu0 %vm1117_vm2, %v3414_v30 }
 0x405   : > { %v5448_v3 = vpop.f32.mrf.mxu1 }
 0x406   : > { %v3189_v14 = vadd.f32 %v5448_v3, %v7568_v34 }
 0x407   : > { %v3180_v8 = vpop.f32.mrf.mxu1 }
 0x408   : > { %v3181_v58 = vadd.f32 %v3180_v8, %v7568_v34  ;;  %v3365_v37 = vmax.f32 %v3189_v14, 0.0 }
 0x409   : > { %v5449_v61 = vpop.f32.mrf.mxu1 }
 0x40a   : > { %v3192_v7 = vadd.f32 %v5449_v61, %v7568_v34  ;;  %v3363_v9 = vmax.f32 %v3181_v58, 0.0 }
 0x40b   : > { %v3183_v35 = vpop.f32.mrf.mxu1 }
 0x40c   : > { %v3184_v62 = vadd.f32 %v3183_v35, %v7568_v34  ;;  %v3366_v6 = vmax.f32 %v3192_v7, 0.0 }
 0x40d   : > { %v5452_v20 = vpop.f32.mrf.mxu1 }
 0x40e   : > { %v3364_v63 = vmax.f32 %v3184_v62, 0.0  ;;  %v3416_v31 = vpack.c.bf16 %v3366_v6, %v3365_v37  ;;  %v3205_v3 = vadd.f32 %v5452_v20, %v7568_v34 }
 0x40f   : > { %v3196_v43 = vpop.f32.mrf.mxu1 }
 0x410   : > { %v3415_v53 = vpack.c.bf16 %v3364_v63, %v3363_v9  ;;  %v3197_v48 = vadd.f32 %v3196_v43, %v7568_v34  ;;  %v3369_v62 = vmax.f32 %v3205_v3, 0.0 }
 0x411   : > { %v5453_v29 = vpop.f32.mrf.mxu1 }
 0x412   : > { %v3208_v30 = vadd.f32 %v5453_v29, %v7568_v34  ;;  %5514 = vmatprep.mubr.msk.bf16.mxu0 %vm1117_vm2, %v3415_v53  ;;  %v3367_v14 = vmax.f32 %v3197_v48, 0.0 }
 0x413   : > { %v3199_v8 = vpop.f32.mrf.mxu1  ;;  %5515 = vmatmul.mubr.msk.bf16.gmra.mxu0 %vm1117_vm2, %v3416_v31 }
 0x414   : > { %v3200_v61 = vadd.f32 %v3199_v8, %v7568_v34  ;;  %v3370_v58 = vmax.f32 %v3208_v30, 0.0 }
 0x415   : > { %v5456_v7 = vpop.f32.mrf.mxu1 }
 0x416   : > { %v3368_v35 = vmax.f32 %v3200_v61, 0.0  ;;  %v3418_v63 = vpack.c.bf16 %v3370_v58, %v3369_v62  ;;  %v3221_v20 = vadd.f32 %v5456_v7, %v7568_v34 }
 0x417   : > { %v3212_v6 = vpop.f32.mrf.mxu1 }
 0x418   : > { %v3417_v9 = vpack.c.bf16 %v3368_v35, %v3367_v14  ;;  %v3213_v43 = vadd.f32 %v3212_v6, %v7568_v34  ;;  %v3373_v61 = vmax.f32 %v3221_v20, 0.0 }
 0x419   : > { %v5457_v37 = vpop.f32.mrf.mxu1 }
 0x41a   : > { %v3224_v53 = vadd.f32 %v5457_v37, %v7568_v34  ;;  %5518 = vmatprep.mubr.msk.bf16.mxu0 %vm1117_vm2, %v3417_v9  ;;  %v3371_v3 = vmax.f32 %v3213_v43, 0.0 }
 0x41b   : > { %v3215_v31 = vpop.f32.mrf.mxu1  ;;  %5519 = vmatmul.mubr.msk.bf16.gmra.mxu0 %vm1117_vm2, %v3418_v63 }
 0x41c   : > { %v3216_v29 = vadd.f32 %v3215_v31, %v7568_v34  ;;  %v3374_v48 = vmax.f32 %v3224_v53, 0.0 }
 0x41d   : > { %v5460_v30 = vpop.f32.mrf.mxu1 }
 0x41e   : > { %v3372_v8 = vmax.f32 %v3216_v29, 0.0  ;;  %v3420_v35 = vpack.c.bf16 %v3374_v48, %v3373_v61  ;;  %v3237_v7 = vadd.f32 %v5460_v30, %v7568_v34 }
 0x41f   : > { %v3228_v58 = vpop.f32.mrf.mxu1 }
 0x420   : > { %v3419_v14 = vpack.c.bf16 %v3372_v8, %v3371_v3  ;;  %v3229_v6 = vadd.f32 %v3228_v58, %v7568_v34  ;;  %v3377_v29 = vmax.f32 %v3237_v7, 0.0 }
 0x421   : > { %v5461_v62 = vpop.f32.mrf.mxu1 }
 0x422   : > { %v3240_v9 = vadd.f32 %v5461_v62, %v7568_v34  ;;  %5522 = vmatprep.mubr.msk.bf16.mxu0 %vm1117_vm2, %v3419_v14  ;;  %v3375_v20 = vmax.f32 %v3229_v6, 0.0 }
 0x423   : > { %v3231_v63 = vpop.f32.mrf.mxu1  ;;  %5523 = vmatmul.mubr.msk.bf16.gmra.mxu0 %vm1117_vm2, %v3420_v35 }
 0x424   : > { %v3232_v37 = vadd.f32 %v3231_v63, %v7568_v34  ;;  %v3378_v43 = vmax.f32 %v3240_v9, 0.0 }
 0x425   : > { %v5464_v53 = vpop.f32.mrf.mxu1 }
 0x426   : > { %v3376_v31 = vmax.f32 %v3232_v37, 0.0  ;;  %v3422_v8 = vpack.c.bf16 %v3378_v43, %v3377_v29  ;;  %v3253_v30 = vadd.f32 %v5464_v53, %v7568_v34 }
 0x427   : > { %v3244_v48 = vpop.f32.mrf.mxu1 }
 0x428   : > { %v3421_v3 = vpack.c.bf16 %v3376_v31, %v3375_v20  ;;  %v3245_v58 = vadd.f32 %v3244_v48, %v7568_v34  ;;  %v3381_v37 = vmax.f32 %v3253_v30, 0.0 }
 0x429   : > { %v5465_v61 = vpop.f32.mrf.mxu1 }
 0x42a   : > { %v3256_v14 = vadd.f32 %v5465_v61, %v7568_v34  ;;  %5526 = vmatprep.mubr.msk.bf16.mxu0 %vm1117_vm2, %v3421_v3  ;;  %v3379_v7 = vmax.f32 %v3245_v58, 0.0 }
 0x42b   : > { %v3247_v35 = vpop.f32.mrf.mxu1  ;;  %5527 = vmatmul.mubr.msk.bf16.gmra.mxu0 %vm1117_vm2, %v3422_v8 }
 0x42c   : > { %v3248_v62 = vadd.f32 %v3247_v35, %v7568_v34  ;;  %v3382_v6 = vmax.f32 %v3256_v14, 0.0 }
 0x42d   : > { %v5468_v9 = vpop.f32.mrf.mxu1 }
 0x42e   : > { %v3380_v63 = vmax.f32 %v3248_v62, 0.0  ;;  %v3424_v31 = vpack.c.bf16 %v3382_v6, %v3381_v37  ;;  %v3269_v53 = vadd.f32 %v5468_v9, %v7568_v34 }
 0x42f   : > { %v3260_v43 = vpop.f32.mrf.mxu1 }
 0x430   : > { %v3423_v20 = vpack.c.bf16 %v3380_v63, %v3379_v7  ;;  %v3261_v48 = vadd.f32 %v3260_v43, %v7568_v34  ;;  %v3385_v62 = vmax.f32 %v3269_v53, 0.0 }
 0x431   : > { %v5469_v29 = vpop.f32.mrf.mxu1 }
 0x432   : > { %v3272_v3 = vadd.f32 %v5469_v29, %v7568_v34  ;;  %5530 = vmatprep.mubr.msk.bf16.mxu0 %vm1117_vm2, %v3423_v20  ;;  %v3383_v30 = vmax.f32 %v3261_v48, 0.0 }
 0x433   : > { %v3263_v8 = vpop.f32.mrf.mxu1  ;;  %5531 = vmatmul.mubr.msk.bf16.gmra.mxu0 %vm1117_vm2, %v3424_v31 }
 0x434   : > { %v3264_v61 = vadd.f32 %v3263_v8, %v7568_v34  ;;  %v3386_v58 = vmax.f32 %v3272_v3, 0.0 }
 0x435   : > { %v5472_v14 = vpop.f32.mrf.mxu1 }
 0x436   : > { %v3384_v35 = vmax.f32 %v3264_v61, 0.0  ;;  %v3426_v63 = vpack.c.bf16 %v3386_v58, %v3385_v62  ;;  %v3285_v9 = vadd.f32 %v5472_v14, %v7568_v34 }
 0x437   : > { %v3276_v6 = vpop.f32.mrf.mxu1 }
 0x438   : > { %v3425_v7 = vpack.c.bf16 %v3384_v35, %v3383_v30  ;;  %v3277_v43 = vadd.f32 %v3276_v6, %v7568_v34  ;;  %v3389_v61 = vmax.f32 %v3285_v9, 0.0 }
 0x439   : > { %v5473_v37 = vpop.f32.mrf.mxu1 }
 0x43a   : > { %v3288_v20 = vadd.f32 %v5473_v37, %v7568_v34  ;;  %5534 = vmatprep.mubr.msk.bf16.mxu0 %vm1117_vm2, %v3425_v7  ;;  %v3387_v53 = vmax.f32 %v3277_v43, 0.0 }
 0x43b   : > { %v3279_v31 = vpop.f32.mrf.mxu1  ;;  %5535 = vmatmul.mubr.msk.bf16.gmra.mxu0 %vm1117_vm2, %v3426_v63 }
 0x43c   : > { %v3280_v29 = vadd.f32 %v3279_v31, %v7568_v34  ;;  %v3390_v48 = vmax.f32 %v3288_v20, 0.0 }
 0x43d   : > { %v5476_v3 = vpop.f32.mrf.mxu1 }
 0x43e   : > { %v3388_v8 = vmax.f32 %v3280_v29, 0.0  ;;  %v3428_v35 = vpack.c.bf16 %v3390_v48, %v3389_v61  ;;  %v3301_v14 = vadd.f32 %v5476_v3, %v7568_v34 }
 0x43f   : > { %v3292_v58 = vpop.f32.mrf.mxu1 }
 0x440   : > { %v3427_v30 = vpack.c.bf16 %v3388_v8, %v3387_v53  ;;  %v3293_v6 = vadd.f32 %v3292_v58, %v7568_v34  ;;  %v3393_v29 = vmax.f32 %v3301_v14, 0.0 }
 0x441   : > { %v5477_v62 = vpop.f32.mrf.mxu1 }
 0x442   : > { %v3304_v7 = vadd.f32 %v5477_v62, %v7568_v34  ;;  %5538 = vmatprep.mubr.msk.bf16.mxu0 %vm1117_vm2, %v3427_v30  ;;  %v3391_v9 = vmax.f32 %v3293_v6, 0.0 }
 0x443   : > { %v3295_v63 = vpop.f32.mrf.mxu1  ;;  %5539 = vmatmul.mubr.msk.bf16.gmra.mxu0 %vm1117_vm2, %v3428_v35 }
 0x444   : > { %v3296_v37 = vadd.f32 %v3295_v63, %v7568_v34  ;;  %v3394_v43 = vmax.f32 %v3304_v7, 0.0 }
 0x445   : > { %v5480_v20 = vpop.f32.mrf.mxu1 }
 0x446   : > { %v3392_v31 = vmax.f32 %v3296_v37, 0.0  ;;  %v3430_v8 = vpack.c.bf16 %v3394_v43, %v3393_v29  ;;  %v3317_v3 = vadd.f32 %v5480_v20, %v7568_v34  ;;  %v7665_v20 = vld [vmem:[%s8131_s6] sm:$0x3] }
 0x447   : > { %v3308_v48 = vpop.f32.mrf.mxu1 }
 0x448   : > { %v3429_v53 = vpack.c.bf16 %v3392_v31, %v3391_v9  ;;  %v3309_v58 = vadd.f32 %v3308_v48, %v7568_v34  ;;  %v3397_v63 = vmax.f32 %v3317_v3, 0.0 }
 0x449   : > { %v5481_v61 = vpop.f32.mrf.mxu1 }
 0x44a   : > { %v3320_v30 = vadd.f32 %v5481_v61, %v7568_v34  ;;  %5542 = vmatprep.mubr.msk.bf16.mxu0 %vm1117_vm2, %v3429_v53  ;;  %v3395_v7 = vmax.f32 %v3309_v58, 0.0 }
 0x44b   : > { %v3311_v35 = vpop.f32.mrf.mxu1  ;;  %5543 = vmatmul.mubr.msk.bf16.gmra.mxu0 %vm1117_vm2, %v3430_v8  ;;  %v8280_v8 = vsub.s32 1, %v8231_v45 }
 0x44c   : > { %v3312_v62 = vadd.f32 %v3311_v35, %v7568_v34  ;;  %v3398_v6 = vmax.f32 %v3320_v30, 0.0 }
 0x44d   : > { %v7672_v61 = vrot.slane %v7665_v20, %v8280_v8 }
 0x44e   : > { %v3396_v14 = vmax.f32 %v3312_v62, 0.0  ;;  %v3432_v43 = vpack.c.bf16 %v3398_v6, %v3397_v63 }
 0x450   : > { %v3431_v37 = vpack.c.bf16 %v3396_v14, %v3395_v7 }
 0x452   : > { %5546 = vmatprep.mubr.msk.bf16.mxu0 %vm1117_vm2, %v3431_v37 }
 0x453   : > { %5547 = vmatmul.mubr.msk.bf16.gmra.mxu0 %vm1117_vm2, %v3432_v43 }
 0x48b   : > { %v5484_v9 = vpop.f32.mrf.mxu1 }
 0x48c   : > { %v3333_v58 = vadd.f32 %v5484_v9, %v7568_v34 }
 0x48d   : > { %v3324_v31 = vpop.f32.mrf.mxu1 }
 0x48e   : > { %v3325_v48 = vadd.f32 %v3324_v31, %v7568_v34  ;;  %v3401_v63 = vmax.f32 %v3333_v58, 0.0 }
 0x48f   : > { %v5485_v29 = vpop.f32.mrf.mxu1 }
 0x490   : > { %v3336_v53 = vadd.f32 %v5485_v29, %v7568_v34  ;;  %v3399_v6 = vmax.f32 %v3325_v48, 0.0 }
 0x491   : > { %v3327_v30 = vpop.f32.mrf.mxu1 }
 0x492   : > { %v3328_v3 = vadd.f32 %v3327_v30, %v7568_v34  ;;  %v3402_v35 = vmax.f32 %v3336_v53, 0.0 }
 0x493   : > { %v5492_v62 = vpop.f32.mrf.mxu0 }
 0x494   : > { %v3400_v7 = vmax.f32 %v3328_v3, 0.0  ;;  %v3590_v14 = vadd.f32 %v5492_v62, %v7672_v61  ;;  %v3434_v55 = vpack.c.bf16 %v3402_v35, %v3401_v63 }
 0x495   : > { %v3581_v37 = vpop.f32.mrf.mxu0 }
 0x496   : > { %v3433_v43 = vpack.c.bf16 %v3400_v7, %v3399_v6  ;;  %v4760_v31 = vmul.f32 -1.442695, %v3590_v14  ;;  %v3582_v29 = vadd.f32 %v3581_v37, %v7672_v61 }
 0x497   : > { %v5493_v8 = vpop.f32.mrf.mxu0 }
 0x498   : > { %5734 = vpow2.f32 %v4760_v31  ;;  %v4758_v18 = vmul.f32 -1.442695, %v3582_v29  ;;  %v3593_v9 = vadd.f32 %v5493_v8, %v7672_v61  ;;  %5550 = vmatprep.mubr.msk.bf16.mxu0 %vm1117_vm2, %v3433_v43 }
 0x499   : > { %v3584_v34 = vpop.f32.mrf.mxu0  ;;  %5551 = vmatmul.mubr.msk.bf16.gmra.mxu0 %vm1117_vm2, %v3434_v55 }
 0x49a   : > { %5736 = vpow2.f32 %v4758_v18  ;;  %v4761_v48 = vmul.f32 -1.442695, %v3593_v9  ;;  %v3585_v53 = vadd.f32 %v3584_v34, %v7672_v61 }
 0x49b   : > { %v5496_v58 = vpop.f32.mrf.mxu0 }
 0x49c   : > { %5738 = vpow2.f32 %v4761_v48  ;;  %v4759_v30 = vmul.f32 -1.442695, %v3585_v53  ;;  %v3606_v3 = vadd.f32 %v5496_v58, %v7672_v61 }
 0x49d   : > { %v3597_v35 = vpop.f32.mrf.mxu0 }
 0x49e   : > { %5740 = vpow2.f32 %v4759_v30  ;;  %v4764_v62 = vmul.f32 -1.442695, %v3606_v3  ;;  %v3598_v6 = vadd.f32 %v3597_v35, %v7672_v61 }
 0x49f   : > { %v5497_v7 = vpop.f32.mrf.mxu0 }
 0x4a0   : > { %5742 = vpow2.f32 %v4764_v62  ;;  %v4762_v14 = vmul.f32 -1.442695, %v3598_v6  ;;  %v3609_v63 = vadd.f32 %v5497_v7, %v7672_v61 }
 0x4a1   : > { %v3600_v55 = vpop.f32.mrf.mxu0 }
 0x4a2   : > { %5744 = vpow2.f32 %v4762_v14  ;;  %v4765_v18 = vmul.f32 -1.442695, %v3609_v63  ;;  %v3601_v37 = vadd.f32 %v3600_v55, %v7672_v61 }
 0x4a3   : > { %v5500_v43 = vpop.f32.mrf.mxu0 }
 0x4a4   : > { %5746 = vpow2.f32 %v4765_v18  ;;  %v4763_v31 = vmul.f32 -1.442695, %v3601_v37  ;;  %v3622_v29 = vadd.f32 %v5500_v43, %v7672_v61 }
 0x4a5   : > { %v5735_v8 = vpop.eup %5734  ;;  %v3613_v9 = vpop.f32.mrf.mxu0 }
 0x4a6   : > { %v4030_v34 = vadd.f32 1.0, %v5735_v8  ;;  %5748 = vpow2.f32 %v4763_v31  ;;  %v4768_v48 = vmul.f32 -1.442695, %v3622_v29  ;;  %v3614_v53 = vadd.f32 %v3613_v9, %v7672_v61 }
 0x4a7   : > { %v5737_v58 = vpop.eup %5736  ;;  %v5501_v30 = vpop.f32.mrf.mxu0 }
 0x4a8   : > { %5750 = vrcp.f32 %v4030_v34  ;;  %v4028_v3 = vadd.f32 1.0, %v5737_v58  ;;  %v4766_v35 = vmul.f32 -1.442695, %v3614_v53  ;;  %v3625_v62 = vadd.f32 %v5501_v30, %v7672_v61 }
 0x4a9   : > { %v5739_v6 = vpop.eup %5738  ;;  %5752 = vpow2.f32 %v4768_v48  ;;  %v3616_v7 = vpop.f32.mrf.mxu0 }
 0x4aa   : > { %5754 = vrcp.f32 %v4028_v3  ;;  %v4031_v14 = vadd.f32 1.0, %v5739_v6  ;;  %v4769_v63 = vmul.f32 -1.442695, %v3625_v62  ;;  %v3617_v55 = vadd.f32 %v3616_v7, %v7672_v61 }
 0x4ab   : > { %v5741_v18 = vpop.eup %5740  ;;  %5756 = vpow2.f32 %v4766_v35  ;;  %v5504_v37 = vpop.f32.mrf.mxu0 }
 0x4ac   : > { %5758 = vrcp.f32 %v4031_v14  ;;  %v4029_v43 = vadd.f32 1.0, %v5741_v18  ;;  %v4767_v31 = vmul.f32 -1.442695, %v3617_v55  ;;  %v3638_v29 = vadd.f32 %v5504_v37, %v7672_v61 }
 0x4ad   : > { %v5743_v8 = vpop.eup %5742  ;;  %5760 = vpow2.f32 %v4769_v63  ;;  %v3629_v9 = vpop.f32.mrf.mxu0  ;;  %v8281_v37 = vsub.s32 0, %v8231_v45 }
 0x4ae   : > { %5762 = vrcp.f32 %v4029_v43  ;;  %v4034_v34 = vadd.f32 1.0, %v5743_v8  ;;  %v4772_v48 = vmul.f32 -1.442695, %v3638_v29  ;;  %v3630_v53 = vadd.f32 %v3629_v9, %v7672_v61 }
 0x4af   : > { %v5745_v58 = vpop.eup %5744  ;;  %5764 = vpow2.f32 %v4767_v31  ;;  %v5505_v30 = vpop.f32.mrf.mxu0  ;;  %v7697_v43 = vrot.slane %v7665_v20, %v8281_v37  ;;  %v8282_v31 = vlaneseq }
 0x4b0   : > { %5766 = vrcp.f32 %v4034_v34  ;;  %v4032_v3 = vadd.f32 1.0, %v5745_v58  ;;  %v4770_v35 = vmul.f32 -1.442695, %v3630_v53  ;;  %v3641_v62 = vadd.f32 %v5505_v30, %v7672_v61 }
 0x4b1   : > { %v5747_v6 = vpop.eup %5746  ;;  %5768 = vpow2.f32 %v4772_v48  ;;  %v3632_v7 = vpop.f32.mrf.mxu0  ;;  %v7700_v29 = vand.u32 127, %v8282_v31  ;;  %v2291_v20 = vadd.f32 %v7321_v28, %v7697_v43  ;;  %v2283_v28 = vadd.f32 %v7323_v13, %v7697_v43 }
 0x4b2   : > { %5770 = vrcp.f32 %v4032_v3  ;;  %v4035_v14 = vadd.f32 1.0, %v5747_v6  ;;  %v4773_v63 = vmul.f32 -1.442695, %v3641_v62  ;;  %v3633_v55 = vadd.f32 %v3632_v7, %v7672_v61 }
 0x4b3   : > { %v5749_v18 = vpop.eup %5748  ;;  %5772 = vpow2.f32 %v4770_v35  ;;  %vm4350_vm3 = vcmp.lt.s32.totalorder %v7700_v29, 2 }
 0x4b4   : > { %5774 = vrcp.f32 %v4035_v14  ;;  %v4033_v8 = vadd.f32 1.0, %v5749_v18  ;;  %v4771_v9 = vmul.f32 -1.442695, %v3633_v55  ;;  %v2294_v18 = vadd.f32 %v7325_v10, %v7697_v43 }
 0x4b5   : > { %v5751_v34 = vpop.eup %5750  ;;  %5776 = vpow2.f32 %v4773_v63  ;;  %v5508_v48 = vpop.f32.mrf.mxu0 }
 0x4b6   : > { %v5753_v53 = vpop.eup %5752  ;;  %v4824_v58 = vadd.f32 -0.5, %v5751_v34  ;;  %5778 = vrcp.f32 %v4033_v8  ;;  %v3654_v30 = vadd.f32 %v5508_v48, %v7672_v61 }
 0x4b7   : > { %v5755_v45 = vpop.eup %5754  ;;  %v4038_v3 = vadd.f32 1.0, %v5753_v53  ;;  %5780 = vpow2.f32 %v4771_v9  ;;  %v3645_v35 = vpop.f32.mrf.mxu0 }
 0x4b8   : > { %v5757_v62 = vpop.eup %5756  ;;  %v4286_v6 = vmul.f32 2.0, %v4824_v58  ;;  %v4822_v7 = vadd.f32 -0.5, %v5755_v45  ;;  %v4776_v14 = vmul.f32 -1.442695, %v3654_v30  ;;  %v3646_v63 = vadd.f32 %v3645_v35, %v7672_v61 }
 0x4b9   : > { %v5759_v55 = vpop.eup %5758  ;;  %5782 = vrcp.f32 %v4038_v3  ;;  %v4036_v37 = vadd.f32 1.0, %v5757_v62  ;;  %v5509_v31 = vpop.f32.mrf.mxu0 }
 0x4ba   : > { %v5761_v8 = vpop.eup %5760  ;;  %v4353_v9 = vsel %vm4350_vm3, %v2291_v20, %v4286_v6  ;;  %v4284_v34 = vmul.f32 2.0, %v4822_v7  ;;  %v4825_v48 = vadd.f32 -0.5, %v5759_v55  ;;  %5784 = vpow2.f32 %v4776_v14 }
 0x4bb   : > { %v5763_v53 = vpop.eup %5762  ;;  %4417 = vst [vmem:[%s7710_s28 + $0x10] sm:$0xff] %v4353_v9  ;;  %5786 = vrcp.f32 %v4036_v37  ;;  %v4039_v58 = vadd.f32 1.0, %v5761_v8  ;;  %v4774_v30 = vmul.f32 -1.442695, %v3646_v63  ;;  %v3657_v13 = vadd.f32 %v5509_v31, %v7672_v61  ;;  %v3648_v45 = vpop.f32.mrf.mxu0 }
 0x4bc   : > { %v5765_v10 = vpop.eup %5764  ;;  %v4351_v3 = vsel %vm4350_vm3, %v2283_v28, %v4284_v34  ;;  %v4287_v35 = vmul.f32 2.0, %v4825_v48  ;;  %v4823_v62 = vadd.f32 -0.5, %v5763_v53  ;;  %v3649_v20 = vadd.f32 %v3648_v45, %v7672_v61 }
 0x4bd   : > { %v5767_v6 = vpop.eup %5766  ;;  %v2286_v7 = vadd.f32 %v7328_v21, %v7697_v43  ;;  %4415 = vst [vmem:[%s7710_s28] sm:$0xff] %v4351_v3  ;;  %5788 = vrcp.f32 %v4039_v58  ;;  %v4037_v14 = vadd.f32 1.0, %v5765_v10  ;;  %v4777_v63 = vmul.f32 -1.442695, %v3657_v13 }
 0x4be   : > { %v5769_v55 = vpop.eup %5768  ;;  %v4354_v37 = vsel %vm4350_vm3, %v2294_v18, %v4287_v35  ;;  %v4285_v31 = vmul.f32 2.0, %v4823_v62  ;;  %v4828_v28 = vadd.f32 -0.5, %v5767_v6  ;;  %5790 = vpow2.f32 %v4774_v30 }
 0x4bf   : > { %v5771_v8 = vpop.eup %5770  ;;  %v2307_v9 = vadd.f32 %v7330_v51, %v7697_v43  ;;  %4418 = vst [vmem:[%s7710_s28 + $0x18] sm:$0xff] %v4354_v37  ;;  %5792 = vrcp.f32 %v4037_v14  ;;  %v4042_v34 = vadd.f32 1.0, %v5769_v55  ;;  %v4775_v21 = vmul.f32 -1.442695, %v3649_v20 }
 0x4c0   : > { %v5773_v48 = vpop.eup %5772  ;;  %v4352_v53 = vsel %vm4350_vm3, %v2286_v7, %v4285_v31  ;;  %v4290_v58 = vmul.f32 2.0, %v4828_v28  ;;  %v4826_v13 = vadd.f32 -0.5, %v5771_v8  ;;  %5794 = vpow2.f32 %v4777_v63 }
 0x4c1   : > { %v5775_v18 = vpop.eup %5774  ;;  %v2299_v30 = vadd.f32 %v7342_v52, %v7697_v43  ;;  %4416 = vst [vmem:[%s7710_s28 + $0x8] sm:$0xff] %v4352_v53  ;;  %5796 = vrcp.f32 %v4042_v34  ;;  %v4040_v45 = vadd.f32 1.0, %v5773_v48  ;;  %v2310_v52 = vadd.f32 %v7349_v33, %v7697_v43 }
 0x4c2   : > { %v5777_v51 = vpop.eup %5776  ;;  %v4357_v10 = vsel %vm4350_vm3, %v2307_v9, %v4290_v58  ;;  %v4288_v3 = vmul.f32 2.0, %v4826_v13  ;;  %v4829_v35 = vadd.f32 -0.5, %v5775_v18  ;;  %5798 = vpow2.f32 %v4775_v21 }
 0x4c3   : > { %v5779_v62 = vpop.eup %5778  ;;  %4421 = vst [vmem:[%s7710_s28 + $0x30] sm:$0xff] %v4357_v10  ;;  %5800 = vrcp.f32 %v4040_v45  ;;  %v4043_v20 = vadd.f32 1.0, %v5777_v51  ;;  %v2302_v8 = vadd.f32 %v7355_v47, %v7697_v43  ;;  %v2323_v18 = vadd.f32 %v7361_v26, %v7697_v43 }
 0x4c4   : > { %v5781_v6 = vpop.eup %5780  ;;  %v4355_v7 = vsel %vm4350_vm3, %v2299_v30, %v4288_v3  ;;  %v4291_v14 = vmul.f32 2.0, %v4829_v35  ;;  %v4827_v63 = vadd.f32 -0.5, %v5779_v62  ;;  %v5512_v55 = vpop.f32.mrf.mxu0  ;;  %v2315_v62 = vadd.f32 %v7364_v41, %v7697_v43 }
 0x4c5   : > { %4419 = vst [vmem:[%s7710_s28 + $0x20] sm:$0xff] %v4355_v7  ;;  %5802 = vrcp.f32 %v4043_v20  ;;  %v4041_v37 = vadd.f32 1.0, %v5781_v6  ;;  %v3670_v31 = vadd.f32 %v5512_v55, %v7672_v61  ;;  %v2326_v41 = vadd.f32 %v7374_v23, %v7697_v43 }
 0x4c6   : > { %v5783_v28 = vpop.eup %5782  ;;  %v4358_v9 = vsel %vm4350_vm3, %v2310_v52, %v4291_v14  ;;  %v4289_v33 = vmul.f32 2.0, %v4827_v63  ;;  %v3661_v34 = vpop.f32.mrf.mxu0 }
 0x4c7   : > { %v5785_v21 = vpop.eup %5784  ;;  %4422 = vst [vmem:[%s7710_s28 + $0x38] sm:$0xff] %v4358_v9  ;;  %v4832_v48 = vadd.f32 -0.5, %v5783_v28  ;;  %5804 = vrcp.f32 %v4041_v37  ;;  %v4780_v53 = vmul.f32 -1.442695, %v3670_v31  ;;  %v3662_v58 = vadd.f32 %v3661_v34, %v7672_v61 }
 0x4c8   : > { %v5787_v13 = vpop.eup %5786  ;;  %v4356_v30 = vsel %vm4350_vm3, %v2302_v8, %v4289_v33  ;;  %v4046_v47 = vadd.f32 1.0, %v5785_v21  ;;  %v5513_v45 = vpop.f32.mrf.mxu0  ;;  %v2318_v21 = vadd.f32 %v7377_v16, %v7697_v43 }
 0x4c9   : > { %4420 = vst [vmem:[%s7710_s28 + $0x28] sm:$0xff] %v4356_v30  ;;  %v4294_v51 = vmul.f32 2.0, %v4832_v48  ;;  %v4830_v10 = vadd.f32 -0.5, %v5787_v13  ;;  %5806 = vpow2.f32 %v4780_v53  ;;  %v4778_v3 = vmul.f32 -1.442695, %v3662_v58 }
 0x4ca   : > { %v5789_v35 = vpop.eup %5788  ;;  %5808 = vrcp.f32 %v4046_v47  ;;  %v3673_v20 = vadd.f32 %v5513_v45, %v7672_v61  ;;  %v3664_v6 = vpop.f32.mrf.mxu0  ;;  %v2339_v47 = vadd.f32 %v7380_v44, %v7697_v43 }
 0x4cb   : > { %v5791_v26 = vpop.eup %5790  ;;  %v4361_v52 = vsel %vm4350_vm3, %v2323_v18, %v4294_v51  ;;  %v4292_v7 = vmul.f32 2.0, %v4830_v10  ;;  %v4833_v14 = vadd.f32 -0.5, %v5789_v35  ;;  %5810 = vpow2.f32 %v4778_v3 }
 0x4cc   : > { %v5793_v63 = vpop.eup %5792  ;;  %4425 = vst [vmem:[%s7710_s28 + $0x50] sm:$0xff] %v4361_v52  ;;  %v4044_v55 = vadd.f32 1.0, %v5791_v26  ;;  %v4781_v37 = vmul.f32 -1.442695, %v3673_v20  ;;  %v3665_v31 = vadd.f32 %v3664_v6, %v7672_v61  ;;  %v2331_v35 = vadd.f32 %v7386_v36, %v7697_v43 }
 0x4cd   : > { %v5795_v28 = vpop.eup %5794  ;;  %v4359_v8 = vsel %vm4350_vm3, %v2315_v62, %v4292_v7  ;;  %v4295_v9 = vmul.f32 2.0, %v4833_v14  ;;  %v4831_v33 = vadd.f32 -0.5, %v5793_v63  ;;  %v2342_v7 = vadd.f32 %v7390_v57, %v7697_v43 }
 0x4ce   : > { %v5797_v34 = vpop.eup %5796  ;;  %4423 = vst [vmem:[%s7710_s28 + $0x40] sm:$0xff] %v4359_v8  ;;  %5812 = vrcp.f32 %v4044_v55  ;;  %v4047_v48 = vadd.f32 1.0, %v5795_v28  ;;  %v4779_v53 = vmul.f32 -1.442695, %v3665_v31  ;;  %v2334_v8 = vadd.f32 %v7394_v11, %v7697_v43 }
 0x4cf   : > { %v5799_v58 = vpop.eup %5798  ;;  %v4362_v13 = vsel %vm4350_vm3, %v2326_v41, %v4295_v9  ;;  %v4293_v23 = vmul.f32 2.0, %v4831_v33  ;;  %v4836_v18 = vadd.f32 -0.5, %v5797_v34  ;;  %5814 = vpow2.f32 %v4781_v37 }
 0x4d0   : > { %v5801_v30 = vpop.eup %5800  ;;  %4426 = vst [vmem:[%s7710_s28 + $0x58] sm:$0xff] %v4362_v13  ;;  %5816 = vrcp.f32 %v4047_v48  ;;  %v4045_v16 = vadd.f32 1.0, %v5799_v58  ;;  %v2355_v13 = vadd.f32 %v7396_v39, %v7697_v43 }
 0x4d1   : > { %v4360_v45 = vsel %vm4350_vm3, %v2318_v21, %v4293_v23  ;;  %v4298_v51 = vmul.f32 2.0, %v4836_v18  ;;  %v4834_v10 = vadd.f32 -0.5, %v5801_v30  ;;  %5818 = vpow2.f32 %v4779_v53 }
 0x4d2   : > { %v5803_v3 = vpop.eup %5802  ;;  %4424 = vst [vmem:[%s7710_s28 + $0x48] sm:$0xff] %v4360_v45  ;;  %5820 = vrcp.f32 %v4045_v16 }
 0x4d3   : > { %v4365_v44 = vsel %vm4350_vm3, %v2339_v47, %v4298_v51  ;;  %v4296_v62 = vmul.f32 2.0, %v4834_v10  ;;  %v4837_v20 = vadd.f32 -0.5, %v5803_v3  ;;  %v5516_v6 = vpop.f32.mrf.mxu0 }
 0x4d4   : > { %v5805_v26 = vpop.eup %5804  ;;  %4429 = vst [vmem:[%s7710_s28 + $0x70] sm:$0xff] %v4365_v44  ;;  %v3686_v52 = vadd.f32 %v5516_v6, %v7672_v61 }
 0x4d5   : > { %v4363_v14 = vsel %vm4350_vm3, %v2331_v35, %v4296_v62  ;;  %v4299_v63 = vmul.f32 2.0, %v4837_v20  ;;  %v4835_v55 = vadd.f32 -0.5, %v5805_v26  ;;  %v3677_v36 = vpop.f32.mrf.mxu0  ;;  %v2347_v62 = vadd.f32 %v7402_v50, %v7697_v43 }
 0x4d6   : > { %v5807_v37 = vpop.eup %5806  ;;  %4427 = vst [vmem:[%s7710_s28 + $0x60] sm:$0xff] %v4363_v14  ;;  %v4784_v31 = vmul.f32 -1.442695, %v3686_v52  ;;  %v3678_v28 = vadd.f32 %v3677_v36, %v7672_v61  ;;  %v2358_v36 = vadd.f32 %v7405_v4, %v7697_v43 }
 0x4d7   : > { %v5809_v41 = vpop.eup %5808  ;;  %v4366_v57 = vsel %vm4350_vm3, %v2342_v7, %v4299_v63  ;;  %v4297_v9 = vmul.f32 2.0, %v4835_v55  ;;  %v4050_v33 = vadd.f32 1.0, %v5807_v37  ;;  %v5517_v34 = vpop.f32.mrf.mxu0 }
 0x4d8   : > { %v5811_v21 = vpop.eup %5810  ;;  %4430 = vst [vmem:[%s7710_s28 + $0x78] sm:$0xff] %v4366_v57  ;;  %v4840_v48 = vadd.f32 -0.5, %v5809_v41  ;;  %5822 = vpow2.f32 %v4784_v31  ;;  %v4782_v53 = vmul.f32 -1.442695, %v3678_v28  ;;  %v3689_v58 = vadd.f32 %v5517_v34, %v7672_v61 }
 0x4d9   : > { %v4364_v11 = vsel %vm4350_vm3, %v2334_v8, %v4297_v9  ;;  %5824 = vrcp.f32 %v4050_v33  ;;  %v4048_v23 = vadd.f32 1.0, %v5811_v21  ;;  %v3680_v18 = vpop.f32.mrf.mxu0  ;;  %v2350_v9 = vadd.f32 %v7408_v12, %v7697_v43 }
 0x4da   : > { %4428 = vst [vmem:[%s7710_s28 + $0x68] sm:$0xff] %v4364_v11  ;;  %v4302_v30 = vmul.f32 2.0, %v4840_v48  ;;  %5826 = vpow2.f32 %v4782_v53  ;;  %v4785_v47 = vmul.f32 -1.442695, %v3689_v58  ;;  %v3681_v16 = vadd.f32 %v3680_v18, %v7672_v61 }
 0x4db   : > { %v5813_v45 = vpop.eup %5812  ;;  %5828 = vrcp.f32 %v4048_v23  ;;  %v5520_v51 = vpop.f32.mrf.mxu0 }
 0x4dc   : > { %v5815_v10 = vpop.eup %5814  ;;  %v4369_v39 = vsel %vm4350_vm3, %v2355_v13, %v4302_v30  ;;  %v4838_v3 = vadd.f32 -0.5, %v5813_v45  ;;  %5830 = vpow2.f32 %v4785_v47  ;;  %v4783_v35 = vmul.f32 -1.442695, %v3681_v16 }
 0x4dd   : > { %v5817_v44 = vpop.eup %5816  ;;  %4433 = vst [vmem:[%s7710_s28 + $0x90] sm:$0xff] %v4369_v39  ;;  %v4051_v20 = vadd.f32 1.0, %v5815_v10  ;;  %v3702_v6 = vadd.f32 %v5520_v51, %v7672_v61  ;;  %v3693_v26 = vpop.f32.mrf.mxu0  ;;  %v2371_v10 = vadd.f32 %v7411_v38, %v7697_v43  ;;  %v2363_v39 = vadd.f32 %v7413_v1, %v7697_v43 }
 0x4de   : > { %v5819_v52 = vpop.eup %5818  ;;  %v4300_v7 = vmul.f32 2.0, %v4838_v3  ;;  %v4841_v14 = vadd.f32 -0.5, %v5817_v44  ;;  %5832 = vpow2.f32 %v4783_v35  ;;  %v3694_v63 = vadd.f32 %v3693_v26, %v7672_v61 }
 0x4df   : > { %v5821_v55 = vpop.eup %5820  ;;  %5834 = vrcp.f32 %v4051_v20  ;;  %v4049_v37 = vadd.f32 1.0, %v5819_v52  ;;  %v4788_v50 = vmul.f32 -1.442695, %v3702_v6  ;;  %v5521_v31 = vpop.f32.mrf.mxu0  ;;  %v2374_v3 = vadd.f32 %v7419_v22, %v7697_v43 }
 0x4e0   : > { %v4367_v28 = vsel %vm4350_vm3, %v2347_v62, %v4300_v7  ;;  %v4303_v41 = vmul.f32 2.0, %v4841_v14  ;;  %v4839_v8 = vadd.f32 -0.5, %v5821_v55  ;;  %v4786_v57 = vmul.f32 -1.442695, %v3694_v63 }
 0x4e1   : > { %4431 = vst [vmem:[%s7710_s28 + $0x80] sm:$0xff] %v4367_v28  ;;  %5836 = vrcp.f32 %v4049_v37  ;;  %v3705_v33 = vadd.f32 %v5521_v31, %v7672_v61  ;;  %v3696_v4 = vpop.f32.mrf.mxu0  ;;  %v2366_v7 = vadd.f32 %v7421_v2, %v7697_v43  ;;  %v7839_v37 = vadd.f32 %v7425_v49, %v7697_v43 }
 0x4e2   : > { %v4370_v34 = vsel %vm4350_vm3, %v2358_v36, %v4303_v41  ;;  %v4301_v21 = vmul.f32 2.0, %v4839_v8  ;;  %5838 = vpow2.f32 %v4788_v50  ;;  %v3697_v48 = vadd.f32 %v3696_v4, %v7672_v61 }
 0x4e3   : > { %4434 = vst [vmem:[%s7710_s28 + $0x98] sm:$0xff] %v4370_v34  ;;  %5840 = vpow2.f32 %v4786_v57  ;;  %v4789_v53 = vmul.f32 -1.442695, %v3705_v33  ;;  %v5524_v58 = vpop.f32.mrf.mxu0 }
 0x4e4   : > { %v4368_v12 = vsel %vm4350_vm3, %v2350_v9, %v4301_v21  ;;  %v4787_v13 = vmul.f32 -1.442695, %v3697_v48  ;;  %v3718_v11 = vadd.f32 %v5524_v58, %v7672_v61  ;;  %v7847_v9 = vadd.f32 %v7427_v24, %v7697_v43 }
 0x4e5   : > { %v5823_v23 = vpop.eup %5822  ;;  %4432 = vst [vmem:[%s7710_s28 + $0x88] sm:$0xff] %v4368_v12  ;;  %5842 = vpow2.f32 %v4789_v53  ;;  %v3709_v18 = vpop.f32.mrf.mxu0  ;;  %v7853_v21 = vadd.f32 %v7429_v42, %v7697_v43  ;;  %v7859_v24 = vadd.f32 %v7434_v59, %v7697_v43 }
 0x4e6   : > { %v5825_v30 = vpop.eup %5824  ;;  %v4054_v47 = vadd.f32 1.0, %v5823_v23  ;;  %5844 = vpow2.f32 %v4787_v13  ;;  %v4792_v16 = vmul.f32 -1.442695, %v3718_v11  ;;  %v3710_v45 = vadd.f32 %v3709_v18, %v7672_v61 }
 0x4e7   : > { %v5827_v51 = vpop.eup %5826  ;;  %v4844_v35 = vadd.f32 -0.5, %v5825_v30  ;;  %v5525_v44 = vpop.f32.mrf.mxu0 }
 0x4e8   : > { %v5829_v62 = vpop.eup %5828  ;;  %5846 = vrcp.f32 %v4054_v47  ;;  %v4052_v20 = vadd.f32 1.0, %v5827_v51  ;;  %v4790_v6 = vmul.f32 -1.442695, %v3710_v45  ;;  %v3721_v26 = vadd.f32 %v5525_v44, %v7672_v61 }
 0x4e9   : > { %v5831_v52 = vpop.eup %5830  ;;  %v4306_v38 = vmul.f32 2.0, %v4844_v35  ;;  %v4842_v14 = vadd.f32 -0.5, %v5829_v62  ;;  %5848 = vpow2.f32 %v4792_v16  ;;  %v3712_v1 = vpop.f32.mrf.mxu0  ;;  %v7864_v47 = vadd.f32 %v7437_v60, %v7697_v43 }
 0x4ea   : > { %5850 = vrcp.f32 %v4052_v20  ;;  %v4055_v63 = vadd.f32 1.0, %v5831_v52  ;;  %v4793_v22 = vmul.f32 -1.442695, %v3721_v26  ;;  %v3713_v55 = vadd.f32 %v3712_v1, %v7672_v61 }
 0x4eb   : > { %v5833_v36 = vpop.eup %5832  ;;  %v4373_v50 = vsel %vm4350_vm3, %v2371_v10, %v4306_v38  ;;  %v4304_v31 = vmul.f32 2.0, %v4842_v14  ;;  %5852 = vpow2.f32 %v4790_v6  ;;  %v5528_v2 = vpop.f32.mrf.mxu0  ;;  %v7874_v35 = vadd.f32 %v7447_v5, %v7697_v43 }
 0x4ec   : > { %v5835_v28 = vpop.eup %5834  ;;  %4437 = vst [vmem:[%s7710_s28 + $0xb0] sm:$0xff] %v4373_v50  ;;  %5854 = vrcp.f32 %v4055_v63  ;;  %v4053_v41 = vadd.f32 1.0, %v5833_v36  ;;  %v4791_v8 = vmul.f32 -1.442695, %v3713_v55  ;;  %v3734_v57 = vadd.f32 %v5528_v2, %v7672_v61 }
 0x4ed   : > { %v4371_v49 = vsel %vm4350_vm3, %v2363_v39, %v4304_v31  ;;  %v4845_v33 = vadd.f32 -0.5, %v5835_v28  ;;  %5856 = vpow2.f32 %v4793_v22  ;;  %v3725_v4 = vpop.f32.mrf.mxu0  ;;  %v7870_v39 = vadd.f32 %v7439_v27, %v7697_v43 }
 0x4ee   : > { %v5837_v34 = vpop.eup %5836  ;;  %4435 = vst [vmem:[%s7710_s28 + $0xa0] sm:$0xff] %v4371_v49  ;;  %5858 = vrcp.f32 %v4053_v41  ;;  %v4796_v48 = vmul.f32 -1.442695, %v3734_v57  ;;  %v3726_v53 = vadd.f32 %v3725_v4, %v7672_v61  ;;  %v7884_v38 = vadd.f32 %v7449_v17, %v7697_v43 }
 0x4ef   : > { %v5839_v58 = vpop.eup %5838  ;;  %v4307_v12 = vmul.f32 2.0, %v4845_v33  ;;  %v4843_v13 = vadd.f32 -0.5, %v5837_v34  ;;  %5860 = vpow2.f32 %v4791_v8  ;;  %v5529_v11 = vpop.f32.mrf.mxu0  ;;  %v7888_v14 = vadd.f32 %v7460_v0, %v7697_v43 }
 0x4f0   : > { %v5841_v23 = vpop.eup %5840  ;;  %v4058_v18 = vadd.f32 1.0, %v5839_v58  ;;  %5862 = vpow2.f32 %v4796_v48  ;;  %v4794_v42 = vmul.f32 -1.442695, %v3726_v53  ;;  %v3737_v30 = vadd.f32 %v5529_v11, %v7672_v61 }
 0x4f1   : > { %v4374_v16 = vsel %vm4350_vm3, %v2374_v3, %v4307_v12  ;;  %v4305_v59 = vmul.f32 2.0, %v4843_v13  ;;  %v4056_v45 = vadd.f32 1.0, %v5841_v23  ;;  %v3728_v51 = vpop.f32.mrf.mxu0  ;;  %v7897_v17 = vadd.f32 %v7470_v32, %v7697_v43 }
 0x4f2   : > { %v5843_v10 = vpop.eup %5842  ;;  %4438 = vst [vmem:[%s7710_s28 + $0xb8] sm:$0xff] %v4374_v16  ;;  %5864 = vrcp.f32 %v4058_v18  ;;  %v3729_v60 = vadd.f32 %v3728_v51, %v7672_v61  ;;  %v4797_v20 = vmul.f32 -1.442695, %v3737_v30  ;;  %v7901_v0 = vadd.f32 %v7472_v40, %v7697_v43 }
 0x4f3   : > { %v5845_v44 = vpop.eup %5844  ;;  %v4372_v3 = vsel %vm4350_vm3, %v2366_v7, %v4305_v59  ;;  %5866 = vrcp.f32 %v4056_v45  ;;  %v4059_v62 = vadd.f32 1.0, %v5843_v10  ;;  %v5532_v6 = vpop.f32.mrf.mxu0  ;;  %v7892_v7 = vadd.f32 %v7462_v19, %v7697_v43 }
 0x4f4   : > { %4436 = vst [vmem:[%s7710_s28 + $0xa8] sm:$0xff] %v4372_v3  ;;  %v4057_v26 = vadd.f32 1.0, %v5845_v44  ;;  %5868 = vpow2.f32 %v4794_v42  ;;  %v4795_v27 = vmul.f32 -1.442695, %v3729_v60  ;;  %v3750_v52 = vadd.f32 %v5532_v6, %v7672_v61 }
 0x4f5   : > { %v5847_v5 = vpop.eup %5846  ;;  %5870 = vrcp.f32 %v4059_v62  ;;  %v3741_v1 = vpop.f32.mrf.mxu0  ;;  %v7905_v49 = vadd.f32 %v7480_v46, %v7697_v43  ;;  %v7923_v3 = vadd.f32 %v7482_v56, %v7697_v43  ;;  %v7933_v56 = vadd.f32 %v7490_v25, %v7697_v43 }
 0x4f6   : > { %v5849_v63 = vpop.eup %5848  ;;  %v4848_v22 = vadd.f32 -0.5, %v5847_v5  ;;  %5872 = vrcp.f32 %v4057_v26  ;;  %v4800_v55 = vmul.f32 -1.442695, %v3750_v52  ;;  %v3742_v36 = vadd.f32 %v3741_v1, %v7672_v61 }
 0x4f7   : > { %v5851_v50 = vpop.eup %5850  ;;  %v4062_v31 = vadd.f32 1.0, %v5849_v63  ;;  %5874 = vpow2.f32 %v4797_v20  ;;  %v5533_v19 = vpop.f32.mrf.mxu0 }
 0x4f8   : > { %v5853_v2 = vpop.eup %5852  ;;  %v4310_v28 = vmul.f32 2.0, %v4848_v22  ;;  %v4846_v41 = vadd.f32 -0.5, %v5851_v50  ;;  %5876 = vpow2.f32 %v4795_v27  ;;  %v4798_v8 = vmul.f32 -1.442695, %v3742_v36 }
 0x4f9   : > { %v5855_v57 = vpop.eup %5854  ;;  %5878 = vrcp.f32 %v4062_v31  ;;  %v4060_v32 = vadd.f32 1.0, %v5853_v2  ;;  %v3753_v33 = vadd.f32 %v5533_v19, %v7672_v61  ;;  %v3744_v40 = vpop.f32.mrf.mxu0 }
 0x4fa   : > { %v5857_v4 = vpop.eup %5856  ;;  %v4377_v34 = vsel %vm4350_vm3, %v7839_v37, %v4310_v28  ;;  %v4308_v48 = vmul.f32 2.0, %v4846_v41  ;;  %v4849_v53 = vadd.f32 -0.5, %v5855_v57  ;;  %5880 = vpow2.f32 %v4800_v55 }
 0x4fb   : > { %v5859_v58 = vpop.eup %5858  ;;  %4441 = vst [vmem:[%s7710_s28 + $0xd0] sm:$0xff] %v4377_v34  ;;  %5882 = vrcp.f32 %v4060_v32  ;;  %v4063_v12 = vadd.f32 1.0, %v5857_v4  ;;  %v4801_v46 = vmul.f32 -1.442695, %v3753_v33  ;;  %v3745_v13 = vadd.f32 %v3744_v40, %v7672_v61  ;;  %v5536_v11 = vpop.f32.mrf.mxu0 }
 0x4fc   : > { %v5861_v23 = vpop.eup %5860  ;;  %v4375_v18 = vsel %vm4350_vm3, %v7847_v9, %v4308_v48  ;;  %v4311_v42 = vmul.f32 2.0, %v4849_v53  ;;  %v4847_v37 = vadd.f32 -0.5, %v5859_v58  ;;  %5884 = vpow2.f32 %v4798_v8 }
 0x4fd   : > { %v5863_v30 = vpop.eup %5862  ;;  %4439 = vst [vmem:[%s7710_s28 + $0xc0] sm:$0xff] %v4375_v18  ;;  %5886 = vrcp.f32 %v4063_v12  ;;  %v4061_v16 = vadd.f32 1.0, %v5861_v23  ;;  %v4799_v59 = vmul.f32 -1.442695, %v3745_v13  ;;  %v3766_v45 = vadd.f32 %v5536_v11, %v7672_v61  ;;  %v3757_v51 = vpop.f32.mrf.mxu0 }
 0x4fe   : > { %v4378_v10 = vsel %vm4350_vm3, %v7853_v21, %v4311_v42  ;;  %v4309_v60 = vmul.f32 2.0, %v4847_v37  ;;  %v4066_v44 = vadd.f32 1.0, %v5863_v30  ;;  %5888 = vpow2.f32 %v4801_v46 }
 0x4ff   : > { %v5865_v9 = vpop.eup %5864  ;;  %4442 = vst [vmem:[%s7710_s28 + $0xd8] sm:$0xff] %v4378_v10  ;;  %5890 = vrcp.f32 %v4061_v16  ;;  %v4804_v62 = vmul.f32 -1.442695, %v3766_v45  ;;  %v3758_v20 = vadd.f32 %v3757_v51, %v7672_v61  ;;  %v5537_v6 = vpop.f32.mrf.mxu0 }
 0x500   : > { %v5867_v26 = vpop.eup %5866  ;;  %v4376_v21 = vsel %vm4350_vm3, %v7859_v24, %v4309_v60  ;;  %v4852_v27 = vadd.f32 -0.5, %v5865_v9  ;;  %5892 = vrcp.f32 %v4066_v44  ;;  %v3769_v52 = vadd.f32 %v5537_v6, %v7672_v61 }
 0x501   : > { %v5869_v5 = vpop.eup %5868  ;;  %4440 = vst [vmem:[%s7710_s28 + $0xc8] sm:$0xff] %v4376_v21  ;;  %v4850_v1 = vadd.f32 -0.5, %v5867_v26  ;;  %5894 = vpow2.f32 %v4799_v59  ;;  %v4802_v63 = vmul.f32 -1.442695, %v3758_v20  ;;  %v3760_v22 = vpop.f32.mrf.mxu0 }
 0x502   : > { %v5871_v55 = vpop.eup %5870  ;;  %v4314_v36 = vmul.f32 2.0, %v4852_v27  ;;  %v4064_v50 = vadd.f32 1.0, %v5869_v5  ;;  %5896 = vpow2.f32 %v4804_v62  ;;  %v4805_v24 = vmul.f32 -1.442695, %v3769_v52 }
 0x503   : > { %v5873_v31 = vpop.eup %5872  ;;  %v4312_v19 = vmul.f32 2.0, %v4850_v1  ;;  %v4853_v2 = vadd.f32 -0.5, %v5871_v55  ;;  %5898 = vpow2.f32 %v4802_v63  ;;  %v3761_v28 = vadd.f32 %v3760_v22, %v7672_v61  ;;  %v5540_v25 = vpop.f32.mrf.mxu0 }
 0x504   : > { %v5875_v41 = vpop.eup %5874  ;;  %v4381_v8 = vsel %vm4350_vm3, %v7864_v47, %v4314_v36  ;;  %v4851_v57 = vadd.f32 -0.5, %v5873_v31  ;;  %5900 = vrcp.f32 %v4064_v50  ;;  %v3782_v32 = vadd.f32 %v5540_v25, %v7672_v61 }
 0x505   : > { %v5877_v33 = vpop.eup %5876  ;;  %4445 = vst [vmem:[%s7710_s28 + $0xf0] sm:$0xff] %v4381_v8  ;;  %v4379_v40 = vsel %vm4350_vm3, %v7870_v39, %v4312_v19  ;;  %v4315_v4 = vmul.f32 2.0, %v4853_v2  ;;  %v4067_v34 = vadd.f32 1.0, %v5875_v41  ;;  %5902 = vpow2.f32 %v4805_v24  ;;  %v3773_v48 = vpop.f32.mrf.mxu0 }
 0x506   : > { %v5879_v53 = vpop.eup %5878  ;;  %4443 = vst [vmem:[%s7710_s28 + $0xe0] sm:$0xff] %v4379_v40  ;;  %v4313_v58 = vmul.f32 2.0, %v4851_v57  ;;  %v4065_v12 = vadd.f32 1.0, %v5877_v33  ;;  %v4803_v47 = vmul.f32 -1.442695, %v3761_v28  ;;  %v3774_v39 = vadd.f32 %v3773_v48, %v7672_v61 }
 0x507   : > { %v4808_v46 = vmul.f32 -1.442695, %v3782_v32  ;;  %v5881_v13 = vpop.eup %5880  ;;  %v4382_v11 = vsel %vm4350_vm3, %v7874_v35, %v4315_v4  ;;  %v4856_v23 = vadd.f32 -0.5, %v5879_v53  ;;  %5904 = vrcp.f32 %v4067_v34  ;;  %v5541_v18 = vpop.f32.mrf.mxu0 }
 0x508   : > { %v5883_v42 = vpop.eup %5882  ;;  %4446 = vst [vmem:[%s7710_s28 + $0xf8] sm:$0xff] %v4382_v11  ;;  %v4380_v37 = vsel %vm4350_vm3, %v7884_v38, %v4313_v58  ;;  %5906 = vrcp.f32 %v4065_v12  ;;  %v4070_v30 = vadd.f32 1.0, %v5881_v13  ;;  %v3785_v16 = vadd.f32 %v5541_v18, %v7672_v61 }
 0x509   : > { %v5885_v59 = vpop.eup %5884  ;;  %4444 = vst [vmem:[%s7710_s28 + $0xe8] sm:$0xff] %v4380_v37  ;;  %v4318_v45 = vmul.f32 2.0, %v4856_v23  ;;  %v4854_v51 = vadd.f32 -0.5, %v5883_v42  ;;  %5908 = vpow2.f32 %v4803_v47  ;;  %v4806_v35 = vmul.f32 -1.442695, %v3774_v39  ;;  %v3776_v10 = vpop.f32.mrf.mxu0 }
 0x50a   : > { %v5887_v60 = vpop.eup %5886  ;;  %5910 = vrcp.f32 %v4070_v30  ;;  %v4068_v44 = vadd.f32 1.0, %v5885_v59  ;;  %v4809_v9 = vmul.f32 -1.442695, %v3785_v16  ;;  %v3777_v62 = vadd.f32 %v3776_v10, %v7672_v61  ;;  %v8283_v30 = vld [vmem:[#allocation5_spill] sm:$0xff] }
 0x50b   : > { %v5889_v20 = vpop.eup %5888  ;;  %v4385_v38 = vsel %vm4350_vm3, %v7888_v14, %v4318_v45  ;;  %v4316_v6 = vmul.f32 2.0, %v4854_v51  ;;  %v4857_v26 = vadd.f32 -0.5, %v5887_v60  ;;  %5912 = vpow2.f32 %v4808_v46  ;;  %v5544_v21 = vpop.f32.mrf.mxu0 }
 0x50c   : > { %v5891_v27 = vpop.eup %5890  ;;  %4449 = vst [vmem:[%s7710_s28 + $0x110] sm:$0xff] %v4385_v38  ;;  %5914 = vrcp.f32 %v4068_v44  ;;  %v4071_v52 = vadd.f32 1.0, %v5889_v20  ;;  %v4807_v5 = vmul.f32 -1.442695, %v3777_v62  ;;  %v3798_v1 = vadd.f32 %v5544_v21, %v7672_v61 }
 0x50d   : > { %v5893_v63 = vpop.eup %5892  ;;  %v4383_v22 = vsel %vm4350_vm3, %v7892_v7, %v4316_v6  ;;  %v4319_v55 = vmul.f32 2.0, %v4857_v26  ;;  %v4855_v36 = vadd.f32 -0.5, %v5891_v27  ;;  %5916 = vpow2.f32 %v4806_v35  ;;  %v3789_v14 = vpop.f32.mrf.mxu0 }
 0x50e   : > { %v5895_v50 = vpop.eup %5894  ;;  %4447 = vst [vmem:[%s7710_s28 + $0x100] sm:$0xff] %v4383_v22  ;;  %v4860_v24 = vadd.f32 -0.5, %v5893_v63  ;;  %5918 = vrcp.f32 %v4071_v52  ;;  %v4812_v31 = vmul.f32 -1.442695, %v3798_v1  ;;  %v3790_v19 = vadd.f32 %v3789_v14, %v7672_v61 }
 0x50f   : > { %v5897_v2 = vpop.eup %5896  ;;  %v4386_v28 = vsel %vm4350_vm3, %v7897_v17, %v4319_v55  ;;  %v4317_v25 = vmul.f32 2.0, %v4855_v36  ;;  %v4069_v41 = vadd.f32 1.0, %v5895_v50  ;;  %5920 = vpow2.f32 %v4809_v9  ;;  %v5545_v7 = vpop.f32.mrf.mxu0 }
 0x510   : > { %v5899_v8 = vpop.eup %5898  ;;  %4450 = vst [vmem:[%s7710_s28 + $0x118] sm:$0xff] %v4386_v28  ;;  %v4322_v57 = vmul.f32 2.0, %v4860_v24  ;;  %v4074_v32 = vadd.f32 1.0, %v5897_v2  ;;  %5922 = vpow2.f32 %v4807_v5  ;;  %v4810_v33 = vmul.f32 -1.442695, %v3790_v19 }
 0x511   : > { %v5901_v40 = vpop.eup %5900  ;;  %v4384_v4 = vsel %vm4350_vm3, %v7901_v0, %v4317_v25  ;;  %5924 = vrcp.f32 %v4069_v41  ;;  %v4072_v34 = vadd.f32 1.0, %v5899_v8  ;;  %v3801_v17 = vadd.f32 %v5545_v7, %v7672_v61  ;;  %v3792_v48 = vpop.f32.mrf.mxu0  ;;  %v8284_v25 = vld [vmem:[#allocation3_spill] sm:$0xff] }
 0x512   : > { %v5903_v53 = vpop.eup %5902  ;;  %4448 = vst [vmem:[%s7710_s28 + $0x108] sm:$0xff] %v4384_v4  ;;  %v4389_v58 = vsel %vm4350_vm3, %v7905_v49, %v4322_v57  ;;  %v4858_v12 = vadd.f32 -0.5, %v5901_v40  ;;  %5926 = vrcp.f32 %v4074_v32  ;;  %v3793_v47 = vadd.f32 %v3792_v48, %v7672_v61 }
 0x513   : > { %v2430_v46 = vadd.f32 %v7492_v54, %v7697_v43  ;;  %4453 = vst [vmem:[%s7710_s28 + $0x130] sm:$0xff] %v4389_v58  ;;  %5928 = vrcp.f32 %v4072_v34  ;;  %v4075_v0 = vadd.f32 1.0, %v5903_v53  ;;  %v4813_v13 = vmul.f32 -1.442695, %v3801_v17  ;;  %v5548_v11 = vpop.f32.mrf.mxu0 }
 0x514   : > { %v5905_v23 = vpop.eup %5904  ;;  %v4320_v39 = vmul.f32 2.0, %v4858_v12  ;;  %5930 = vpow2.f32 %v4812_v31  ;;  %v4811_v18 = vmul.f32 -1.442695, %v3793_v47  ;;  %v3814_v42 = vadd.f32 %v5548_v11, %v7672_v61  ;;  %v8285_v12 = vld [vmem:[#allocation4_spill] sm:$0xff] }
 0x515   : > { %v5907_v49 = vpop.eup %5906  ;;  %v2451_v37 = vadd.f32 %v7500_v15, %v7697_v43  ;;  %v2443_v16 = vadd.f32 %v8283_v30, %v7697_v43  ;;  %v4861_v54 = vadd.f32 -0.5, %v5905_v23  ;;  %5932 = vrcp.f32 %v4075_v0  ;;  %v3805_v59 = vpop.f32.mrf.mxu0  ;;  %v8286_v11 = vld [vmem:[#allocation8_spill] sm:$0xff] }
 0x516   : > { %v5909_v45 = vpop.eup %5908  ;;  %v4387_v51 = vsel %vm4350_vm3, %v7923_v3, %v4320_v39  ;;  %v4859_v35 = vadd.f32 -0.5, %v5907_v49  ;;  %5934 = vpow2.f32 %v4810_v33  ;;  %v4816_v10 = vmul.f32 -1.442695, %v3814_v42  ;;  %v8287_v49 = vld [vmem:[#allocation9_spill] sm:$0xff] }
 0x517   : > { %v5911_v60 = vpop.eup %5910  ;;  %4451 = vst [vmem:[%s7710_s28 + $0x120] sm:$0xff] %v4387_v51  ;;  %v4323_v44 = vmul.f32 2.0, %v4861_v54  ;;  %v4073_v9 = vadd.f32 1.0, %v5909_v45  ;;  %5936 = vpow2.f32 %v4813_v13  ;;  %v3806_v15 = vadd.f32 %v3805_v59, %v7672_v61  ;;  %v5549_v62 = vpop.f32.mrf.mxu0 }
 0x518   : > { %v5913_v20 = vpop.eup %5912  ;;  %v4321_v38 = vmul.f32 2.0, %v4859_v35  ;;  %v4864_v6 = vadd.f32 -0.5, %v5911_v60  ;;  %5938 = vpow2.f32 %v4811_v18  ;;  %v3817_v26 = vadd.f32 %v5549_v62, %v7672_v61 }
 0x519   : > { %v5915_v3 = vpop.eup %5914  ;;  %v4390_v21 = vsel %vm4350_vm3, %v7933_v56, %v4323_v44  ;;  %5940 = vrcp.f32 %v4073_v9  ;;  %v4078_v27 = vadd.f32 1.0, %v5913_v20  ;;  %v4814_v52 = vmul.f32 -1.442695, %v3806_v15  ;;  %v3808_v5 = vpop.f32.mrf.mxu0 }
 0x51a   : > { %v5917_v1 = vpop.eup %5916  ;;  %4454 = vst [vmem:[%s7710_s28 + $0x138] sm:$0xff] %v4390_v21  ;;  %v4388_v63 = vsel %vm4350_vm3, %v2430_v46, %v4321_v38  ;;  %v4326_v22 = vmul.f32 2.0, %v4864_v6  ;;  %v4862_v55 = vadd.f32 -0.5, %v5915_v3  ;;  %5942 = vpow2.f32 %v4816_v10  ;;  %v8288_v10 = vld [vmem:[#allocation6_spill] sm:$0xff] }
 0x51b   : > { %v5919_v36 = vpop.eup %5918  ;;  %4452 = vst [vmem:[%s7710_s28 + $0x128] sm:$0xff] %v4388_v63  ;;  %5944 = vrcp.f32 %v4078_v27  ;;  %v4076_v14 = vadd.f32 1.0, %v5917_v1  ;;  %v4817_v50 = vmul.f32 -1.442695, %v3817_v26  ;;  %v3809_v56 = vadd.f32 %v3808_v5, %v7672_v61 }
 0x51c   : > { %v5921_v24 = vpop.eup %5920  ;;  %v4393_v31 = vsel %vm4350_vm3, %v2451_v37, %v4326_v22  ;;  %v4324_v19 = vmul.f32 2.0, %v4862_v55  ;;  %v4865_v2 = vadd.f32 -0.5, %v5919_v36  ;;  %5946 = vpow2.f32 %v4814_v52  ;;  %v8289_v52 = vld [vmem:[#allocation7_spill] sm:$0xff] }
 0x51d   : > { %v5923_v28 = vpop.eup %5922  ;;  %v2454_v41 = vadd.f32 %v8284_v25, %v7697_v43  ;;  %4457 = vst [vmem:[%s7710_s28 + $0x150] sm:$0xff] %v4393_v31  ;;  %5948 = vrcp.f32 %v4076_v14  ;;  %v4079_v7 = vadd.f32 1.0, %v5921_v24  ;;  %v4815_v8 = vmul.f32 -1.442695, %v3809_v56  ;;  %v8290_v14 = vld [vmem:[#allocation12_spill] sm:$0xff]  ;;  %v8291_v25 = vld [vmem:[#allocation13_spill] sm:$0xff] }
 0x51e   : > { %v5925_v57 = vpop.eup %5924  ;;  %v4391_v32 = vsel %vm4350_vm3, %v2443_v16, %v4324_v19  ;;  %v4327_v33 = vmul.f32 2.0, %v4865_v2  ;;  %v4077_v40 = vadd.f32 1.0, %v5923_v28  ;;  %5950 = vpow2.f32 %v4817_v50 }
 0x51f   : > { %v5927_v4 = vpop.eup %5926  ;;  %4455 = vst [vmem:[%s7710_s28 + $0x140] sm:$0xff] %v4391_v32  ;;  %v4863_v34 = vadd.f32 -0.5, %v5925_v57  ;;  %5952 = vrcp.f32 %v4079_v7  ;;  %v2446_v47 = vadd.f32 %v8285_v12, %v7697_v43  ;;  %v2467_v23 = vadd.f32 %v8286_v11, %v7697_v43 }
 0x520   : > { %v5929_v17 = vpop.eup %5928  ;;  %v4394_v48 = vsel %vm4350_vm3, %v2454_v41, %v4327_v33  ;;  %v4868_v53 = vadd.f32 -0.5, %v5927_v4  ;;  %5954 = vrcp.f32 %v4077_v40  ;;  %v2459_v37 = vadd.f32 %v8287_v49, %v7697_v43  ;;  %v8292_v40 = vld [vmem:[#allocation10_spill] sm:$0xff] }
 0x521   : > { %v5931_v58 = vpop.eup %5930  ;;  %4458 = vst [vmem:[%s7710_s28 + $0x158] sm:$0xff] %v4394_v48  ;;  %v4325_v46 = vmul.f32 2.0, %v4863_v34  ;;  %v4866_v0 = vadd.f32 -0.5, %v5929_v17  ;;  %5956 = vpow2.f32 %v4815_v8  ;;  %v2470_v60 = vadd.f32 %v8288_v10, %v7697_v43  ;;  %v8296_v10 = vld [vmem:[#allocation15_spill] sm:$0xff] }
 0x522   : > { %v5933_v13 = vpop.eup %5932  ;;  %v4330_v39 = vmul.f32 2.0, %v4868_v53  ;;  %v4082_v18 = vadd.f32 1.0, %v5931_v58  ;;  %v2462_v5 = vadd.f32 %v8289_v52, %v7697_v43  ;;  %v2483_v50 = vadd.f32 %v8290_v14, %v7697_v43  ;;  %v8293_v53 = vld [vmem:[#allocation11_spill] sm:$0xff] }
 0x523   : > { %v5935_v42 = vpop.eup %5934  ;;  %v4392_v30 = vsel %vm4350_vm3, %v2446_v47, %v4325_v46  ;;  %v4328_v16 = vmul.f32 2.0, %v4866_v0  ;;  %v4869_v54 = vadd.f32 -0.5, %v5933_v13  ;;  %v2475_v41 = vadd.f32 %v8291_v25, %v7697_v43  ;;  %v8301_v25 = vld [vmem:[#allocation20_spill] sm:$0xff] }
 0x524   : > { %v5937_v59 = vpop.eup %5936  ;;  %4456 = vst [vmem:[%s7710_s28 + $0x148] sm:$0xff] %v4392_v30  ;;  %v4397_v45 = vsel %vm4350_vm3, %v2467_v23, %v4330_v39  ;;  %5958 = vrcp.f32 %v4082_v18  ;;  %v4080_v51 = vadd.f32 1.0, %v5935_v42  ;;  %v2486_v4 = vadd.f32 %v8292_v40, %v7697_v43  ;;  %v8294_v39 = vld [vmem:[#allocation16_spill] sm:$0xff] }
 0x525   : > { %v5939_v35 = vpop.eup %5938  ;;  %4461 = vst [vmem:[%s7710_s28 + $0x170] sm:$0xff] %v4397_v45  ;;  %v4395_v44 = vsel %vm4350_vm3, %v2459_v37, %v4328_v16  ;;  %v4331_v9 = vmul.f32 2.0, %v4869_v54  ;;  %v4083_v15 = vadd.f32 1.0, %v5937_v59  ;;  %v2478_v58 = vadd.f32 %v8293_v53, %v7697_v43  ;;  %v8295_v16 = vld [vmem:[#allocation14_spill] sm:$0xff] }
 0x526   : > { %v5941_v62 = vpop.eup %5940  ;;  %4459 = vst [vmem:[%s7710_s28 + $0x160] sm:$0xff] %v4395_v44  ;;  %5960 = vrcp.f32 %v4080_v51  ;;  %v4081_v20 = vadd.f32 1.0, %v5939_v35  ;;  %v2499_v18 = vadd.f32 %v8294_v39, %v7697_v43  ;;  %v2491_v54 = vadd.f32 %v8295_v16, %v7697_v43 }
 0x527   : > { %v5943_v38 = vpop.eup %5942  ;;  %v4398_v6 = vsel %vm4350_vm3, %v2470_v60, %v4331_v9  ;;  %v4867_v26 = vadd.f32 -0.5, %v5941_v62  ;;  %5962 = vrcp.f32 %v4083_v15  ;;  %v2502_v60 = vadd.f32 %v8296_v10, %v7697_v43  ;;  %v8297_v9 = vld [vmem:[#allocation2_spill] sm:$0xff] }
 0x528   : > { %v5945_v3 = vpop.eup %5944  ;;  %4462 = vst [vmem:[%s7710_s28 + $0x178] sm:$0xff] %v4398_v6  ;;  %5964 = vrcp.f32 %v4081_v20  ;;  %v4086_v21 = vadd.f32 1.0, %v5943_v38  ;;  %v2494_v15 = vadd.f32 %v8297_v9, %v7697_v43 }
 0x529   : > { %v5947_v27 = vpop.eup %5946  ;;  %v4329_v1 = vmul.f32 2.0, %v4867_v26  ;;  %v4872_v63 = vadd.f32 -0.5, %v5945_v3  ;;  %v8298_v3 = vld [vmem:[#allocation18_spill] sm:$0xff] }
 0x52a   : > { %v5949_v22 = vpop.eup %5948  ;;  %5966 = vrcp.f32 %v4086_v21  ;;  %v4084_v55 = vadd.f32 1.0, %v5947_v27  ;;  %v2515_v21 = vadd.f32 %v8298_v3, %v7697_v43 }
 0x52b   : > { %v5951_v36 = vpop.eup %5950  ;;  %v4396_v56 = vsel %vm4350_vm3, %v2462_v5, %v4329_v1  ;;  %v4334_v24 = vmul.f32 2.0, %v4872_v63  ;;  %v4870_v31 = vadd.f32 -0.5, %v5949_v22  ;;  %v8299_v63 = vld [vmem:[#allocation19_spill] sm:$0xff] }
 0x52c   : > { %v5953_v19 = vpop.eup %5952  ;;  %4460 = vst [vmem:[%s7710_s28 + $0x168] sm:$0xff] %v4396_v56  ;;  %5968 = vrcp.f32 %v4084_v55  ;;  %v4087_v2 = vadd.f32 1.0, %v5951_v36  ;;  %v2507_v22 = vadd.f32 %v8299_v63, %v7697_v43  ;;  %v8300_v56 = vld [vmem:[#allocation17_spill] sm:$0xff] }
 0x52d   : > { %v5955_v28 = vpop.eup %5954  ;;  %v4401_v7 = vsel %vm4350_vm3, %v2483_v50, %v4334_v24  ;;  %v4332_v8 = vmul.f32 2.0, %v4870_v31  ;;  %v4873_v57 = vadd.f32 -0.5, %v5953_v19  ;;  %v2518_v24 = vadd.f32 %v8300_v56, %v7697_v43 }
 0x52e   : > { %v5957_v32 = vpop.eup %5956  ;;  %4465 = vst [vmem:[%s7710_s28 + $0x190] sm:$0xff] %v4401_v7  ;;  %v4871_v33 = vadd.f32 -0.5, %v5955_v28  ;;  %5970 = vrcp.f32 %v4087_v2 }
 0x52f   : > { %v4399_v34 = vsel %vm4350_vm3, %v2475_v41, %v4332_v8  ;;  %v4335_v17 = vmul.f32 2.0, %v4873_v57  ;;  %v4085_v48 = vadd.f32 1.0, %v5957_v32  ;;  %v2510_v41 = vadd.f32 %v8301_v25, %v7697_v43 }
 0x530   : > { %4463 = vst [vmem:[%s7710_s28 + $0x180] sm:$0xff] %v4399_v34  ;;  %v4333_v12 = vmul.f32 2.0, %v4871_v33 }
 0x531   : > { %v5959_v47 = vpop.eup %5958  ;;  %v4402_v46 = vsel %vm4350_vm3, %v2486_v4, %v4335_v17  ;;  %5972 = vrcp.f32 %v4085_v48 }
 0x532   : > { %4466 = vst [vmem:[%s7710_s28 + $0x198] sm:$0xff] %v4402_v46  ;;  %v4400_v0 = vsel %vm4350_vm3, %v2478_v58, %v4333_v12  ;;  %v4876_v13 = vadd.f32 -0.5, %v5959_v47 }
 0x533   : > { %v5961_v11 = vpop.eup %5960  ;;  %4464 = vst [vmem:[%s7710_s28 + $0x188] sm:$0xff] %v4400_v0 }
 0x534   : > { %v5963_v23 = vpop.eup %5962  ;;  %v4338_v42 = vmul.f32 2.0, %v4876_v13  ;;  %v4874_v49 = vadd.f32 -0.5, %v5961_v11 }
 0x535   : > { %v5965_v37 = vpop.eup %5964  ;;  %v4877_v30 = vadd.f32 -0.5, %v5963_v23 }
 0x536   : > { %v4405_v59 = vsel %vm4350_vm3, %v2499_v18, %v4338_v42  ;;  %v4336_v45 = vmul.f32 2.0, %v4874_v49  ;;  %v4875_v51 = vadd.f32 -0.5, %v5965_v37 }
 0x537   : > { %v5967_v35 = vpop.eup %5966  ;;  %4469 = vst [vmem:[%s7710_s28 + $0x1b0] sm:$0xff] %v4405_v59  ;;  %v4339_v44 = vmul.f32 2.0, %v4877_v30  ;;  %v8302_v30 = vld [vmem:[#allocation22_spill] sm:$0xff] }
 0x538   : > { %v4403_v62 = vsel %vm4350_vm3, %v2491_v54, %v4336_v45  ;;  %v4337_v20 = vmul.f32 2.0, %v4875_v51  ;;  %v4880_v38 = vadd.f32 -0.5, %v5967_v35  ;;  %v2531_v16 = vadd.f32 %v8302_v30, %v7697_v43  ;;  %v8303_v51 = vld [vmem:[#allocation21_spill] sm:$0xff] }
 0x539   : > { %v5969_v6 = vpop.eup %5968  ;;  %4467 = vst [vmem:[%s7710_s28 + $0x1a0] sm:$0xff] %v4403_v62  ;;  %v4406_v26 = vsel %vm4350_vm3, %v2502_v60, %v4339_v44  ;;  %v2523_v35 = vadd.f32 %v8303_v51, %v7697_v43 }
 0x53a   : > { %4470 = vst [vmem:[%s7710_s28 + $0x1b8] sm:$0xff] %v4406_v26  ;;  %v4404_v27 = vsel %vm4350_vm3, %v2494_v15, %v4337_v20  ;;  %v4342_v52 = vmul.f32 2.0, %v4880_v38  ;;  %v4878_v5 = vadd.f32 -0.5, %v5969_v6  ;;  %v8304_v15 = vld [vmem:[#allocation23_spill] sm:$0xff]  ;;  %v8305_v26 = vld [vmem:[#allocation24_spill] sm:$0xff] }
 0x53b   : > { %v5971_v1 = vpop.eup %5970  ;;  %4468 = vst [vmem:[%s7710_s28 + $0x1a8] sm:$0xff] %v4404_v27  ;;  %v2534_v62 = vadd.f32 %v8304_v15, %v7697_v43  ;;  %v2526_v3 = vadd.f32 %v8305_v26, %v7697_v43 }
 0x53c   : > { %v4409_v55 = vsel %vm4350_vm3, %v2515_v21, %v4342_v52  ;;  %v4340_v36 = vmul.f32 2.0, %v4878_v5  ;;  %v4881_v14 = vadd.f32 -0.5, %v5971_v1 }
 0x53d   : > { %4473 = vst [vmem:[%s7710_s28 + $0x1d0] sm:$0xff] %v4409_v55 }
 0x53e   : > { %v5973_v50 = vpop.eup %5972  ;;  %v4407_v31 = vsel %vm4350_vm3, %v2507_v22, %v4340_v36  ;;  %v4343_v19 = vmul.f32 2.0, %v4881_v14 }
 0x53f   : > { %4471 = vst [vmem:[%s7710_s28 + $0x1c0] sm:$0xff] %v4407_v31  ;;  %v4879_v2 = vadd.f32 -0.5, %v5973_v50 }
 0x540   : > { %v4410_v28 = vsel %vm4350_vm3, %v2518_v24, %v4343_v19 }
 0x541   : > { %4474 = vst [vmem:[%s7710_s28 + $0x1d8] sm:$0xff] %v4410_v28  ;;  %v4341_v7 = vmul.f32 2.0, %v4879_v2 }
 0x543   : > { %v4408_v8 = vsel %vm4350_vm3, %v2510_v41, %v4341_v7 }
 0x544   : > { %4472 = vst [vmem:[%s7710_s28 + $0x1c8] sm:$0xff] %v4408_v8 }
 0x559   : > { %v5552_v57 = vpop.f32.mrf.mxu0 }
 0x55a   : > { %v3830_v32 = vadd.f32 %v5552_v57, %v7672_v61 }
 0x55b   : > { %v3821_v33 = vpop.f32.mrf.mxu0 }
 0x55c   : > { %v4820_v40 = vmul.f32 -1.442695, %v3830_v32  ;;  %v3822_v4 = vadd.f32 %v3821_v33, %v7672_v61 }
 0x55d   : > { %v5553_v34 = vpop.f32.mrf.mxu0 }
 0x55e   : > { %5974 = vpow2.f32 %v4820_v40  ;;  %v4818_v17 = vmul.f32 -1.442695, %v3822_v4  ;;  %v3833_v48 = vadd.f32 %v5553_v34, %v7672_v61 }
 0x55f   : > { %v3824_v53 = vpop.f32.mrf.mxu0 }
 0x560   : > { %5976 = vpow2.f32 %v4818_v17  ;;  %v4821_v58 = vmul.f32 -1.442695, %v3833_v48  ;;  %v3825_v12 = vadd.f32 %v3824_v53, %v7672_v61 }
 0x562   : > { %5978 = vpow2.f32 %v4821_v58  ;;  %v4819_v47 = vmul.f32 -1.442695, %v3825_v12 }
 0x564   : > { %5980 = vpow2.f32 %v4819_v47 }
 0x56b   : > { %v5975_v46 = vpop.eup %5974 }
 0x56c   : > { %v4090_v0 = vadd.f32 1.0, %v5975_v46 }
 0x56d   : > { %v5977_v13 = vpop.eup %5976 }
 0x56e   : > { %5982 = vrcp.f32 %v4090_v0  ;;  %v4088_v11 = vadd.f32 1.0, %v5977_v13 }
 0x56f   : > { %v5979_v23 = vpop.eup %5978 }
 0x570   : > { %5984 = vrcp.f32 %v4088_v11  ;;  %v4091_v39 = vadd.f32 1.0, %v5979_v23 }
 0x571   : > { %v5981_v18 = vpop.eup %5980 }
 0x572   : > { %5986 = vrcp.f32 %v4091_v39  ;;  %v4089_v42 = vadd.f32 1.0, %v5981_v18 }
 0x574   : > { %5988 = vrcp.f32 %v4089_v42 }
 0x57b   : > { %v5983_v49 = vpop.eup %5982 }
 0x57c   : > { %v4884_v37 = vadd.f32 -0.5, %v5983_v49 }
 0x57d   : > { %v5985_v61 = vpop.eup %5984 }
 0x57e   : > { %v4346_v54 = vmul.f32 2.0, %v4884_v37  ;;  %v4882_v59 = vadd.f32 -0.5, %v5985_v61 }
 0x57f   : > { %v5987_v45 = vpop.eup %5986 }
 0x580   : > { %v4413_v10 = vsel %vm4350_vm3, %v2531_v16, %v4346_v54  ;;  %v4344_v60 = vmul.f32 2.0, %v4882_v59  ;;  %v4885_v44 = vadd.f32 -0.5, %v5987_v45 }
 0x581   : > { %v5989_v9 = vpop.eup %5988  ;;  %4477 = vst [vmem:[%s7710_s28 + $0x1f0] sm:$0xff] %v4413_v10 }
 0x582   : > { %v4411_v20 = vsel %vm4350_vm3, %v2523_v35, %v4344_v60  ;;  %v4347_v38 = vmul.f32 2.0, %v4885_v44  ;;  %v4883_v6 = vadd.f32 -0.5, %v5989_v9 }
 0x583   : > { %4475 = vst [vmem:[%s7710_s28 + $0x1e0] sm:$0xff] %v4411_v20 }
 0x584   : > { %v4414_v21 = vsel %vm4350_vm3, %v2534_v62, %v4347_v38  ;;  %v4345_v27 = vmul.f32 2.0, %v4883_v6 }
 0x585   : > { %4478 = vst [vmem:[%s7710_s28 + $0x1f8] sm:$0xff] %v4414_v21 }
 0x586   : > { %v4412_v52 = vsel %vm4350_vm3, %v2526_v3, %v4345_v27 }
 0x587   : > { %4476 = vst [vmem:[%s7710_s28 + $0x1e8] sm:$0xff] %v4412_v52 }
 0x588 PF: > { %s17_s24 = sadd.s32 1, %s5998_s24  }
 0x589   : > { %p14_p4 = scmp.ge.s32.totalorder %s17_s24, 4  }
 0x58b   :  { %16 = sbr.rel (!%p14_p4) target bundleno = 1 (0x1), region = 81 }

</bundles_post_ra>
